<compile_context>
chip_gen: v6e
topology: v6e:2x2x1
jax: 0.10.0
libtpu: 0.0.40
codegen_flags: <defaults>
</compile_context>

<pallas_src>
import functools
import math

import jax
import jax.numpy as jnp
import numpy as np
from jax.experimental import pallas as pl
from jax.experimental.pallas import tpu as pltpu


_VMEM_LIMIT = 32 * 1024 * 1024   # safe on v5e/v6e/v7x (v7x physical VMEM = 64 MiB)
_TILE_M = 256                    # row tile for linear / LN / FFN kernels


# ------------------------------------------------------------------
# In-kernel math helpers (f32)
# ------------------------------------------------------------------
def _erf(x):
    # Abramowitz & Stegun 7.1.26 polynomial, |err| < 1.5e-7 (within f32 eps),
    # used instead of lax.erf to avoid relying on Mosaic erf lowering.
    a1, a2, a3, a4, a5 = (0.254829592, -0.284496736, 1.421413741,
                          -1.453152027, 1.061405429)
    p = 0.3275911
    ax = jnp.abs(x)
    t = 1.0 / (1.0 + p * ax)
    poly = t * (a1 + t * (a2 + t * (a3 + t * (a4 + t * a5))))
    y = 1.0 - poly * jnp.exp(-ax * ax)
    return jnp.where(x < 0, -y, y)


def _gelu_exact(x):
    # matches F.gelu (exact) up to ~1e-7
    return 0.5 * x * (1.0 + _erf(x * (1.0 / math.sqrt(2.0))))


def _ln(z, g, b):
    mu = jnp.mean(z, axis=-1, keepdims=True)
    zc = z - mu
    var = jnp.mean(zc * zc, axis=-1, keepdims=True)
    return zc * jax.lax.rsqrt(var + 1e-5) * g + b


# ------------------------------------------------------------------
# Row-tiled Pallas kernels (x is tiled over rows; weights stay resident)
# ------------------------------------------------------------------
def _matmul_bias_kernel(x_ref, w_ref, b_ref, o_ref):
    o_ref[...] = jnp.dot(x_ref[...].astype(jnp.bfloat16), w_ref[...],
                         preferred_element_type=jnp.float32) + b_ref[...]


def _matmul_res_kernel(x_ref, w_ref, r_ref, o_ref):
    # out = x @ w + residual   (used for TokenEmbedding conv, bias=False)
    o_ref[...] = jnp.dot(x_ref[...].astype(jnp.bfloat16), w_ref[...],
                         preferred_element_type=jnp.float32) + r_ref[...]


def _proj_res_ln_kernel(x_ref, w_ref, b_ref, r_ref, g_ref, be_ref, o_ref):
    # out = LayerNorm(residual + x @ w + b)
    y = jnp.dot(x_ref[...].astype(jnp.bfloat16), w_ref[...],
                preferred_element_type=jnp.float32) + b_ref[...]
    o_ref[...] = _ln(r_ref[...] + y, g_ref[...], be_ref[...])


def _ffn_ln_kernel(x_ref, w1_ref, b1_ref, w2_ref, b2_ref, g_ref, be_ref, o_ref):
    # out = LayerNorm(x + W2(gelu(W1 x + b1)) + b2); (M, d_ff) never leaves VMEM
    x = x_ref[...]
    h = jnp.dot(x.astype(jnp.bfloat16), w1_ref[...],
                preferred_element_type=jnp.float32) + b1_ref[...]
    h = _gelu_exact(h)
    y = jnp.dot(h.astype(jnp.bfloat16), w2_ref[...],
                preferred_element_type=jnp.float32) + b2_ref[...]
    o_ref[...] = _ln(x + y, g_ref[...], be_ref[...])


def _layernorm_kernel(x_ref, g_ref, b_ref, o_ref):
    o_ref[...] = _ln(x_ref[...], g_ref[...], b_ref[...])


def _row_tiled(kernel, args, row_flags, out_cols, tile_m=_TILE_M):
    """Launch `kernel` tiled over the rows of the 2-D `args[i]` with row_flags[i]=True.
    Non-row args (weights, biases, LN params) stay VMEM-resident (block index (0,0))."""
    M = args[0].shape[0]
    tm = M if M <= tile_m else tile_m
    grid = (pl.cdiv(M, tm),)
    in_specs = []
    for a, is_row in zip(args, row_flags):
        if is_row:
            in_specs.append(pl.BlockSpec((tm, a.shape[1]), lambda i: (i, 0)))
        else:
            in_specs.append(pl.BlockSpec(a.shape, lambda i: (0, 0)))
    return pl.pallas_call(
        kernel,
        out_shape=jax.ShapeDtypeStruct((M, out_cols), jnp.float32),
        grid=grid,
        in_specs=in_specs,
        out_specs=pl.BlockSpec((tm, out_cols), lambda i: (i, 0)),
        compiler_params=pltpu.CompilerParams(
            dimension_semantics=("parallel",),
            vmem_limit_bytes=_VMEM_LIMIT),
    )(*args)


def linear_bias(x2d, w, b):
    return _row_tiled(_matmul_bias_kernel, [x2d, w, b],
                      [True, False, False], w.shape[1])


def matmul_residual(x2d, w, res2d):
    return _row_tiled(_matmul_res_kernel, [x2d, w, res2d],
                      [True, False, True], w.shape[1])


def proj_res_ln(x2d, w, b, res2d, g, beta):
    return _row_tiled(_proj_res_ln_kernel, [x2d, w, b, res2d, g, beta],
                      [True, False, False, True, False, False], w.shape[1])


def ffn_ln(x2d, w1, b1, w2, b2, g, beta):
    return _row_tiled(_ffn_ln_kernel, [x2d, w1, b1, w2, b2, g, beta],
                      [True, False, False, False, False, False, False],
                      x2d.shape[1])


def layernorm2d(x2d, g, beta):
    return _row_tiled(_layernorm_kernel, [x2d, g, beta],
                      [True, False, False], x2d.shape[1])


# ------------------------------------------------------------------
# Attention kernels: one grid step per batch element, all heads in-kernel
# ------------------------------------------------------------------
def _mha_core(q, k, v, *, n_heads, causal):
    L, D = q.shape
    S = k.shape[0]
    E = D // n_heads
    qb = q.astype(jnp.bfloat16)
    kb = k.astype(jnp.bfloat16)
    vb = v.astype(jnp.bfloat16)
    if causal:
        row = jax.lax.broadcasted_iota(jnp.int32, (L, S), 0)
        col = jax.lax.broadcasted_iota(jnp.int32, (L, S), 1)
        mask = col > row                              # TriangularCausalMask
        neg = jnp.float32(-1e30)                      # finite, no -inf hazard
    outs = []
    for h in range(n_heads):                          # static unroll over heads
        lo, hi = h * E, (h + 1) * E
        s = jax.lax.dot_general(qb[:, lo:hi], kb[:, lo:hi],
                                (((1,), (1,)), ((), ())),
                                preferred_element_type=jnp.float32)
        if causal:
            s = jnp.where(mask, neg, s)
        m = jnp.max(s, axis=-1, keepdims=True)
        p = jnp.exp(s - m)
        p = p * pl.reciprocal(jnp.sum(p, axis=-1, keepdims=True), approx=True)
        outs.append(jnp.dot(p.astype(jnp.bfloat16), vb[:, lo:hi],
                            preferred_element_type=jnp.float32))
    return jnp.concatenate(outs, axis=-1)             # lane-dense (L, D) output


def _attn_self_kernel(qkv_ref, o_ref, *, n_heads, causal, scale):
    qkv = qkv_ref[0]                                  # (L, 3D)
    D = qkv.shape[-1] // 3
    q = qkv[:, :D] * scale                            # fold scale into q
    k = qkv[:, D:2 * D]
    v = qkv[:, 2 * D:]
    o_ref[0] = _mha_core(q, k, v, n_heads=n_heads, causal=causal)


def _attn_cross_kernel(q_ref, kv_ref, o_ref, *, n_heads, scale):
    q = q_ref[0] * scale                              # (L, D)
    kv = kv_ref[0]                                    # (S, 2D)
    D = q.shape[-1]
    o_ref[0] = _mha_core(q, kv[:, :D], kv[:, D:], n_heads=n_heads, causal=False)


def attention_self(qkv, *, n_heads, causal, scale):
    B, L, D3 = qkv.shape
    D = D3 // 3
    kern = functools.partial(_attn_self_kernel, n_heads=n_heads,
                             causal=causal, scale=scale)
    return pl.pallas_call(
        kern,
        out_shape=jax.ShapeDtypeStruct((B, L, D), jnp.float32),
        grid=(B,),
        in_specs=[pl.BlockSpec((1, L, D3), lambda i: (i, 0, 0))],
        out_specs=pl.BlockSpec((1, L, D), lambda i: (i, 0, 0)),
        compiler_params=pltpu.CompilerParams(
            dimension_semantics=("parallel",),
            vmem_limit_bytes=_VMEM_LIMIT),
    )(qkv)


def attention_cross(q, kv, *, n_heads, scale):
    B, L, D = q.shape
    S = kv.shape[1]
    kern = functools.partial(_attn_cross_kernel, n_heads=n_heads, scale=scale)
    return pl.pallas_call(
        kern,
        out_shape=jax.ShapeDtypeStruct((B, L, D), jnp.float32),
        grid=(B,),
        in_specs=[pl.BlockSpec((1, L, D), lambda i: (i, 0, 0)),
                  pl.BlockSpec((1, S, 2 * D), lambda i: (i, 0, 0))],
        out_specs=pl.BlockSpec((1, L, D), lambda i: (i, 0, 0)),
        compiler_params=pltpu.CompilerParams(
            dimension_semantics=("parallel",),
            vmem_limit_bytes=_VMEM_LIMIT),
    )(q, kv)


# ------------------------------------------------------------------
# Parameter construction (deterministic)
# ------------------------------------------------------------------
def _sinusoid_table(n, d):
    pos = np.arange(n, dtype=np.float32)[:, None]
    div = np.exp(np.arange(0, d, 2, dtype=np.float32) * -(math.log(10000.0) / d))
    tab = np.zeros((n, d), dtype=np.float32)
    tab[:, 0::2] = np.sin(pos * div)
    tab[:, 1::2] = np.cos(pos * div)
    return jnp.asarray(tab)


def _w(key, fan_in, fan_out, scale=0.1):
    # MXU operands stored in bf16 (f32 accumulation in-kernel)
    return (scale * jax.random.normal(key, (fan_in, fan_out),
                                      jnp.float32)).astype(jnp.bfloat16)


def _b(key, fan_out, scale=0.1):
    return scale * jax.random.normal(key, (1, fan_out), jnp.float32)


def _attn_self_params(key, d_model):
    ks = jax.random.split(key, 4)
    return {'wqkv': _w(ks[0], d_model, 3 * d_model),   # fused Q|K|V
            'bqkv': _b(ks[1], 3 * d_model),
            'wo': _w(ks[2], d_model, d_model),
            'bo': _b(ks[3], d_model)}


def _attn_cross_params(key, d_model):
    ks = jax.random.split(key, 6)
    return {'wq': _w(ks[0], d_model, d_model),
            'bq': _b(ks[1], d_model),
            'wkv': _w(ks[2], d_model, 2 * d_model),    # fused K|V
            'bkv': _b(ks[3], 2 * d_model),
            'wo': _w(ks[4], d_model, d_model),
            'bo': _b(ks[5], d_model)}


def _embedding_params(key, c_in, d_model, max_len=128):
    return {
        'conv_w': _w(key, 3 * c_in, d_model),          # TokenEmbedding (bias=False)
        'pe': _sinusoid_table(max_len, d_model),       # PositionalEmbedding (fixed)
        'month': _sinusoid_table(13, d_model),         # FixedEmbedding tables
        'day': _sinusoid_table(32, d_model),
        'weekday': _sinusoid_table(7, d_model),
        'hour': _sinusoid_table(24, d_model),
    }


def _encoder_layer_params(key, d_model, d_ff):
    k1, k2, k3, k4, k5 = jax.random.split(key, 5)
    p = {'attn': _attn_self_params(k1, d_model)}
    p['w1'], p['b1'] = _w(k2, d_model, d_ff), _b(k3, d_ff)   # Conv1d k=1 == Linear
    p['w2'], p['b2'] = _w(k4, d_ff, d_model), _b(k5, d_model)
    for i in (1, 2):
        p[f'ln{i}_g'] = jnp.ones((1, d_model), jnp.float32)
        p[f'ln{i}_b'] = jnp.zeros((1, d_model), jnp.float32)
    return p


def _decoder_layer_params(key, d_model, d_ff):
    k1, k2, k3, k4, k5, k6 = jax.random.split(key, 6)
    p = {'self_attn': _attn_self_params(k1, d_model),
         'cross_attn': _attn_cross_params(k2, d_model)}
    p['w1'], p['b1'] = _w(k3, d_model, d_ff), _b(k4, d_ff)
    p['w2'], p['b2'] = _w(k5, d_ff, d_model), _b(k6, d_model)
    for i in (1, 2, 3):
        p[f'ln{i}_g'] = jnp.ones((1, d_model), jnp.float32)
        p[f'ln{i}_b'] = jnp.zeros((1, d_model), jnp.float32)
    return p


def init_params(key, enc_in, dec_in, c_out, d_model, d_ff, e_layers, d_layers):
    keys = jax.random.split(key, 4 + e_layers + d_layers)
    params = {
        'enc_emb': _embedding_params(keys[0], enc_in, d_model),
        'dec_emb': _embedding_params(keys[1], dec_in, d_model),
        'enc_layers': [_encoder_layer_params(keys[4 + i], d_model, d_ff)
                       for i in range(e_layers)],
        'dec_layers': [_decoder_layer_params(keys[4 + e_layers + i], d_model, d_ff)
                       for i in range(d_layers)],
        # NOTE: the PyTorch constructor passes the SAME LayerNorm instance to
        # both Encoder and Decoder as norm_layer -> shared parameters here.
        'final_ln_g': jnp.ones((1, d_model), jnp.float32),
        'final_ln_b': jnp.zeros((1, d_model), jnp.float32),
        # final projection kept in XLA (c_out=4 would be a 4/128-lane store)
        'proj_w': 0.1 * jax.random.normal(keys[2], (d_model, c_out), jnp.float32),
        'proj_b': 0.1 * jax.random.normal(keys[3], (1, c_out), jnp.float32),
    }
    return params


# ------------------------------------------------------------------
# Model forward (glue in plain JAX, hot paths in fused Pallas kernels)
# ------------------------------------------------------------------
def data_embedding(x, x_mark, p):
    B, L, cin = x.shape
    assert L <= p['pe'].shape[0], "sequence longer than positional table"
    # Conv1d(k=3, padding=1, padding_mode='circular', bias=False) via im2col.
    xp = jnp.concatenate([x[:, -1:, :], x, x[:, :1, :]], axis=1)          # (B, L+2, cin)
    patches = jnp.concatenate([xp[:, 0:L], xp[:, 1:L + 1], xp[:, 2:L + 2]],
                              axis=-1)                                    # (B, L, 3*cin)
    pos = p['pe'][:L][None, :, :]
    mk = x_mark.astype(jnp.int32)
    temporal = (jnp.take(p['month'], mk[:, :, 0], axis=0)
                + jnp.take(p['day'], mk[:, :, 1], axis=0)
                + jnp.take(p['weekday'], mk[:, :, 2], axis=0)
                + jnp.take(p['hour'], mk[:, :, 3], axis=0))
    extras = (pos + temporal)                                             # (B, L, D)
    D = extras.shape[-1]
    # fused: conv matmul + (positional + temporal) add;  dropout p=0.0 -> identity
    out = matmul_residual(patches.reshape(B * L, 3 * cin), p['conv_w'],
                          extras.reshape(B * L, D))
    return out.reshape(B, L, D)


def encoder_layer(x, p, n_heads):
    B, L, D = x.shape
    E = D // n_heads
    x2d = x.reshape(B * L, D)
    # fused QKV projection -> per-batch all-heads attention
    qkv = linear_bias(x2d, p['attn']['wqkv'], p['attn']['bqkv']).reshape(B, L, 3 * D)
    a = attention_self(qkv, n_heads=n_heads, causal=False, scale=1.0 / math.sqrt(E))
    # fused: out-proj + bias + residual + LayerNorm1
    x2d = proj_res_ln(a.reshape(B * L, D), p['attn']['wo'], p['attn']['bo'],
                      x2d, p['ln1_g'], p['ln1_b'])
    # fused: FFN (matmul+GELU+matmul) + residual + LayerNorm2
    x2d = ffn_ln(x2d, p['w1'], p['b1'], p['w2'], p['b2'], p['ln2_g'], p['ln2_b'])
    return x2d.reshape(B, L, D)


def decoder_layer(x, cross, p, n_heads):
    B, L, D = x.shape
    S = cross.shape[1]
    E = D // n_heads
    scale = 1.0 / math.sqrt(E)
    x2d = x.reshape(B * L, D)
    # masked self-attention
    qkv = linear_bias(x2d, p['self_attn']['wqkv'],
                      p['self_attn']['bqkv']).reshape(B, L, 3 * D)
    a = attention_self(qkv, n_heads=n_heads, causal=True, scale=scale)
    x2d = proj_res_ln(a.reshape(B * L, D), p['self_attn']['wo'],
                      p['self_attn']['bo'], x2d, p['ln1_g'], p['ln1_b'])
    # cross attention (fused K|V projection of encoder output)
    q = linear_bias(x2d, p['cross_attn']['wq'], p['cross_attn']['bq']).reshape(B, L, D)
    kv = linear_bias(cross.reshape(B * S, D), p['cross_attn']['wkv'],
                     p['cross_attn']['bkv']).reshape(B, S, 2 * D)
    a = attention_cross(q, kv, n_heads=n_heads, scale=scale)
    x2d = proj_res_ln(a.reshape(B * L, D), p['cross_attn']['wo'],
                      p['cross_attn']['bo'], x2d, p['ln2_g'], p['ln2_b'])
    # FFN block
    x2d = ffn_ln(x2d, p['w1'], p['b1'], p['w2'], p['b2'], p['ln3_g'], p['ln3_b'])
    return x2d.reshape(B, L, D)


def informer_forward(params, x_enc, x_mark_enc, x_dec, x_mark_dec,
                     *, n_heads, pred_len):
    enc = data_embedding(x_enc, x_mark_enc, params['enc_emb'])
    for lp in params['enc_layers']:
        enc = encoder_layer(enc, lp, n_heads)
    B, Le, D = enc.shape
    enc = layernorm2d(enc.reshape(B * Le, D),
                      params['final_ln_g'], params['final_ln_b']).reshape(B, Le, D)

    dec = data_embedding(x_dec, x_mark_dec, params['dec_emb'])
    for lp in params['dec_layers']:
        dec = decoder_layer(dec, enc, lp, n_heads)
    B, Ld, D = dec.shape
    dec = layernorm2d(dec.reshape(B * Ld, D),
                      params['final_ln_g'], params['final_ln_b']).reshape(B, Ld, D)

    # final projection (D -> c_out=4) kept in XLA: a Pallas store with 4/128 lanes
    # would be fully masked; the GEMM is tiny anyway.
    out = dec.reshape(B * Ld, D) @ params['proj_w'] + params['proj_b']
    out = out.reshape(B, Ld, -1)
    return out[:, -pred_len:, :]


# ------------------------------------------------------------------
if __name__ == "__main__":
    B = 2
    enc_in = dec_in = c_out = 4
    seq_len, label_len, pred_len = 16, 8, 8
    d_model, n_heads, d_ff = 32, 4, 32
    e_layers, d_layers = 2, 1
    dec_len = label_len + pred_len

    key = jax.random.PRNGKey(0)
    kp, kxe, kme, kxd, kmd = jax.random.split(key, 5)
    params = init_params(kp, enc_in, dec_in, c_out, d_model, d_ff,
                         e_layers, d_layers)

    x_enc = jax.random.normal(kxe, (B, seq_len, enc_in), jnp.float32)
    x_dec = jax.random.normal(kxd, (B, dec_len, dec_in), jnp.float32)
    # time-feature marks: columns = [month, day, weekday, hour]
    ranges = jnp.array([13, 32, 7, 24], dtype=jnp.int32)
    x_mark_enc = jax.random.randint(kme, (B, seq_len, 4), 0, 10_000) % ranges
    x_mark_dec = jax.random.randint(kmd, (B, dec_len, 4), 0, 10_000) % ranges

    fwd = jax.jit(functools.partial(informer_forward,
                                    n_heads=n_heads, pred_len=pred_len))
    out = fwd(params, x_enc, x_mark_enc, x_dec, x_mark_dec)
    out = jax.block_until_ready(out)

    assert out.shape == (B, pred_len, c_out), out.shape
    assert bool(jnp.all(jnp.isfinite(out)))
    print("KERNEL_OK")
</pallas_src>

<mosaic_0001>
module attributes {stable_mosaic.version = 11 : i64} {
  func.func @_matmul_res_kernel(%arg0: i32, %arg1: memref<32x12xf32, #tpu.memory_space<vmem>>, %arg2: memref<12x32xbf16, #tpu.memory_space<vmem>>, %arg3: memref<32x32xf32, #tpu.memory_space<vmem>>, %arg4: memref<32x32xf32, #tpu.memory_space<vmem>>) attributes {dimension_semantics = [#tpu.dimension_semantics<parallel>], iteration_bounds = array<i64: 1>, scalar_prefetch = 0 : i64, scratch_operands = 0 : i64, tpu.core_type = #tpu.core_type<tc>, window_params = [{transform_indices = @transform_0, window_bounds = array<i64: 32, 12>}, {pipeline_mode = #tpu.pipeline_mode<synchronous>, transform_indices = @transform_1, window_bounds = array<i64: 12, 32>}, {transform_indices = @transform_2, window_bounds = array<i64: 32, 32>}, {transform_indices = @transform_3, window_bounds = array<i64: 32, 32>}]} {
    %c0 = arith.constant 0 : index
    %c0_0 = arith.constant 0 : index
    %0 = vector.load %arg1[%c0, %c0_0] : memref<32x12xf32, #tpu.memory_space<vmem>>, vector<32x12xf32>
    %1 = arith.truncf %0 : vector<32x12xf32> to vector<32x12xbf16>
    %c0_1 = arith.constant 0 : index
    %c0_2 = arith.constant 0 : index
    %2 = vector.load %arg2[%c0_1, %c0_2] : memref<12x32xbf16, #tpu.memory_space<vmem>>, vector<12x32xbf16>
    %cst = arith.constant dense<0.000000e+00> : vector<32x32xf32>
    %3 = tpu.matmul %1, %2, %cst {dimension_numbers = #tpu.dot_dimension_numbers<[1], [0], [0], [1], [0, 0, 1, 1], [], []>} : vector<32x12xbf16>, vector<12x32xbf16>, vector<32x32xf32> -> vector<32x32xf32>
    %c0_3 = arith.constant 0 : index
    %c0_4 = arith.constant 0 : index
    %4 = vector.load %arg3[%c0_3, %c0_4] : memref<32x32xf32, #tpu.memory_space<vmem>>, vector<32x32xf32>
    %5 = arith.addf %3, %4 : vector<32x32xf32>
    %c0_5 = arith.constant 0 : index
    %c0_6 = arith.constant 0 : index
    %6 = vector.load %arg4[%c0_5, %c0_6] : memref<32x32xf32, #tpu.memory_space<vmem>>, vector<32x32xf32>
    tpu.vector_store %arg4[%c0_5, %c0_6], %5 {strides = array<i32>} : memref<32x32xf32, #tpu.memory_space<vmem>>, vector<32x32xf32>,
    return
  }
  func.func @transform_0(%arg0: i32) -> (i32, i32) {
    %c0_i32 = arith.constant 0 : i32
    %c0_i32_0 = arith.constant 0 : i32
    return %arg0, %c0_i32 : i32, i32
  }
  func.func @transform_1(%arg0: i32) -> (i32, i32) {
    %c0_i32 = arith.constant 0 : i32
    %c0_i32_0 = arith.constant 0 : i32
    %c0_i32_1 = arith.constant 0 : i32
    return %c0_i32, %c0_i32_0 : i32, i32
  }
  func.func @transform_2(%arg0: i32) -> (i32, i32) {
    %c0_i32 = arith.constant 0 : i32
    %c0_i32_0 = arith.constant 0 : i32
    return %arg0, %c0_i32 : i32, i32
  }
  func.func @transform_3(%arg0: i32) -> (i32, i32) {
    %c0_i32 = arith.constant 0 : i32
    %c0_i32_0 = arith.constant 0 : i32
    return %arg0, %c0_i32 : i32, i32
  }
}

module attributes {stable_mosaic.version = 11 : i64} {
  func.func @_attn_self_kernel(%arg0: i32, %arg1: memref<1x16x96xf32, #tpu.memory_space<vmem>>, %arg2: memref<1x16x32xf32, #tpu.memory_space<vmem>>) attributes {dimension_semantics = [#tpu.dimension_semantics<parallel>], iteration_bounds = array<i64: 2>, scalar_prefetch = 0 : i64, scratch_operands = 0 : i64, tpu.core_type = #tpu.core_type<tc>, window_params = [{transform_indices = @transform_0, window_bounds = array<i64: 1, 16, 96>}, {transform_indices = @transform_1, window_bounds = array<i64: 1, 16, 32>}]} {
    %c0 = arith.constant 0 : index
    %c0_0 = arith.constant 0 : index
    %c0_1 = arith.constant 0 : index
    %0 = vector.load %arg1[%c0, %c0_0, %c0_1] : memref<1x16x96xf32, #tpu.memory_space<vmem>>, vector<1x16x96xf32>
    %1 = vector.shape_cast %0 : vector<1x16x96xf32> to vector<16x96xf32>
    %2 = vector.extract_strided_slice %1 {offsets = [0, 0], sizes = [16, 32], strides = [1, 1]} : vector<16x96xf32> to vector<16x32xf32>
    %cst = arith.constant 0.353553385 : f32
    %3 = vector.broadcast %cst : f32 to vector<16x32xf32>
    %4 = arith.mulf %2, %3 : vector<16x32xf32>
    %5 = vector.extract_strided_slice %1 {offsets = [0, 32], sizes = [16, 32], strides = [1, 1]} : vector<16x96xf32> to vector<16x32xf32>
    %6 = vector.extract_strided_slice %1 {offsets = [0, 64], sizes = [16, 32], strides = [1, 1]} : vector<16x96xf32> to vector<16x32xf32>
    %7 = arith.truncf %4 : vector<16x32xf32> to vector<16x32xbf16>
    %8 = arith.truncf %5 : vector<16x32xf32> to vector<16x32xbf16>
    %9 = arith.truncf %6 : vector<16x32xf32> to vector<16x32xbf16>
    %10 = vector.extract_strided_slice %7 {offsets = [0, 0], sizes = [16, 8], strides = [1, 1]} : vector<16x32xbf16> to vector<16x8xbf16>
    %11 = vector.extract_strided_slice %8 {offsets = [0, 0], sizes = [16, 8], strides = [1, 1]} : vector<16x32xbf16> to vector<16x8xbf16>
    %cst_2 = arith.constant dense<0.000000e+00> : vector<16x16xf32>
    %12 = tpu.matmul %10, %11, %cst_2 {dimension_numbers = #tpu.dot_dimension_numbers<[1], [1], [0], [0], [0, 0, 1, 0], [], []>} : vector<16x8xbf16>, vector<16x8xbf16>, vector<16x16xf32> -> vector<16x16xf32>
    %cst_3 = arith.constant dense<0xFF800000> : vector<16xf32>
    %13 = vector.multi_reduction <maximumf>, %12, %cst_3 [1] : vector<16x16xf32> to vector<16xf32>
    %14 = vector.shape_cast %13 : vector<16xf32> to vector<16x1xf32>
    %15 = vector.broadcast %14 : vector<16x1xf32> to vector<16x16xf32>
    %16 = arith.subf %12, %15 : vector<16x16xf32>
    %17 = math.exp %16 : vector<16x16xf32>
    %cst_4 = arith.constant dense<0.000000e+00> : vector<16xf32>
    %18 = vector.multi_reduction <add>, %17, %cst_4 [1] : vector<16x16xf32> to vector<16xf32>
    %19 = vector.shape_cast %18 : vector<16xf32> to vector<16x1xf32>
    %20 = tpu.reciprocal %19 {approx = true} : vector<16x1xf32> -> vector<16x1xf32>
    %21 = vector.broadcast %20 : vector<16x1xf32> to vector<16x16xf32>
    %22 = arith.mulf %17, %21 : vector<16x16xf32>
    %23 = arith.truncf %22 : vector<16x16xf32> to vector<16x16xbf16>
    %24 = vector.extract_strided_slice %9 {offsets = [0, 0], sizes = [16, 8], strides = [1, 1]} : vector<16x32xbf16> to vector<16x8xbf16>
    %cst_5 = arith.constant dense<0.000000e+00> : vector<16x8xf32>
    %25 = tpu.matmul %23, %24, %cst_5 {dimension_numbers = #tpu.dot_dimension_numbers<[1], [0], [0], [1], [0, 0, 1, 1], [], []>} : vector<16x16xbf16>, vector<16x8xbf16>, vector<16x8xf32> -> vector<16x8xf32>
    %26 = vector.extract_strided_slice %7 {offsets = [0, 8], sizes = [16, 8], strides = [1, 1]} : vector<16x32xbf16> to vector<16x8xbf16>
    %27 = vector.extract_strided_slice %8 {offsets = [0, 8], sizes = [16, 8], strides = [1, 1]} : vector<16x32xbf16> to vector<16x8xbf16>
    %cst_6 = arith.constant dense<0.000000e+00> : vector<16x16xf32>
    %28 = tpu.matmul %26, %27, %cst_6 {dimension_numbers = #tpu.dot_dimension_numbers<[1], [1], [0], [0], [0, 0, 1, 0], [], []>} : vector<16x8xbf16>, vector<16x8xbf16>, vector<16x16xf32> -> vector<16x16xf32>
    %cst_7 = arith.constant dense<0xFF800000> : vector<16xf32>
    %29 = vector.multi_reduction <maximumf>, %28, %cst_7 [1] : vector<16x16xf32> to vector<16xf32>
    %30 = vector.shape_cast %29 : vector<16xf32> to vector<16x1xf32>
    %31 = vector.broadcast %30 : vector<16x1xf32> to vector<16x16xf32>
    %32 = arith.subf %28, %31 : vector<16x16xf32>
    %33 = math.exp %32 : vector<16x16xf32>
    %cst_8 = arith.constant dense<0.000000e+00> : vector<16xf32>
    %34 = vector.multi_reduction <add>, %33, %cst_8 [1] : vector<16x16xf32> to vector<16xf32>
    %35 = vector.shape_cast %34 : vector<16xf32> to vector<16x1xf32>
    %36 = tpu.reciprocal %35 {approx = true} : vector<16x1xf32> -> vector<16x1xf32>
    %37 = vector.broadcast %36 : vector<16x1xf32> to vector<16x16xf32>
    %38 = arith.mulf %33, %37 : vector<16x16xf32>
    %39 = arith.truncf %38 : vector<16x16xf32> to vector<16x16xbf16>
    %40 = vector.extract_strided_slice %9 {offsets = [0, 8], sizes = [16, 8], strides = [1, 1]} : vector<16x32xbf16> to vector<16x8xbf16>
    %cst_9 = arith.constant dense<0.000000e+00> : vector<16x8xf32>
    %41 = tpu.matmul %39, %40, %cst_9 {dimension_numbers = #tpu.dot_dimension_numbers<[1], [0], [0], [1], [0, 0, 1, 1], [], []>} : vector<16x16xbf16>, vector<16x8xbf16>, vector<16x8xf32> -> vector<16x8xf32>
    %42 = vector.extract_strided_slice %7 {offsets = [0, 16], sizes = [16, 8], strides = [1, 1]} : vector<16x32xbf16> to vector<16x8xbf16>
    %43 = vector.extract_strided_slice %8 {offsets = [0, 16], sizes = [16, 8], strides = [1, 1]} : vector<16x32xbf16> to vector<16x8xbf16>
    %cst_10 = arith.constant dense<0.000000e+00> : vector<16x16xf32>
    %44 = tpu.matmul %42, %43, %cst_10 {dimension_numbers = #tpu.dot_dimension_numbers<[1], [1], [0], [0], [0, 0, 1, 0], [], []>} : vector<16x8xbf16>, vector<16x8xbf16>, vector<16x16xf32> -> vector<16x16xf32>
    %cst_11 = arith.constant dense<0xFF800000> : vector<16xf32>
    %45 = vector.multi_reduction <maximumf>, %44, %cst_11 [1] : vector<16x16xf32> to vector<16xf32>
    %46 = vector.shape_cast %45 : vector<16xf32> to vector<16x1xf32>
    %47 = vector.broadcast %46 : vector<16x1xf32> to vector<16x16xf32>
    %48 = arith.subf %44, %47 : vector<16x16xf32>
    %49 = math.exp %48 : vector<16x16xf32>
    %cst_12 = arith.constant dense<0.000000e+00> : vector<16xf32>
    %50 = vector.multi_reduction <add>, %49, %cst_12 [1] : vector<16x16xf32> to vector<16xf32>
    %51 = vector.shape_cast %50 : vector<16xf32> to vector<16x1xf32>
    %52 = tpu.reciprocal %51 {approx = true} : vector<16x1xf32> -> vector<16x1xf32>
    %53 = vector.broadcast %52 : vector<16x1xf32> to vector<16x16xf32>
    %54 = arith.mulf %49, %53 : vector<16x16xf32>
    %55 = arith.truncf %54 : vector<16x16xf32> to vector<16x16xbf16>
    %56 = vector.extract_strided_slice %9 {offsets = [0, 16], sizes = [16, 8], strides = [1, 1]} : vector<16x32xbf16> to vector<16x8xbf16>
    %cst_13 = arith.constant dense<0.000000e+00> : vector<16x8xf32>
    %57 = tpu.matmul %55, %56, %cst_13 {dimension_numbers = #tpu.dot_dimension_numbers<[1], [0], [0], [1], [0, 0, 1, 1], [], []>} : vector<16x16xbf16>, vector<16x8xbf16>, vector<16x8xf32> -> vector<16x8xf32>
    %58 = vector.extract_strided_slice %7 {offsets = [0, 24], sizes = [16, 8], strides = [1, 1]} : vector<16x32xbf16> to vector<16x8xbf16>
    %59 = vector.extract_strided_slice %8 {offsets = [0, 24], sizes = [16, 8], strides = [1, 1]} : vector<16x32xbf16> to vector<16x8xbf16>
    %cst_14 = arith.constant dense<0.000000e+00> : vector<16x16xf32>
    %60 = tpu.matmul %58, %59, %cst_14 {dimension_numbers = #tpu.dot_dimension_numbers<[1], [1], [0], [0], [0, 0, 1, 0], [], []>} : vector<16x8xbf16>, vector<16x8xbf16>, vector<16x16xf32> -> vector<16x16xf32>
    %cst_15 = arith.constant dense<0xFF800000> : vector<16xf32>
    %61 = vector.multi_reduction <maximumf>, %60, %cst_15 [1] : vector<16x16xf32> to vector<16xf32>
    %62 = vector.shape_cast %61 : vector<16xf32> to vector<16x1xf32>
    %63 = vector.broadcast %62 : vector<16x1xf32> to vector<16x16xf32>
    %64 = arith.subf %60, %63 : vector<16x16xf32>
    %65 = math.exp %64 : vector<16x16xf32>
    %cst_16 = arith.constant dense<0.000000e+00> : vector<16xf32>
    %66 = vector.multi_reduction <add>, %65, %cst_16 [1] : vector<16x16xf32> to vector<16xf32>
    %67 = vector.shape_cast %66 : vector<16xf32> to vector<16x1xf32>
    %68 = tpu.reciprocal %67 {approx = true} : vector<16x1xf32> -> vector<16x1xf32>
    %69 = vector.broadcast %68 : vector<16x1xf32> to vector<16x16xf32>
    %70 = arith.mulf %65, %69 : vector<16x16xf32>
    %71 = arith.truncf %70 : vector<16x16xf32> to vector<16x16xbf16>
    %72 = vector.extract_strided_slice %9 {offsets = [0, 24], sizes = [16, 8], strides = [1, 1]} : vector<16x32xbf16> to vector<16x8xbf16>
    %cst_17 = arith.constant dense<0.000000e+00> : vector<16x8xf32>
    %73 = tpu.matmul %71, %72, %cst_17 {dimension_numbers = #tpu.dot_dimension_numbers<[1], [0], [0], [1], [0, 0, 1, 1], [], []>} : vector<16x16xbf16>, vector<16x8xbf16>, vector<16x8xf32> -> vector<16x8xf32>
    %74 = tpu.concatenate %25, %41, %57, %73 in 1 : vector<16x8xf32>, vector<16x8xf32>, vector<16x8xf32>, vector<16x8xf32> -> vector<16x32xf32>
    %c0_18 = arith.constant 0 : index
    %c0_19 = arith.constant 0 : index
    %c0_20 = arith.constant 0 : index
    %75 = vector.load %arg2[%c0_18, %c0_19, %c0_20] : memref<1x16x32xf32, #tpu.memory_space<vmem>>, vector<1x16x32xf32>
    %76 = vector.shape_cast %75 : vector<1x16x32xf32> to vector<16x32xf32>
    %77 = vector.shape_cast %74 : vector<16x32xf32> to vector<1x16x32xf32>
    tpu.vector_store %arg2[%c0_18, %c0_19, %c0_20], %77 {strides = array<i32>} : memref<1x16x32xf32, #tpu.memory_space<vmem>>, vector<1x16x32xf32>,
    return
  }
  func.func @transform_0(%arg0: i32) -> (i32, i32, i32) {
    %c0_i32 = arith.constant 0 : i32
    %c0_i32_0 = arith.constant 0 : i32
    %c0_i32_1 = arith.constant 0 : i32
    return %arg0, %c0_i32, %c0_i32_0 : i32, i32, i32
  }
  func.func @transform_1(%arg0: i32) -> (i32, i32, i32) {
    %c0_i32 = arith.constant 0 : i32
    %c0_i32_0 = arith.constant 0 : i32
    %c0_i32_1 = arith.constant 0 : i32
    return %arg0, %c0_i32, %c0_i32_0 : i32, i32, i32
  }
}

module attributes {stable_mosaic.version = 11 : i64} {
  func.func @_matmul_bias_kernel(%arg0: i32, %arg1: memref<32x32xf32, #tpu.memory_space<vmem>>, %arg2: memref<32x96xbf16, #tpu.memory_space<vmem>>, %arg3: memref<1x96xf32, #tpu.memory_space<vmem>>, %arg4: memref<32x96xf32, #tpu.memory_space<vmem>>) attributes {dimension_semantics = [#tpu.dimension_semantics<parallel>], iteration_bounds = array<i64: 1>, scalar_prefetch = 0 : i64, scratch_operands = 0 : i64, tpu.core_type = #tpu.core_type<tc>, window_params = [{transform_indices = @transform_0, window_bounds = array<i64: 32, 32>}, {pipeline_mode = #tpu.pipeline_mode<synchronous>, transform_indices = @transform_1, window_bounds = array<i64: 32, 96>}, {pipeline_mode = #tpu.pipeline_mode<synchronous>, transform_indices = @transform_2, window_bounds = array<i64: 1, 96>}, {transform_indices = @transform_3, window_bounds = array<i64: 32, 96>}]} {
    %c0 = arith.constant 0 : index
    %c0_0 = arith.constant 0 : index
    %0 = vector.load %arg1[%c0, %c0_0] : memref<32x32xf32, #tpu.memory_space<vmem>>, vector<32x32xf32>
    %1 = arith.truncf %0 : vector<32x32xf32> to vector<32x32xbf16>
    %c0_1 = arith.constant 0 : index
    %c0_2 = arith.constant 0 : index
    %2 = vector.load %arg2[%c0_1, %c0_2] : memref<32x96xbf16, #tpu.memory_space<vmem>>, vector<32x96xbf16>
    %cst = arith.constant dense<0.000000e+00> : vector<32x96xf32>
    %3 = tpu.matmul %1, %2, %cst {dimension_numbers = #tpu.dot_dimension_numbers<[1], [0], [0], [1], [0, 0, 1, 1], [], []>} : vector<32x32xbf16>, vector<32x96xbf16>, vector<32x96xf32> -> vector<32x96xf32>
    %c0_3 = arith.constant 0 : index
    %c0_4 = arith.constant 0 : index
    %4 = vector.load %arg3[%c0_3, %c0_4] : memref<1x96xf32, #tpu.memory_space<vmem>>, vector<1x96xf32>
    %5 = vector.broadcast %4 : vector<1x96xf32> to vector<32x96xf32>
    %6 = arith.addf %3, %5 : vector<32x96xf32>
    %c0_5 = arith.constant 0 : index
    %c0_6 = arith.constant 0 : index
    %7 = vector.load %arg4[%c0_5, %c0_6] : memref<32x96xf32, #tpu.memory_space<vmem>>, vector<32x96xf32>
    tpu.vector_store %arg4[%c0_5, %c0_6], %6 {strides = array<i32>} : memref<32x96xf32, #tpu.memory_space<vmem>>, vector<32x96xf32>,
    return
  }
  func.func @transform_0(%arg0: i32) -> (i32, i32) {
    %c0_i32 = arith.constant 0 : i32
    %c0_i32_0 = arith.constant 0 : i32
    return %arg0, %c0_i32 : i32, i32
  }
  func.func @transform_1(%arg0: i32) -> (i32, i32) {
    %c0_i32 = arith.constant 0 : i32
    %c0_i32_0 = arith.constant 0 : i32
    %c0_i32_1 = arith.constant 0 : i32
    return %c0_i32, %c0_i32_0 : i32, i32
  }
  func.func @transform_2(%arg0: i32) -> (i32, i32) {
    %c0_i32 = arith.constant 0 : i32
    %c0_i32_0 = arith.constant 0 : i32
    %c0_i32_1 = arith.constant 0 : i32
    return %c0_i32, %c0_i32_0 : i32, i32
  }
  func.func @transform_3(%arg0: i32) -> (i32, i32) {
    %c0_i32 = arith.constant 0 : i32
    %c0_i32_0 = arith.constant 0 : i32
    return %arg0, %c0_i32 : i32, i32
  }
}

module attributes {stable_mosaic.version = 11 : i64} {
  func.func @_proj_res_ln_kernel(%arg0: i32, %arg1: memref<32x32xf32, #tpu.memory_space<vmem>>, %arg2: memref<32x32xbf16, #tpu.memory_space<vmem>>, %arg3: memref<1x32xf32, #tpu.memory_space<vmem>>, %arg4: memref<32x32xf32, #tpu.memory_space<vmem>>, %arg5: memref<1x32xf32, #tpu.memory_space<vmem>>, %arg6: memref<1x32xf32, #tpu.memory_space<vmem>>, %arg7: memref<32x32xf32, #tpu.memory_space<vmem>>) attributes {dimension_semantics = [#tpu.dimension_semantics<parallel>], iteration_bounds = array<i64: 1>, scalar_prefetch = 0 : i64, scratch_operands = 0 : i64, tpu.core_type = #tpu.core_type<tc>, window_params = [{transform_indices = @transform_0, window_bounds = array<i64: 32, 32>}, {pipeline_mode = #tpu.pipeline_mode<synchronous>, transform_indices = @transform_1, window_bounds = array<i64: 32, 32>}, {pipeline_mode = #tpu.pipeline_mode<synchronous>, transform_indices = @transform_2, window_bounds = array<i64: 1, 32>}, {transform_indices = @transform_3, window_bounds = array<i64: 32, 32>}, {pipeline_mode = #tpu.pipeline_mode<synchronous>, transform_indices = @transform_4, window_bounds = array<i64: 1, 32>}, {pipeline_mode = #tpu.pipeline_mode<synchronous>, transform_indices = @transform_5, window_bounds = array<i64: 1, 32>}, {transform_indices = @transform_6, window_bounds = array<i64: 32, 32>}]} {
    %c0 = arith.constant 0 : index
    %c0_0 = arith.constant 0 : index
    %0 = vector.load %arg1[%c0, %c0_0] : memref<32x32xf32, #tpu.memory_space<vmem>>, vector<32x32xf32>
    %1 = arith.truncf %0 : vector<32x32xf32> to vector<32x32xbf16>
    %c0_1 = arith.constant 0 : index
    %c0_2 = arith.constant 0 : index
    %2 = vector.load %arg2[%c0_1, %c0_2] : memref<32x32xbf16, #tpu.memory_space<vmem>>, vector<32x32xbf16>
    %cst = arith.constant dense<0.000000e+00> : vector<32x32xf32>
    %3 = tpu.matmul %1, %2, %cst {dimension_numbers = #tpu.dot_dimension_numbers<[1], [0], [0], [1], [0, 0, 1, 1], [], []>} : vector<32x32xbf16>, vector<32x32xbf16>, vector<32x32xf32> -> vector<32x32xf32>
    %c0_3 = arith.constant 0 : index
    %c0_4 = arith.constant 0 : index
    %4 = vector.load %arg3[%c0_3, %c0_4] : memref<1x32xf32, #tpu.memory_space<vmem>>, vector<1x32xf32>
    %5 = vector.broadcast %4 : vector<1x32xf32> to vector<32x32xf32>
    %6 = arith.addf %3, %5 : vector<32x32xf32>
    %c0_5 = arith.constant 0 : index
    %c0_6 = arith.constant 0 : index
    %7 = vector.load %arg4[%c0_5, %c0_6] : memref<32x32xf32, #tpu.memory_space<vmem>>, vector<32x32xf32>
    %8 = arith.addf %7, %6 : vector<32x32xf32>
    %c0_7 = arith.constant 0 : index
    %c0_8 = arith.constant 0 : index
    %9 = vector.load %arg5[%c0_7, %c0_8] : memref<1x32xf32, #tpu.memory_space<vmem>>, vector<1x32xf32>
    %c0_9 = arith.constant 0 : index
    %c0_10 = arith.constant 0 : index
    %10 = vector.load %arg6[%c0_9, %c0_10] : memref<1x32xf32, #tpu.memory_space<vmem>>, vector<1x32xf32>
    %cst_11 = arith.constant dense<0.000000e+00> : vector<32xf32>
    %11 = vector.multi_reduction <add>, %8, %cst_11 [1] : vector<32x32xf32> to vector<32xf32>
    %12 = vector.shape_cast %11 : vector<32xf32> to vector<32x1xf32>
    %cst_12 = arith.constant 3.200000e+01 : f32
    %13 = vector.broadcast %cst_12 : f32 to vector<32x1xf32>
    %14 = arith.divf %12, %13 : vector<32x1xf32>
    %15 = vector.broadcast %14 : vector<32x1xf32> to vector<32x32xf32>
    %16 = arith.subf %8, %15 : vector<32x32xf32>
    %17 = arith.mulf %16, %16 : vector<32x32xf32>
    %cst_13 = arith.constant dense<0.000000e+00> : vector<32xf32>
    %18 = vector.multi_reduction <add>, %17, %cst_13 [1] : vector<32x32xf32> to vector<32xf32>
    %19 = vector.shape_cast %18 : vector<32xf32> to vector<32x1xf32>
    %cst_14 = arith.constant 3.200000e+01 : f32
    %20 = vector.broadcast %cst_14 : f32 to vector<32x1xf32>
    %21 = arith.divf %19, %20 : vector<32x1xf32>
    %cst_15 = arith.constant 9.99999974E-6 : f32
    %22 = vector.broadcast %cst_15 : f32 to vector<32x1xf32>
    %23 = arith.addf %21, %22 : vector<32x1xf32>
    %24 = math.rsqrt %23 : vector<32x1xf32>
    %25 = vector.broadcast %24 : vector<32x1xf32> to vector<32x32xf32>
    %26 = arith.mulf %16, %25 : vector<32x32xf32>
    %27 = vector.broadcast %9 : vector<1x32xf32> to vector<32x32xf32>
    %28 = arith.mulf %26, %27 : vector<32x32xf32>
    %29 = vector.broadcast %10 : vector<1x32xf32> to vector<32x32xf32>
    %30 = arith.addf %28, %29 : vector<32x32xf32>
    %c0_16 = arith.constant 0 : index
    %c0_17 = arith.constant 0 : index
    %31 = vector.load %arg7[%c0_16, %c0_17] : memref<32x32xf32, #tpu.memory_space<vmem>>, vector<32x32xf32>
    tpu.vector_store %arg7[%c0_16, %c0_17], %30 {strides = array<i32>} : memref<32x32xf32, #tpu.memory_space<vmem>>, vector<32x32xf32>,
    return
  }
  func.func @transform_0(%arg0: i32) -> (i32, i32) {
    %c0_i32 = arith.constant 0 : i32
    %c0_i32_0 = arith.constant 0 : i32
    return %arg0, %c0_i32 : i32, i32
  }
  func.func @transform_1(%arg0: i32) -> (i32, i32) {
    %c0_i32 = arith.constant 0 : i32
    %c0_i32_0 = arith.constant 0 : i32
    %c0_i32_1 = arith.constant 0 : i32
    return %c0_i32, %c0_i32_0 : i32, i32
  }
  func.func @transform_2(%arg0: i32) -> (i32, i32) {
    %c0_i32 = arith.constant 0 : i32
    %c0_i32_0 = arith.constant 0 : i32
    %c0_i32_1 = arith.constant 0 : i32
    return %c0_i32, %c0_i32_0 : i32, i32
  }
  func.func @transform_3(%arg0: i32) -> (i32, i32) {
    %c0_i32 = arith.constant 0 : i32
    %c0_i32_0 = arith.constant 0 : i32
    return %arg0, %c0_i32 : i32, i32
  }
  func.func @transform_4(%arg0: i32) -> (i32, i32) {
    %c0_i32 = arith.constant 0 : i32
    %c0_i32_0 = arith.constant 0 : i32
    %c0_i32_1 = arith.constant 0 : i32
    return %c0_i32, %c0_i32_0 : i32, i32
  }
  func.func @transform_5(%arg0: i32) -> (i32, i32) {
    %c0_i32 = arith.constant 0 : i32
    %c0_i32_0 = arith.constant 0 : i32
    %c0_i32_1 = arith.constant 0 : i32
    return %c0_i32, %c0_i32_0 : i32, i32
  }
  func.func @transform_6(%arg0: i32) -> (i32, i32) {
    %c0_i32 = arith.constant 0 : i32
    %c0_i32_0 = arith.constant 0 : i32
    return %arg0, %c0_i32 : i32, i32
  }
}

module attributes {stable_mosaic.version = 11 : i64} {
  func.func @_matmul_bias_kernel(%arg0: i32, %arg1: memref<32x32xf32, #tpu.memory_space<vmem>>, %arg2: memref<32x64xbf16, #tpu.memory_space<vmem>>, %arg3: memref<1x64xf32, #tpu.memory_space<vmem>>, %arg4: memref<32x64xf32, #tpu.memory_space<vmem>>) attributes {dimension_semantics = [#tpu.dimension_semantics<parallel>], iteration_bounds = array<i64: 1>, scalar_prefetch = 0 : i64, scratch_operands = 0 : i64, tpu.core_type = #tpu.core_type<tc>, window_params = [{transform_indices = @transform_0, window_bounds = array<i64: 32, 32>}, {pipeline_mode = #tpu.pipeline_mode<synchronous>, transform_indices = @transform_1, window_bounds = array<i64: 32, 64>}, {pipeline_mode = #tpu.pipeline_mode<synchronous>, transform_indices = @transform_2, window_bounds = array<i64: 1, 64>}, {transform_indices = @transform_3, window_bounds = array<i64: 32, 64>}]} {
    %c0 = arith.constant 0 : index
    %c0_0 = arith.constant 0 : index
    %0 = vector.load %arg1[%c0, %c0_0] : memref<32x32xf32, #tpu.memory_space<vmem>>, vector<32x32xf32>
    %1 = arith.truncf %0 : vector<32x32xf32> to vector<32x32xbf16>
    %c0_1 = arith.constant 0 : index
    %c0_2 = arith.constant 0 : index
    %2 = vector.load %arg2[%c0_1, %c0_2] : memref<32x64xbf16, #tpu.memory_space<vmem>>, vector<32x64xbf16>
    %cst = arith.constant dense<0.000000e+00> : vector<32x64xf32>
    %3 = tpu.matmul %1, %2, %cst {dimension_numbers = #tpu.dot_dimension_numbers<[1], [0], [0], [1], [0, 0, 1, 1], [], []>} : vector<32x32xbf16>, vector<32x64xbf16>, vector<32x64xf32> -> vector<32x64xf32>
    %c0_3 = arith.constant 0 : index
    %c0_4 = arith.constant 0 : index
    %4 = vector.load %arg3[%c0_3, %c0_4] : memref<1x64xf32, #tpu.memory_space<vmem>>, vector<1x64xf32>
    %5 = vector.broadcast %4 : vector<1x64xf32> to vector<32x64xf32>
    %6 = arith.addf %3, %5 : vector<32x64xf32>
    %c0_5 = arith.constant 0 : index
    %c0_6 = arith.constant 0 : index
    %7 = vector.load %arg4[%c0_5, %c0_6] : memref<32x64xf32, #tpu.memory_space<vmem>>, vector<32x64xf32>
    tpu.vector_store %arg4[%c0_5, %c0_6], %6 {strides = array<i32>} : memref<32x64xf32, #tpu.memory_space<vmem>>, vector<32x64xf32>,
    return
  }
  func.func @transform_0(%arg0: i32) -> (i32, i32) {
    %c0_i32 = arith.constant 0 : i32
    %c0_i32_0 = arith.constant 0 : i32
    return %arg0, %c0_i32 : i32, i32
  }
  func.func @transform_1(%arg0: i32) -> (i32, i32) {
    %c0_i32 = arith.constant 0 : i32
    %c0_i32_0 = arith.constant 0 : i32
    %c0_i32_1 = arith.constant 0 : i32
    return %c0_i32, %c0_i32_0 : i32, i32
  }
  func.func @transform_2(%arg0: i32) -> (i32, i32) {
    %c0_i32 = arith.constant 0 : i32
    %c0_i32_0 = arith.constant 0 : i32
    %c0_i32_1 = arith.constant 0 : i32
    return %c0_i32, %c0_i32_0 : i32, i32
  }
  func.func @transform_3(%arg0: i32) -> (i32, i32) {
    %c0_i32 = arith.constant 0 : i32
    %c0_i32_0 = arith.constant 0 : i32
    return %arg0, %c0_i32 : i32, i32
  }
}

module attributes {stable_mosaic.version = 11 : i64} {
  func.func @_ffn_ln_kernel(%arg0: i32, %arg1: memref<32x32xf32, #tpu.memory_space<vmem>>, %arg2: memref<32x32xbf16, #tpu.memory_space<vmem>>, %arg3: memref<1x32xf32, #tpu.memory_space<vmem>>, %arg4: memref<32x32xbf16, #tpu.memory_space<vmem>>, %arg5: memref<1x32xf32, #tpu.memory_space<vmem>>, %arg6: memref<1x32xf32, #tpu.memory_space<vmem>>, %arg7: memref<1x32xf32, #tpu.memory_space<vmem>>, %arg8: memref<32x32xf32, #tpu.memory_space<vmem>>) attributes {dimension_semantics = [#tpu.dimension_semantics<parallel>], iteration_bounds = array<i64: 1>, scalar_prefetch = 0 : i64, scratch_operands = 0 : i64, tpu.core_type = #tpu.core_type<tc>, window_params = [{transform_indices = @transform_0, window_bounds = array<i64: 32, 32>}, {pipeline_mode = #tpu.pipeline_mode<synchronous>, transform_indices = @transform_1, window_bounds = array<i64: 32, 32>}, {pipeline_mode = #tpu.pipeline_mode<synchronous>, transform_indices = @transform_2, window_bounds = array<i64: 1, 32>}, {pipeline_mode = #tpu.pipeline_mode<synchronous>, transform_indices = @transform_3, window_bounds = array<i64: 32, 32>}, {pipeline_mode = #tpu.pipeline_mode<synchronous>, transform_indices = @transform_4, window_bounds = array<i64: 1, 32>}, {pipeline_mode = #tpu.pipeline_mode<synchronous>, transform_indices = @transform_5, window_bounds = array<i64: 1, 32>}, {pipeline_mode = #tpu.pipeline_mode<synchronous>, transform_indices = @transform_6, window_bounds = array<i64: 1, 32>}, {transform_indices = @transform_7, window_bounds = array<i64: 32, 32>}]} {
    %c0 = arith.constant 0 : index
    %c0_0 = arith.constant 0 : index
    %0 = vector.load %arg1[%c0, %c0_0] : memref<32x32xf32, #tpu.memory_space<vmem>>, vector<32x32xf32>
    %1 = arith.truncf %0 : vector<32x32xf32> to vector<32x32xbf16>
    %c0_1 = arith.constant 0 : index
    %c0_2 = arith.constant 0 : index
    %2 = vector.load %arg2[%c0_1, %c0_2] : memref<32x32xbf16, #tpu.memory_space<vmem>>, vector<32x32xbf16>
    %cst = arith.constant dense<0.000000e+00> : vector<32x32xf32>
    %3 = tpu.matmul %1, %2, %cst {dimension_numbers = #tpu.dot_dimension_numbers<[1], [0], [0], [1], [0, 0, 1, 1], [], []>} : vector<32x32xbf16>, vector<32x32xbf16>, vector<32x32xf32> -> vector<32x32xf32>
    %c0_3 = arith.constant 0 : index
    %c0_4 = arith.constant 0 : index
    %4 = vector.load %arg3[%c0_3, %c0_4] : memref<1x32xf32, #tpu.memory_space<vmem>>, vector<1x32xf32>
    %5 = vector.broadcast %4 : vector<1x32xf32> to vector<32x32xf32>
    %6 = arith.addf %3, %5 : vector<32x32xf32>
    %cst_5 = arith.constant 5.000000e-01 : f32
    %7 = vector.broadcast %cst_5 : f32 to vector<32x32xf32>
    %8 = arith.mulf %7, %6 : vector<32x32xf32>
    %cst_6 = arith.constant 0.707106769 : f32
    %9 = vector.broadcast %cst_6 : f32 to vector<32x32xf32>
    %10 = arith.mulf %6, %9 : vector<32x32xf32>
    %11 = math.absf %10 : vector<32x32xf32>
    %cst_7 = arith.constant 0.327591091 : f32
    %12 = vector.broadcast %cst_7 : f32 to vector<32x32xf32>
    %13 = arith.mulf %12, %11 : vector<32x32xf32>
    %cst_8 = arith.constant 1.000000e+00 : f32
    %14 = vector.broadcast %cst_8 : f32 to vector<32x32xf32>
    %15 = arith.addf %14, %13 : vector<32x32xf32>
    %cst_9 = arith.constant 1.000000e+00 : f32
    %16 = vector.broadcast %cst_9 : f32 to vector<32x32xf32>
    %17 = arith.divf %16, %15 : vector<32x32xf32>
    %cst_10 = arith.constant 1.06140542 : f32
    %18 = vector.broadcast %cst_10 : f32 to vector<32x32xf32>
    %19 = arith.mulf %17, %18 : vector<32x32xf32>
    %cst_11 = arith.constant -1.45315206 : f32
    %20 = vector.broadcast %cst_11 : f32 to vector<32x32xf32>
    %21 = arith.addf %20, %19 : vector<32x32xf32>
    %22 = arith.mulf %17, %21 : vector<32x32xf32>
    %cst_12 = arith.constant 1.42141378 : f32
    %23 = vector.broadcast %cst_12 : f32 to vector<32x32xf32>
    %24 = arith.addf %23, %22 : vector<32x32xf32>
    %25 = arith.mulf %17, %24 : vector<32x32xf32>
    %cst_13 = arith.constant -0.284496725 : f32
    %26 = vector.broadcast %cst_13 : f32 to vector<32x32xf32>
    %27 = arith.addf %26, %25 : vector<32x32xf32>
    %28 = arith.mulf %17, %27 : vector<32x32xf32>
    %cst_14 = arith.constant 0.254829586 : f32
    %29 = vector.broadcast %cst_14 : f32 to vector<32x32xf32>
    %30 = arith.addf %29, %28 : vector<32x32xf32>
    %31 = arith.mulf %17, %30 : vector<32x32xf32>
    %cst_15 = arith.constant 0.000000e+00 : f32
    %32 = vector.broadcast %cst_15 : f32 to vector<32x32xf32>
    %33 = arith.subf %32, %11 : vector<32x32xf32>
    %34 = arith.mulf %33, %11 : vector<32x32xf32>
    %35 = math.exp %34 : vector<32x32xf32>
    %36 = arith.mulf %31, %35 : vector<32x32xf32>
    %cst_16 = arith.constant 1.000000e+00 : f32
    %37 = vector.broadcast %cst_16 : f32 to vector<32x32xf32>
    %38 = arith.subf %37, %36 : vector<32x32xf32>
    %cst_17 = arith.constant 0.000000e+00 : f32
    %39 = vector.broadcast %cst_17 : f32 to vector<32x32xf32>
    %40 = arith.cmpf olt, %10, %39 : vector<32x32xf32>
    %cst_18 = arith.constant 0.000000e+00 : f32
    %41 = vector.broadcast %cst_18 : f32 to vector<32x32xf32>
    %42 = arith.subf %41, %38 : vector<32x32xf32>
    %43 = arith.select %40, %42, %38 : vector<32x32xi1>, vector<32x32xf32>
    %cst_19 = arith.constant 1.000000e+00 : f32
    %44 = vector.broadcast %cst_19 : f32 to vector<32x32xf32>
    %45 = arith.addf %44, %43 : vector<32x32xf32>
    %46 = arith.mulf %8, %45 : vector<32x32xf32>
    %47 = arith.truncf %46 : vector<32x32xf32> to vector<32x32xbf16>
    %c0_20 = arith.constant 0 : index
    %c0_21 = arith.constant 0 : index
    %48 = vector.load %arg4[%c0_20, %c0_21] : memref<32x32xbf16, #tpu.memory_space<vmem>>, vector<32x32xbf16>
    %cst_22 = arith.constant dense<0.000000e+00> : vector<32x32xf32>
    %49 = tpu.matmul %47, %48, %cst_22 {dimension_numbers = #tpu.dot_dimension_numbers<[1], [0], [0], [1], [0, 0, 1, 1], [], []>} : vector<32x32xbf16>, vector<32x32xbf16>, vector<32x32xf32> -> vector<32x32xf32>
    %c0_23 = arith.constant 0 : index
    %c0_24 = arith.constant 0 : index
    %50 = vector.load %arg5[%c0_23, %c0_24] : memref<1x32xf32, #tpu.memory_space<vmem>>, vector<1x32xf32>
    %51 = vector.broadcast %50 : vector<1x32xf32> to vector<32x32xf32>
    %52 = arith.addf %49, %51 : vector<32x32xf32>
    %53 = arith.addf %0, %52 : vector<32x32xf32>
    %c0_25 = arith.constant 0 : index
    %c0_26 = arith.constant 0 : index
    %54 = vector.load %arg6[%c0_25, %c0_26] : memref<1x32xf32, #tpu.memory_space<vmem>>, vector<1x32xf32>
    %c0_27 = arith.constant 0 : index
    %c0_28 = arith.constant 0 : index
    %55 = vector.load %arg7[%c0_27, %c0_28] : memref<1x32xf32, #tpu.memory_space<vmem>>, vector<1x32xf32>
    %cst_29 = arith.constant dense<0.000000e+00> : vector<32xf32>
    %56 = vector.multi_reduction <add>, %53, %cst_29 [1] : vector<32x32xf32> to vector<32xf32>
    %57 = vector.shape_cast %56 : vector<32xf32> to vector<32x1xf32>
    %cst_30 = arith.constant 3.200000e+01 : f32
    %58 = vector.broadcast %cst_30 : f32 to vector<32x1xf32>
    %59 = arith.divf %57, %58 : vector<32x1xf32>
    %60 = vector.broadcast %59 : vector<32x1xf32> to vector<32x32xf32>
    %61 = arith.subf %53, %60 : vector<32x32xf32>
    %62 = arith.mulf %61, %61 : vector<32x32xf32>
    %cst_31 = arith.constant dense<0.000000e+00> : vector<32xf32>
    %63 = vector.multi_reduction <add>, %62, %cst_31 [1] : vector<32x32xf32> to vector<32xf32>
    %64 = vector.shape_cast %63 : vector<32xf32> to vector<32x1xf32>
    %cst_32 = arith.constant 3.200000e+01 : f32
    %65 = vector.broadcast %cst_32 : f32 to vector<32x1xf32>
    %66 = arith.divf %64, %65 : vector<32x1xf32>
    %cst_33 = arith.constant 9.99999974E-6 : f32
    %67 = vector.broadcast %cst_33 : f32 to vector<32x1xf32>
    %68 = arith.addf %66, %67 : vector<32x1xf32>
    %69 = math.rsqrt %68 : vector<32x1xf32>
    %70 = vector.broadcast %69 : vector<32x1xf32> to vector<32x32xf32>
    %71 = arith.mulf %61, %70 : vector<32x32xf32>
    %72 = vector.broadcast %54 : vector<1x32xf32> to vector<32x32xf32>
    %73 = arith.mulf %71, %72 : vector<32x32xf32>
    %74 = vector.broadcast %55 : vector<1x32xf32> to vector<32x32xf32>
    %75 = arith.addf %73, %74 : vector<32x32xf32>
    %c0_34 = arith.constant 0 : index
    %c0_35 = arith.constant 0 : index
    %76 = vector.load %arg8[%c0_34, %c0_35] : memref<32x32xf32, #tpu.memory_space<vmem>>, vector<32x32xf32>
    tpu.vector_store %arg8[%c0_34, %c0_35], %75 {strides = array<i32>} : memref<32x32xf32, #tpu.memory_space<vmem>>, vector<32x32xf32>,
    return
  }
  func.func @transform_0(%arg0: i32) -> (i32, i32) {
    %c0_i32 = arith.constant 0 : i32
    %c0_i32_0 = arith.constant 0 : i32
    return %arg0, %c0_i32 : i32, i32
  }
  func.func @transform_1(%arg0: i32) -> (i32, i32) {
    %c0_i32 = arith.constant 0 : i32
    %c0_i32_0 = arith.constant 0 : i32
    %c0_i32_1 = arith.constant 0 : i32
    return %c0_i32, %c0_i32_0 : i32, i32
  }
  func.func @transform_2(%arg0: i32) -> (i32, i32) {
    %c0_i32 = arith.constant 0 : i32
    %c0_i32_0 = arith.constant 0 : i32
    %c0_i32_1 = arith.constant 0 : i32
    return %c0_i32, %c0_i32_0 : i32, i32
  }
  func.func @transform_3(%arg0: i32) -> (i32, i32) {
    %c0_i32 = arith.constant 0 : i32
    %c0_i32_0 = arith.constant 0 : i32
    %c0_i32_1 = arith.constant 0 : i32
    return %c0_i32, %c0_i32_0 : i32, i32
  }
  func.func @transform_4(%arg0: i32) -> (i32, i32) {
    %c0_i32 = arith.constant 0 : i32
    %c0_i32_0 = arith.constant 0 : i32
    %c0_i32_1 = arith.constant 0 : i32
    return %c0_i32, %c0_i32_0 : i32, i32
  }
  func.func @transform_5(%arg0: i32) -> (i32, i32) {
    %c0_i32 = arith.constant 0 : i32
    %c0_i32_0 = arith.constant 0 : i32
    %c0_i32_1 = arith.constant 0 : i32
    return %c0_i32, %c0_i32_0 : i32, i32
  }
  func.func @transform_6(%arg0: i32) -> (i32, i32) {
    %c0_i32 = arith.constant 0 : i32
    %c0_i32_0 = arith.constant 0 : i32
    %c0_i32_1 = arith.constant 0 : i32
    return %c0_i32, %c0_i32_0 : i32, i32
  }
  func.func @transform_7(%arg0: i32) -> (i32, i32) {
    %c0_i32 = arith.constant 0 : i32
    %c0_i32_0 = arith.constant 0 : i32
    return %arg0, %c0_i32 : i32, i32
  }
}

module attributes {stable_mosaic.version = 11 : i64} {
  func.func @_layernorm_kernel(%arg0: i32, %arg1: memref<32x32xf32, #tpu.memory_space<vmem>>, %arg2: memref<1x32xf32, #tpu.memory_space<vmem>>, %arg3: memref<1x32xf32, #tpu.memory_space<vmem>>, %arg4: memref<32x32xf32, #tpu.memory_space<vmem>>) attributes {dimension_semantics = [#tpu.dimension_semantics<parallel>], iteration_bounds = array<i64: 1>, scalar_prefetch = 0 : i64, scratch_operands = 0 : i64, tpu.core_type = #tpu.core_type<tc>, window_params = [{transform_indices = @transform_0, window_bounds = array<i64: 32, 32>}, {pipeline_mode = #tpu.pipeline_mode<synchronous>, transform_indices = @transform_1, window_bounds = array<i64: 1, 32>}, {pipeline_mode = #tpu.pipeline_mode<synchronous>, transform_indices = @transform_2, window_bounds = array<i64: 1, 32>}, {transform_indices = @transform_3, window_bounds = array<i64: 32, 32>}]} {
    %c0 = arith.constant 0 : index
    %c0_0 = arith.constant 0 : index
    %0 = vector.load %arg1[%c0, %c0_0] : memref<32x32xf32, #tpu.memory_space<vmem>>, vector<32x32xf32>
    %c0_1 = arith.constant 0 : index
    %c0_2 = arith.constant 0 : index
    %1 = vector.load %arg2[%c0_1, %c0_2] : memref<1x32xf32, #tpu.memory_space<vmem>>, vector<1x32xf32>
    %c0_3 = arith.constant 0 : index
    %c0_4 = arith.constant 0 : index
    %2 = vector.load %arg3[%c0_3, %c0_4] : memref<1x32xf32, #tpu.memory_space<vmem>>, vector<1x32xf32>
    %cst = arith.constant dense<0.000000e+00> : vector<32xf32>
    %3 = vector.multi_reduction <add>, %0, %cst [1] : vector<32x32xf32> to vector<32xf32>
    %4 = vector.shape_cast %3 : vector<32xf32> to vector<32x1xf32>
    %cst_5 = arith.constant 3.200000e+01 : f32
    %5 = vector.broadcast %cst_5 : f32 to vector<32x1xf32>
    %6 = arith.divf %4, %5 : vector<32x1xf32>
    %7 = vector.broadcast %6 : vector<32x1xf32> to vector<32x32xf32>
    %8 = arith.subf %0, %7 : vector<32x32xf32>
    %9 = arith.mulf %8, %8 : vector<32x32xf32>
    %cst_6 = arith.constant dense<0.000000e+00> : vector<32xf32>
    %10 = vector.multi_reduction <add>, %9, %cst_6 [1] : vector<32x32xf32> to vector<32xf32>
    %11 = vector.shape_cast %10 : vector<32xf32> to vector<32x1xf32>
    %cst_7 = arith.constant 3.200000e+01 : f32
    %12 = vector.broadcast %cst_7 : f32 to vector<32x1xf32>
    %13 = arith.divf %11, %12 : vector<32x1xf32>
    %cst_8 = arith.constant 9.99999974E-6 : f32
    %14 = vector.broadcast %cst_8 : f32 to vector<32x1xf32>
    %15 = arith.addf %13, %14 : vector<32x1xf32>
    %16 = math.rsqrt %15 : vector<32x1xf32>
    %17 = vector.broadcast %16 : vector<32x1xf32> to vector<32x32xf32>
    %18 = arith.mulf %8, %17 : vector<32x32xf32>
    %19 = vector.broadcast %1 : vector<1x32xf32> to vector<32x32xf32>
    %20 = arith.mulf %18, %19 : vector<32x32xf32>
    %21 = vector.broadcast %2 : vector<1x32xf32> to vector<32x32xf32>
    %22 = arith.addf %20, %21 : vector<32x32xf32>
    %c0_9 = arith.constant 0 : index
    %c0_10 = arith.constant 0 : index
    %23 = vector.load %arg4[%c0_9, %c0_10] : memref<32x32xf32, #tpu.memory_space<vmem>>, vector<32x32xf32>
    tpu.vector_store %arg4[%c0_9, %c0_10], %22 {strides = array<i32>} : memref<32x32xf32, #tpu.memory_space<vmem>>, vector<32x32xf32>,
    return
  }
  func.func @transform_0(%arg0: i32) -> (i32, i32) {
    %c0_i32 = arith.constant 0 : i32
    %c0_i32_0 = arith.constant 0 : i32
    return %arg0, %c0_i32 : i32, i32
  }
  func.func @transform_1(%arg0: i32) -> (i32, i32) {
    %c0_i32 = arith.constant 0 : i32
    %c0_i32_0 = arith.constant 0 : i32
    %c0_i32_1 = arith.constant 0 : i32
    return %c0_i32, %c0_i32_0 : i32, i32
  }
  func.func @transform_2(%arg0: i32) -> (i32, i32) {
    %c0_i32 = arith.constant 0 : i32
    %c0_i32_0 = arith.constant 0 : i32
    %c0_i32_1 = arith.constant 0 : i32
    return %c0_i32, %c0_i32_0 : i32, i32
  }
  func.func @transform_3(%arg0: i32) -> (i32, i32) {
    %c0_i32 = arith.constant 0 : i32
    %c0_i32_0 = arith.constant 0 : i32
    return %arg0, %c0_i32 : i32, i32
  }
}

module attributes {stable_mosaic.version = 11 : i64} {
  func.func @_attn_self_kernel(%arg0: i32, %arg1: memref<1x16x96xf32, #tpu.memory_space<vmem>>, %arg2: memref<1x16x32xf32, #tpu.memory_space<vmem>>) attributes {dimension_semantics = [#tpu.dimension_semantics<parallel>], iteration_bounds = array<i64: 2>, scalar_prefetch = 0 : i64, scratch_operands = 0 : i64, tpu.core_type = #tpu.core_type<tc>, window_params = [{transform_indices = @transform_0, window_bounds = array<i64: 1, 16, 96>}, {transform_indices = @transform_1, window_bounds = array<i64: 1, 16, 32>}]} {
    %c0 = arith.constant 0 : index
    %c0_0 = arith.constant 0 : index
    %c0_1 = arith.constant 0 : index
    %0 = vector.load %arg1[%c0, %c0_0, %c0_1] : memref<1x16x96xf32, #tpu.memory_space<vmem>>, vector<1x16x96xf32>
    %1 = vector.shape_cast %0 : vector<1x16x96xf32> to vector<16x96xf32>
    %2 = vector.extract_strided_slice %1 {offsets = [0, 0], sizes = [16, 32], strides = [1, 1]} : vector<16x96xf32> to vector<16x32xf32>
    %cst = arith.constant 0.353553385 : f32
    %3 = vector.broadcast %cst : f32 to vector<16x32xf32>
    %4 = arith.mulf %2, %3 : vector<16x32xf32>
    %5 = vector.extract_strided_slice %1 {offsets = [0, 32], sizes = [16, 32], strides = [1, 1]} : vector<16x96xf32> to vector<16x32xf32>
    %6 = vector.extract_strided_slice %1 {offsets = [0, 64], sizes = [16, 32], strides = [1, 1]} : vector<16x96xf32> to vector<16x32xf32>
    %7 = arith.truncf %4 : vector<16x32xf32> to vector<16x32xbf16>
    %8 = arith.truncf %5 : vector<16x32xf32> to vector<16x32xbf16>
    %9 = arith.truncf %6 : vector<16x32xf32> to vector<16x32xbf16>
    %10 = tpu.iota {dimensions = array<i32: 0>} : vector<16x16xi32>
    %11 = tpu.iota {dimensions = array<i32: 1>} : vector<16x16xi32>
    %12 = arith.cmpi sgt, %11, %10 : vector<16x16xi32>
    %13 = vector.extract_strided_slice %7 {offsets = [0, 0], sizes = [16, 8], strides = [1, 1]} : vector<16x32xbf16> to vector<16x8xbf16>
    %14 = vector.extract_strided_slice %8 {offsets = [0, 0], sizes = [16, 8], strides = [1, 1]} : vector<16x32xbf16> to vector<16x8xbf16>
    %cst_2 = arith.constant dense<0.000000e+00> : vector<16x16xf32>
    %15 = tpu.matmul %13, %14, %cst_2 {dimension_numbers = #tpu.dot_dimension_numbers<[1], [1], [0], [0], [0, 0, 1, 0], [], []>} : vector<16x8xbf16>, vector<16x8xbf16>, vector<16x16xf32> -> vector<16x16xf32>
    %cst_3 = arith.constant -1.000000e+30 : f32
    %16 = vector.broadcast %cst_3 : f32 to vector<16x16xf32>
    %17 = arith.select %12, %16, %15 : vector<16x16xi1>, vector<16x16xf32>
    %cst_4 = arith.constant dense<0xFF800000> : vector<16xf32>
    %18 = vector.multi_reduction <maximumf>, %17, %cst_4 [1] : vector<16x16xf32> to vector<16xf32>
    %19 = vector.shape_cast %18 : vector<16xf32> to vector<16x1xf32>
    %20 = vector.broadcast %19 : vector<16x1xf32> to vector<16x16xf32>
    %21 = arith.subf %17, %20 : vector<16x16xf32>
    %22 = math.exp %21 : vector<16x16xf32>
    %cst_5 = arith.constant dense<0.000000e+00> : vector<16xf32>
    %23 = vector.multi_reduction <add>, %22, %cst_5 [1] : vector<16x16xf32> to vector<16xf32>
    %24 = vector.shape_cast %23 : vector<16xf32> to vector<16x1xf32>
    %25 = tpu.reciprocal %24 {approx = true} : vector<16x1xf32> -> vector<16x1xf32>
    %26 = vector.broadcast %25 : vector<16x1xf32> to vector<16x16xf32>
    %27 = arith.mulf %22, %26 : vector<16x16xf32>
    %28 = arith.truncf %27 : vector<16x16xf32> to vector<16x16xbf16>
    %29 = vector.extract_strided_slice %9 {offsets = [0, 0], sizes = [16, 8], strides = [1, 1]} : vector<16x32xbf16> to vector<16x8xbf16>
    %cst_6 = arith.constant dense<0.000000e+00> : vector<16x8xf32>
    %30 = tpu.matmul %28, %29, %cst_6 {dimension_numbers = #tpu.dot_dimension_numbers<[1], [0], [0], [1], [0, 0, 1, 1], [], []>} : vector<16x16xbf16>, vector<16x8xbf16>, vector<16x8xf32> -> vector<16x8xf32>
    %31 = vector.extract_strided_slice %7 {offsets = [0, 8], sizes = [16, 8], strides = [1, 1]} : vector<16x32xbf16> to vector<16x8xbf16>
    %32 = vector.extract_strided_slice %8 {offsets = [0, 8], sizes = [16, 8], strides = [1, 1]} : vector<16x32xbf16> to vector<16x8xbf16>
    %cst_7 = arith.constant dense<0.000000e+00> : vector<16x16xf32>
    %33 = tpu.matmul %31, %32, %cst_7 {dimension_numbers = #tpu.dot_dimension_numbers<[1], [1], [0], [0], [0, 0, 1, 0], [], []>} : vector<16x8xbf16>, vector<16x8xbf16>, vector<16x16xf32> -> vector<16x16xf32>
    %cst_8 = arith.constant -1.000000e+30 : f32
    %34 = vector.broadcast %cst_8 : f32 to vector<16x16xf32>
    %35 = arith.select %12, %34, %33 : vector<16x16xi1>, vector<16x16xf32>
    %cst_9 = arith.constant dense<0xFF800000> : vector<16xf32>
    %36 = vector.multi_reduction <maximumf>, %35, %cst_9 [1] : vector<16x16xf32> to vector<16xf32>
    %37 = vector.shape_cast %36 : vector<16xf32> to vector<16x1xf32>
    %38 = vector.broadcast %37 : vector<16x1xf32> to vector<16x16xf32>
    %39 = arith.subf %35, %38 : vector<16x16xf32>
    %40 = math.exp %39 : vector<16x16xf32>
    %cst_10 = arith.constant dense<0.000000e+00> : vector<16xf32>
    %41 = vector.multi_reduction <add>, %40, %cst_10 [1] : vector<16x16xf32> to vector<16xf32>
    %42 = vector.shape_cast %41 : vector<16xf32> to vector<16x1xf32>
    %43 = tpu.reciprocal %42 {approx = true} : vector<16x1xf32> -> vector<16x1xf32>
    %44 = vector.broadcast %43 : vector<16x1xf32> to vector<16x16xf32>
    %45 = arith.mulf %40, %44 : vector<16x16xf32>
    %46 = arith.truncf %45 : vector<16x16xf32> to vector<16x16xbf16>
    %47 = vector.extract_strided_slice %9 {offsets = [0, 8], sizes = [16, 8], strides = [1, 1]} : vector<16x32xbf16> to vector<16x8xbf16>
    %cst_11 = arith.constant dense<0.000000e+00> : vector<16x8xf32>
    %48 = tpu.matmul %46, %47, %cst_11 {dimension_numbers = #tpu.dot_dimension_numbers<[1], [0], [0], [1], [0, 0, 1, 1], [], []>} : vector<16x16xbf16>, vector<16x8xbf16>, vector<16x8xf32> -> vector<16x8xf32>
    %49 = vector.extract_strided_slice %7 {offsets = [0, 16], sizes = [16, 8], strides = [1, 1]} : vector<16x32xbf16> to vector<16x8xbf16>
    %50 = vector.extract_strided_slice %8 {offsets = [0, 16], sizes = [16, 8], strides = [1, 1]} : vector<16x32xbf16> to vector<16x8xbf16>
    %cst_12 = arith.constant dense<0.000000e+00> : vector<16x16xf32>
    %51 = tpu.matmul %49, %50, %cst_12 {dimension_numbers = #tpu.dot_dimension_numbers<[1], [1], [0], [0], [0, 0, 1, 0], [], []>} : vector<16x8xbf16>, vector<16x8xbf16>, vector<16x16xf32> -> vector<16x16xf32>
    %cst_13 = arith.constant -1.000000e+30 : f32
    %52 = vector.broadcast %cst_13 : f32 to vector<16x16xf32>
    %53 = arith.select %12, %52, %51 : vector<16x16xi1>, vector<16x16xf32>
    %cst_14 = arith.constant dense<0xFF800000> : vector<16xf32>
    %54 = vector.multi_reduction <maximumf>, %53, %cst_14 [1] : vector<16x16xf32> to vector<16xf32>
    %55 = vector.shape_cast %54 : vector<16xf32> to vector<16x1xf32>
    %56 = vector.broadcast %55 : vector<16x1xf32> to vector<16x16xf32>
    %57 = arith.subf %53, %56 : vector<16x16xf32>
    %58 = math.exp %57 : vector<16x16xf32>
    %cst_15 = arith.constant dense<0.000000e+00> : vector<16xf32>
    %59 = vector.multi_reduction <add>, %58, %cst_15 [1] : vector<16x16xf32> to vector<16xf32>
    %60 = vector.shape_cast %59 : vector<16xf32> to vector<16x1xf32>
    %61 = tpu.reciprocal %60 {approx = true} : vector<16x1xf32> -> vector<16x1xf32>
    %62 = vector.broadcast %61 : vector<16x1xf32> to vector<16x16xf32>
    %63 = arith.mulf %58, %62 : vector<16x16xf32>
    %64 = arith.truncf %63 : vector<16x16xf32> to vector<16x16xbf16>
    %65 = vector.extract_strided_slice %9 {offsets = [0, 16], sizes = [16, 8], strides = [1, 1]} : vector<16x32xbf16> to vector<16x8xbf16>
    %cst_16 = arith.constant dense<0.000000e+00> : vector<16x8xf32>
    %66 = tpu.matmul %64, %65, %cst_16 {dimension_numbers = #tpu.dot_dimension_numbers<[1], [0], [0], [1], [0, 0, 1, 1], [], []>} : vector<16x16xbf16>, vector<16x8xbf16>, vector<16x8xf32> -> vector<16x8xf32>
    %67 = vector.extract_strided_slice %7 {offsets = [0, 24], sizes = [16, 8], strides = [1, 1]} : vector<16x32xbf16> to vector<16x8xbf16>
    %68 = vector.extract_strided_slice %8 {offsets = [0, 24], sizes = [16, 8], strides = [1, 1]} : vector<16x32xbf16> to vector<16x8xbf16>
    %cst_17 = arith.constant dense<0.000000e+00> : vector<16x16xf32>
    %69 = tpu.matmul %67, %68, %cst_17 {dimension_numbers = #tpu.dot_dimension_numbers<[1], [1], [0], [0], [0, 0, 1, 0], [], []>} : vector<16x8xbf16>, vector<16x8xbf16>, vector<16x16xf32> -> vector<16x16xf32>
    %cst_18 = arith.constant -1.000000e+30 : f32
    %70 = vector.broadcast %cst_18 : f32 to vector<16x16xf32>
    %71 = arith.select %12, %70, %69 : vector<16x16xi1>, vector<16x16xf32>
    %cst_19 = arith.constant dense<0xFF800000> : vector<16xf32>
    %72 = vector.multi_reduction <maximumf>, %71, %cst_19 [1] : vector<16x16xf32> to vector<16xf32>
    %73 = vector.shape_cast %72 : vector<16xf32> to vector<16x1xf32>
    %74 = vector.broadcast %73 : vector<16x1xf32> to vector<16x16xf32>
    %75 = arith.subf %71, %74 : vector<16x16xf32>
    %76 = math.exp %75 : vector<16x16xf32>
    %cst_20 = arith.constant dense<0.000000e+00> : vector<16xf32>
    %77 = vector.multi_reduction <add>, %76, %cst_20 [1] : vector<16x16xf32> to vector<16xf32>
    %78 = vector.shape_cast %77 : vector<16xf32> to vector<16x1xf32>
    %79 = tpu.reciprocal %78 {approx = true} : vector<16x1xf32> -> vector<16x1xf32>
    %80 = vector.broadcast %79 : vector<16x1xf32> to vector<16x16xf32>
    %81 = arith.mulf %76, %80 : vector<16x16xf32>
    %82 = arith.truncf %81 : vector<16x16xf32> to vector<16x16xbf16>
    %83 = vector.extract_strided_slice %9 {offsets = [0, 24], sizes = [16, 8], strides = [1, 1]} : vector<16x32xbf16> to vector<16x8xbf16>
    %cst_21 = arith.constant dense<0.000000e+00> : vector<16x8xf32>
    %84 = tpu.matmul %82, %83, %cst_21 {dimension_numbers = #tpu.dot_dimension_numbers<[1], [0], [0], [1], [0, 0, 1, 1], [], []>} : vector<16x16xbf16>, vector<16x8xbf16>, vector<16x8xf32> -> vector<16x8xf32>
    %85 = tpu.concatenate %30, %48, %66, %84 in 1 : vector<16x8xf32>, vector<16x8xf32>, vector<16x8xf32>, vector<16x8xf32> -> vector<16x32xf32>
    %c0_22 = arith.constant 0 : index
    %c0_23 = arith.constant 0 : index
    %c0_24 = arith.constant 0 : index
    %86 = vector.load %arg2[%c0_22, %c0_23, %c0_24] : memref<1x16x32xf32, #tpu.memory_space<vmem>>, vector<1x16x32xf32>
    %87 = vector.shape_cast %86 : vector<1x16x32xf32> to vector<16x32xf32>
    %88 = vector.shape_cast %85 : vector<16x32xf32> to vector<1x16x32xf32>
    tpu.vector_store %arg2[%c0_22, %c0_23, %c0_24], %88 {strides = array<i32>} : memref<1x16x32xf32, #tpu.memory_space<vmem>>, vector<1x16x32xf32>,
    return
  }
  func.func @transform_0(%arg0: i32) -> (i32, i32, i32) {
    %c0_i32 = arith.constant 0 : i32
    %c0_i32_0 = arith.constant 0 : i32
    %c0_i32_1 = arith.constant 0 : i32
    return %arg0, %c0_i32, %c0_i32_0 : i32, i32, i32
  }
  func.func @transform_1(%arg0: i32) -> (i32, i32, i32) {
    %c0_i32 = arith.constant 0 : i32
    %c0_i32_0 = arith.constant 0 : i32
    %c0_i32_1 = arith.constant 0 : i32
    return %arg0, %c0_i32, %c0_i32_0 : i32, i32, i32
  }
}

module attributes {stable_mosaic.version = 11 : i64} {
  func.func @_attn_cross_kernel(%arg0: i32, %arg1: memref<1x16x32xf32, #tpu.memory_space<vmem>>, %arg2: memref<1x16x64xf32, #tpu.memory_space<vmem>>, %arg3: memref<1x16x32xf32, #tpu.memory_space<vmem>>) attributes {dimension_semantics = [#tpu.dimension_semantics<parallel>], iteration_bounds = array<i64: 2>, scalar_prefetch = 0 : i64, scratch_operands = 0 : i64, tpu.core_type = #tpu.core_type<tc>, window_params = [{transform_indices = @transform_0, window_bounds = array<i64: 1, 16, 32>}, {transform_indices = @transform_1, window_bounds = array<i64: 1, 16, 64>}, {transform_indices = @transform_2, window_bounds = array<i64: 1, 16, 32>}]} {
    %c0 = arith.constant 0 : index
    %c0_0 = arith.constant 0 : index
    %c0_1 = arith.constant 0 : index
    %0 = vector.load %arg1[%c0, %c0_0, %c0_1] : memref<1x16x32xf32, #tpu.memory_space<vmem>>, vector<1x16x32xf32>
    %1 = vector.shape_cast %0 : vector<1x16x32xf32> to vector<16x32xf32>
    %cst = arith.constant 0.353553385 : f32
    %2 = vector.broadcast %cst : f32 to vector<16x32xf32>
    %3 = arith.mulf %1, %2 : vector<16x32xf32>
    %c0_2 = arith.constant 0 : index
    %c0_3 = arith.constant 0 : index
    %c0_4 = arith.constant 0 : index
    %4 = vector.load %arg2[%c0_2, %c0_3, %c0_4] : memref<1x16x64xf32, #tpu.memory_space<vmem>>, vector<1x16x64xf32>
    %5 = vector.shape_cast %4 : vector<1x16x64xf32> to vector<16x64xf32>
    %6 = vector.extract_strided_slice %5 {offsets = [0, 0], sizes = [16, 32], strides = [1, 1]} : vector<16x64xf32> to vector<16x32xf32>
    %7 = vector.extract_strided_slice %5 {offsets = [0, 32], sizes = [16, 32], strides = [1, 1]} : vector<16x64xf32> to vector<16x32xf32>
    %8 = arith.truncf %3 : vector<16x32xf32> to vector<16x32xbf16>
    %9 = arith.truncf %6 : vector<16x32xf32> to vector<16x32xbf16>
    %10 = arith.truncf %7 : vector<16x32xf32> to vector<16x32xbf16>
    %11 = vector.extract_strided_slice %8 {offsets = [0, 0], sizes = [16, 8], strides = [1, 1]} : vector<16x32xbf16> to vector<16x8xbf16>
    %12 = vector.extract_strided_slice %9 {offsets = [0, 0], sizes = [16, 8], strides = [1, 1]} : vector<16x32xbf16> to vector<16x8xbf16>
    %cst_5 = arith.constant dense<0.000000e+00> : vector<16x16xf32>
    %13 = tpu.matmul %11, %12, %cst_5 {dimension_numbers = #tpu.dot_dimension_numbers<[1], [1], [0], [0], [0, 0, 1, 0], [], []>} : vector<16x8xbf16>, vector<16x8xbf16>, vector<16x16xf32> -> vector<16x16xf32>
    %cst_6 = arith.constant dense<0xFF800000> : vector<16xf32>
    %14 = vector.multi_reduction <maximumf>, %13, %cst_6 [1] : vector<16x16xf32> to vector<16xf32>
    %15 = vector.shape_cast %14 : vector<16xf32> to vector<16x1xf32>
    %16 = vector.broadcast %15 : vector<16x1xf32> to vector<16x16xf32>
    %17 = arith.subf %13, %16 : vector<16x16xf32>
    %18 = math.exp %17 : vector<16x16xf32>
    %cst_7 = arith.constant dense<0.000000e+00> : vector<16xf32>
    %19 = vector.multi_reduction <add>, %18, %cst_7 [1] : vector<16x16xf32> to vector<16xf32>
    %20 = vector.shape_cast %19 : vector<16xf32> to vector<16x1xf32>
    %21 = tpu.reciprocal %20 {approx = true} : vector<16x1xf32> -> vector<16x1xf32>
    %22 = vector.broadcast %21 : vector<16x1xf32> to vector<16x16xf32>
    %23 = arith.mulf %18, %22 : vector<16x16xf32>
    %24 = arith.truncf %23 : vector<16x16xf32> to vector<16x16xbf16>
    %25 = vector.extract_strided_slice %10 {offsets = [0, 0], sizes = [16, 8], strides = [1, 1]} : vector<16x32xbf16> to vector<16x8xbf16>
    %cst_8 = arith.constant dense<0.000000e+00> : vector<16x8xf32>
    %26 = tpu.matmul %24, %25, %cst_8 {dimension_numbers = #tpu.dot_dimension_numbers<[1], [0], [0], [1], [0, 0, 1, 1], [], []>} : vector<16x16xbf16>, vector<16x8xbf16>, vector<16x8xf32> -> vector<16x8xf32>
    %27 = vector.extract_strided_slice %8 {offsets = [0, 8], sizes = [16, 8], strides = [1, 1]} : vector<16x32xbf16> to vector<16x8xbf16>
    %28 = vector.extract_strided_slice %9 {offsets = [0, 8], sizes = [16, 8], strides = [1, 1]} : vector<16x32xbf16> to vector<16x8xbf16>
    %cst_9 = arith.constant dense<0.000000e+00> : vector<16x16xf32>
    %29 = tpu.matmul %27, %28, %cst_9 {dimension_numbers = #tpu.dot_dimension_numbers<[1], [1], [0], [0], [0, 0, 1, 0], [], []>} : vector<16x8xbf16>, vector<16x8xbf16>, vector<16x16xf32> -> vector<16x16xf32>
    %cst_10 = arith.constant dense<0xFF800000> : vector<16xf32>
    %30 = vector.multi_reduction <maximumf>, %29, %cst_10 [1] : vector<16x16xf32> to vector<16xf32>
    %31 = vector.shape_cast %30 : vector<16xf32> to vector<16x1xf32>
    %32 = vector.broadcast %31 : vector<16x1xf32> to vector<16x16xf32>
    %33 = arith.subf %29, %32 : vector<16x16xf32>
    %34 = math.exp %33 : vector<16x16xf32>
    %cst_11 = arith.constant dense<0.000000e+00> : vector<16xf32>
    %35 = vector.multi_reduction <add>, %34, %cst_11 [1] : vector<16x16xf32> to vector<16xf32>
    %36 = vector.shape_cast %35 : vector<16xf32> to vector<16x1xf32>
    %37 = tpu.reciprocal %36 {approx = true} : vector<16x1xf32> -> vector<16x1xf32>
    %38 = vector.broadcast %37 : vector<16x1xf32> to vector<16x16xf32>
    %39 = arith.mulf %34, %38 : vector<16x16xf32>
    %40 = arith.truncf %39 : vector<16x16xf32> to vector<16x16xbf16>
    %41 = vector.extract_strided_slice %10 {offsets = [0, 8], sizes = [16, 8], strides = [1, 1]} : vector<16x32xbf16> to vector<16x8xbf16>
    %cst_12 = arith.constant dense<0.000000e+00> : vector<16x8xf32>
    %42 = tpu.matmul %40, %41, %cst_12 {dimension_numbers = #tpu.dot_dimension_numbers<[1], [0], [0], [1], [0, 0, 1, 1], [], []>} : vector<16x16xbf16>, vector<16x8xbf16>, vector<16x8xf32> -> vector<16x8xf32>
    %43 = vector.extract_strided_slice %8 {offsets = [0, 16], sizes = [16, 8], strides = [1, 1]} : vector<16x32xbf16> to vector<16x8xbf16>
    %44 = vector.extract_strided_slice %9 {offsets = [0, 16], sizes = [16, 8], strides = [1, 1]} : vector<16x32xbf16> to vector<16x8xbf16>
    %cst_13 = arith.constant dense<0.000000e+00> : vector<16x16xf32>
    %45 = tpu.matmul %43, %44, %cst_13 {dimension_numbers = #tpu.dot_dimension_numbers<[1], [1], [0], [0], [0, 0, 1, 0], [], []>} : vector<16x8xbf16>, vector<16x8xbf16>, vector<16x16xf32> -> vector<16x16xf32>
    %cst_14 = arith.constant dense<0xFF800000> : vector<16xf32>
    %46 = vector.multi_reduction <maximumf>, %45, %cst_14 [1] : vector<16x16xf32> to vector<16xf32>
    %47 = vector.shape_cast %46 : vector<16xf32> to vector<16x1xf32>
    %48 = vector.broadcast %47 : vector<16x1xf32> to vector<16x16xf32>
    %49 = arith.subf %45, %48 : vector<16x16xf32>
    %50 = math.exp %49 : vector<16x16xf32>
    %cst_15 = arith.constant dense<0.000000e+00> : vector<16xf32>
    %51 = vector.multi_reduction <add>, %50, %cst_15 [1] : vector<16x16xf32> to vector<16xf32>
    %52 = vector.shape_cast %51 : vector<16xf32> to vector<16x1xf32>
    %53 = tpu.reciprocal %52 {approx = true} : vector<16x1xf32> -> vector<16x1xf32>
    %54 = vector.broadcast %53 : vector<16x1xf32> to vector<16x16xf32>
    %55 = arith.mulf %50, %54 : vector<16x16xf32>
    %56 = arith.truncf %55 : vector<16x16xf32> to vector<16x16xbf16>
    %57 = vector.extract_strided_slice %10 {offsets = [0, 16], sizes = [16, 8], strides = [1, 1]} : vector<16x32xbf16> to vector<16x8xbf16>
    %cst_16 = arith.constant dense<0.000000e+00> : vector<16x8xf32>
    %58 = tpu.matmul %56, %57, %cst_16 {dimension_numbers = #tpu.dot_dimension_numbers<[1], [0], [0], [1], [0, 0, 1, 1], [], []>} : vector<16x16xbf16>, vector<16x8xbf16>, vector<16x8xf32> -> vector<16x8xf32>
    %59 = vector.extract_strided_slice %8 {offsets = [0, 24], sizes = [16, 8], strides = [1, 1]} : vector<16x32xbf16> to vector<16x8xbf16>
    %60 = vector.extract_strided_slice %9 {offsets = [0, 24], sizes = [16, 8], strides = [1, 1]} : vector<16x32xbf16> to vector<16x8xbf16>
    %cst_17 = arith.constant dense<0.000000e+00> : vector<16x16xf32>
    %61 = tpu.matmul %59, %60, %cst_17 {dimension_numbers = #tpu.dot_dimension_numbers<[1], [1], [0], [0], [0, 0, 1, 0], [], []>} : vector<16x8xbf16>, vector<16x8xbf16>, vector<16x16xf32> -> vector<16x16xf32>
    %cst_18 = arith.constant dense<0xFF800000> : vector<16xf32>
    %62 = vector.multi_reduction <maximumf>, %61, %cst_18 [1] : vector<16x16xf32> to vector<16xf32>
    %63 = vector.shape_cast %62 : vector<16xf32> to vector<16x1xf32>
    %64 = vector.broadcast %63 : vector<16x1xf32> to vector<16x16xf32>
    %65 = arith.subf %61, %64 : vector<16x16xf32>
    %66 = math.exp %65 : vector<16x16xf32>
    %cst_19 = arith.constant dense<0.000000e+00> : vector<16xf32>
    %67 = vector.multi_reduction <add>, %66, %cst_19 [1] : vector<16x16xf32> to vector<16xf32>
    %68 = vector.shape_cast %67 : vector<16xf32> to vector<16x1xf32>
    %69 = tpu.reciprocal %68 {approx = true} : vector<16x1xf32> -> vector<16x1xf32>
    %70 = vector.broadcast %69 : vector<16x1xf32> to vector<16x16xf32>
    %71 = arith.mulf %66, %70 : vector<16x16xf32>
    %72 = arith.truncf %71 : vector<16x16xf32> to vector<16x16xbf16>
    %73 = vector.extract_strided_slice %10 {offsets = [0, 24], sizes = [16, 8], strides = [1, 1]} : vector<16x32xbf16> to vector<16x8xbf16>
    %cst_20 = arith.constant dense<0.000000e+00> : vector<16x8xf32>
    %74 = tpu.matmul %72, %73, %cst_20 {dimension_numbers = #tpu.dot_dimension_numbers<[1], [0], [0], [1], [0, 0, 1, 1], [], []>} : vector<16x16xbf16>, vector<16x8xbf16>, vector<16x8xf32> -> vector<16x8xf32>
    %75 = tpu.concatenate %26, %42, %58, %74 in 1 : vector<16x8xf32>, vector<16x8xf32>, vector<16x8xf32>, vector<16x8xf32> -> vector<16x32xf32>
    %c0_21 = arith.constant 0 : index
    %c0_22 = arith.constant 0 : index
    %c0_23 = arith.constant 0 : index
    %76 = vector.load %arg3[%c0_21, %c0_22, %c0_23] : memref<1x16x32xf32, #tpu.memory_space<vmem>>, vector<1x16x32xf32>
    %77 = vector.shape_cast %76 : vector<1x16x32xf32> to vector<16x32xf32>
    %78 = vector.shape_cast %75 : vector<16x32xf32> to vector<1x16x32xf32>
    tpu.vector_store %arg3[%c0_21, %c0_22, %c0_23], %78 {strides = array<i32>} : memref<1x16x32xf32, #tpu.memory_space<vmem>>, vector<1x16x32xf32>,
    return
  }
  func.func @transform_0(%arg0: i32) -> (i32, i32, i32) {
    %c0_i32 = arith.constant 0 : i32
    %c0_i32_0 = arith.constant 0 : i32
    %c0_i32_1 = arith.constant 0 : i32
    return %arg0, %c0_i32, %c0_i32_0 : i32, i32, i32
  }
  func.func @transform_1(%arg0: i32) -> (i32, i32, i32) {
    %c0_i32 = arith.constant 0 : i32
    %c0_i32_0 = arith.constant 0 : i32
    %c0_i32_1 = arith.constant 0 : i32
    return %arg0, %c0_i32, %c0_i32_0 : i32, i32, i32
  }
  func.func @transform_2(%arg0: i32) -> (i32, i32, i32) {
    %c0_i32 = arith.constant 0 : i32
    %c0_i32_0 = arith.constant 0 : i32
    %c0_i32_1 = arith.constant 0 : i32
    return %arg0, %c0_i32, %c0_i32_0 : i32, i32, i32
  }
}

module attributes {stable_mosaic.version = 11 : i64} {
  func.func @_matmul_bias_kernel(%arg0: i32, %arg1: memref<32x32xf32, #tpu.memory_space<vmem>>, %arg2: memref<32x32xbf16, #tpu.memory_space<vmem>>, %arg3: memref<1x32xf32, #tpu.memory_space<vmem>>, %arg4: memref<32x32xf32, #tpu.memory_space<vmem>>) attributes {dimension_semantics = [#tpu.dimension_semantics<parallel>], iteration_bounds = array<i64: 1>, scalar_prefetch = 0 : i64, scratch_operands = 0 : i64, tpu.core_type = #tpu.core_type<tc>, window_params = [{transform_indices = @transform_0, window_bounds = array<i64: 32, 32>}, {pipeline_mode = #tpu.pipeline_mode<synchronous>, transform_indices = @transform_1, window_bounds = array<i64: 32, 32>}, {pipeline_mode = #tpu.pipeline_mode<synchronous>, transform_indices = @transform_2, window_bounds = array<i64: 1, 32>}, {transform_indices = @transform_3, window_bounds = array<i64: 32, 32>}]} {
    %c0 = arith.constant 0 : index
    %c0_0 = arith.constant 0 : index
    %0 = vector.load %arg1[%c0, %c0_0] : memref<32x32xf32, #tpu.memory_space<vmem>>, vector<32x32xf32>
    %1 = arith.truncf %0 : vector<32x32xf32> to vector<32x32xbf16>
    %c0_1 = arith.constant 0 : index
    %c0_2 = arith.constant 0 : index
    %2 = vector.load %arg2[%c0_1, %c0_2] : memref<32x32xbf16, #tpu.memory_space<vmem>>, vector<32x32xbf16>
    %cst = arith.constant dense<0.000000e+00> : vector<32x32xf32>
    %3 = tpu.matmul %1, %2, %cst {dimension_numbers = #tpu.dot_dimension_numbers<[1], [0], [0], [1], [0, 0, 1, 1], [], []>} : vector<32x32xbf16>, vector<32x32xbf16>, vector<32x32xf32> -> vector<32x32xf32>
    %c0_3 = arith.constant 0 : index
    %c0_4 = arith.constant 0 : index
    %4 = vector.load %arg3[%c0_3, %c0_4] : memref<1x32xf32, #tpu.memory_space<vmem>>, vector<1x32xf32>
    %5 = vector.broadcast %4 : vector<1x32xf32> to vector<32x32xf32>
    %6 = arith.addf %3, %5 : vector<32x32xf32>
    %c0_5 = arith.constant 0 : index
    %c0_6 = arith.constant 0 : index
    %7 = vector.load %arg4[%c0_5, %c0_6] : memref<32x32xf32, #tpu.memory_space<vmem>>, vector<32x32xf32>
    tpu.vector_store %arg4[%c0_5, %c0_6], %6 {strides = array<i32>} : memref<32x32xf32, #tpu.memory_space<vmem>>, vector<32x32xf32>,
    return
  }
  func.func @transform_0(%arg0: i32) -> (i32, i32) {
    %c0_i32 = arith.constant 0 : i32
    %c0_i32_0 = arith.constant 0 : i32
    return %arg0, %c0_i32 : i32, i32
  }
  func.func @transform_1(%arg0: i32) -> (i32, i32) {
    %c0_i32 = arith.constant 0 : i32
    %c0_i32_0 = arith.constant 0 : i32
    %c0_i32_1 = arith.constant 0 : i32
    return %c0_i32, %c0_i32_0 : i32, i32
  }
  func.func @transform_2(%arg0: i32) -> (i32, i32) {
    %c0_i32 = arith.constant 0 : i32
    %c0_i32_0 = arith.constant 0 : i32
    %c0_i32_1 = arith.constant 0 : i32
    return %c0_i32, %c0_i32_0 : i32, i32
  }
  func.func @transform_3(%arg0: i32) -> (i32, i32) {
    %c0_i32 = arith.constant 0 : i32
    %c0_i32_0 = arith.constant 0 : i32
    return %arg0, %c0_i32 : i32, i32
  }
}

</mosaic_0001>

<bundles_post_ra>
// kernel: informer_forward.20
= control target key start
LH: loop header
LB: loop body
LE: loop exit
PB: predicated region body
PF: predicated region fallthrough
CT: control target
= control target key end

     0   :  { %vm39_vm0 = vcmask 1045504   ;;  %vm32_vm1 = vcmask 97280   ;;  %vm92_vm2 = vcmask 261120   ;;  %s174_s1 = inlined_call_operand.vmem [shape: bf16[12,32], index: 1, kind: input, shape index: {}]   ;;  %s175_s0 = inlined_call_operand.vmem [shape: f32[32,12], index: 0, kind: input, shape index: {}]   ;;  %s176_s2 = inlined_call_operand.vmem [shape: f32[32,32], index: 2, kind: input, shape index: {}]   ;;  %s177_s3 = inlined_call_operand.vmem [shape: f32[32,32], index: 3, kind: output, shape index: {}]  }
   0x1   :  { %v114_v0 = vld [vmem:[%s174_s1] sm:$0x3f]   ;;  %v16_v2 = vld [vmem:[%s175_s0 + $0x8] sm:$0xff]  ;;  %v17_v3 = vld [vmem:[%s175_s0 + $0x10] sm:$0xff] }
   0x2   :  { %v15_v1 = vld [vmem:[%s175_s0] sm:$0xff]  ;;  %113 = vmatprep.subr.msk.bf16.mxu0 %vm39_vm0, %v114_v0  ;;  %v41_v4 = vsel %vm39_vm0, %v114_v0, 0  ;;  %v18_v6 = vld [vmem:[%s175_s0 + $0x18] sm:$0xff]  ;;  %v25_v8 = vld [vmem:[%s176_s2 + $0x10] sm:$0xff] }
   0x3   :  { %v19_v5 = vpack.c.bf16 %v16_v2, %v15_v1  ;;  %108 = vmatpush3.bf16.msra.mxu0 %v41_v4  ;;  %v20_v7 = vpack.c.bf16 %v18_v6, %v17_v3  ;;  %v23_v10 = vld [vmem:[%s176_s2] sm:$0xff]  ;;  %v26_v13 = vld [vmem:[%s176_s2 + $0x18] sm:$0xff]  ;;  %v24_v16 = vld [vmem:[%s176_s2 + $0x8] sm:$0xff] }
   0x5   :  { %109 = vmatprep.mubr.msk.bf16.mxu0 %vm32_vm1, %v19_v5 }
   0x6   :  { %110 = vmatmul.mubr.msk.bf16.vlgmr.msra.gmra.mxu0 %vm32_vm1, %v20_v7 }
  0xc6   :  { %v111_v9 = vpop.f32.mrf.mxu0 }
  0xc7   :  { %v86_v11 = vadd.f32 %v111_v9, %v25_v8 }
  0xc8   :  { %v77_v12 = vpop.f32.mrf.mxu0 }
  0xc9   :  { %95 = vst.msk [vmem:[%s177_s3 + $0x10] sm:$0xff] %vm92_vm2, %v86_v11  ;;  %v78_v14 = vadd.f32 %v77_v12, %v23_v10 }
  0xca   :  { %v112_v15 = vpop.f32.mrf.mxu0 }
  0xcb   :  { %93 = vst.msk [vmem:[%s177_s3] sm:$0xff] %vm92_vm2, %v78_v14  ;;  %v89_v17 = vadd.f32 %v112_v15, %v26_v13 }
  0xcc   :  { %v80_v18 = vpop.f32.mrf.mxu0 }
  0xcd   :  { %96 = vst.msk [vmem:[%s177_s3 + $0x18] sm:$0xff] %vm92_vm2, %v89_v17  ;;  %v81_v19 = vadd.f32 %v80_v18, %v24_v16 }
  0xcf   :  { %94 = vst.msk [vmem:[%s177_s3 + $0x8] sm:$0xff] %vm92_vm2, %v81_v19 }

// kernel: informer_forward.23
= control target key start
LH: loop header
LB: loop body
LE: loop exit
PB: predicated region body
PF: predicated region fallthrough
CT: control target
= control target key end

     0   :  { %vm53_vm0 = vcmask 261120   ;;  %s329_s1 = inlined_call_operand.vmem [shape: bf16[32,32], index: 1, kind: input, shape index: {}]   ;;  %s330_s0 = inlined_call_operand.vmem [shape: f32[32,32], index: 0, kind: input, shape index: {}]   ;;  %s331_s2 = inlined_call_operand.vmem [shape: f32[1,32], index: 2, kind: input, shape index: {}]   ;;  %s332_s3 = inlined_call_operand.vmem [shape: f32[32,32], index: 3, kind: input, shape index: {}]   ;;  %s333_s4 = inlined_call_operand.vmem [shape: f32[1,32], index: 4, kind: input, shape index: {}]   ;;  %s334_s5 = inlined_call_operand.vmem [shape: f32[1,32], index: 5, kind: input, shape index: {}]   ;;  %s335_s6 = inlined_call_operand.vmem [shape: f32[32,32], index: 6, kind: output, shape index: {}]  }
   0x1   :  { %v219_v0 = vld [vmem:[%s329_s1 + $0x8] sm:$0xff]   ;;  %v220_v1 = vld [vmem:[%s329_s1] sm:$0xff]   ;;  %v26_v5 = vld [vmem:[%s330_s0 + $0x10] sm:$0xff] }
   0x2   :  { %211 = vmatprep.subr.bf16.mxu0 %v219_v0  ;;  %v24_v2 = vld [vmem:[%s330_s0] sm:$0xff]  ;;  %v25_v3 = vld [vmem:[%s330_s0 + $0x8] sm:$0xff]  ;;  %v27_v6 = vld [vmem:[%s330_s0 + $0x18] sm:$0xff] }
   0x3   :  { %212 = vmatpush3.bf16.msra.mxu0 %v219_v0  ;;  %v28_v4 = vpack.c.bf16 %v25_v3, %v24_v2  ;;  %v29_v7 = vpack.c.bf16 %v27_v6, %v26_v5  ;;  %v200_v8 = vld [vmem:[%s331_s2] ss:$0 sm:$0xff]  ;;  %v111_v10 = vld [vmem:[%s332_s3 + $0x10] sm:$0xff]  ;;  %v112_v17 = vld [vmem:[%s332_s3 + $0x18] sm:$0xff] }
   0x4   :  { %213 = vmatprep.subr.bf16.mxu0 %v220_v1  ;;  %v109_v13 = vld [vmem:[%s332_s3] sm:$0xff]  ;;  %v110_v22 = vld [vmem:[%s332_s3 + $0x8] sm:$0xff] }
   0x5   :  { %215 = vmatprep.mubr.msk.bf16.mxu0 %vm53_vm0, %v28_v4  ;;  %v205_v62 = vld [vmem:[%s333_s4] ss:$0 sm:$0xff] }
   0x6   :  { %v206_v0 = vld [vmem:[%s334_s5] ss:$0 sm:$0xff] }
   0x7   :  { %214 = vmatpush3.bf16.msra.mxu0 %v220_v1 }
   0xa   :  { %216 = vmatmul.mubr.msk.bf16.vlgmr.msra.gmra.mxu0 %vm53_vm0, %v29_v7 }
  0xca   :  { %v217_v9 = vpop.f32.mrf.mxu0 }
  0xcb   :  { %v103_v11 = vadd.f32 %v217_v9, %v200_v8 }
  0xcc   :  { %v94_v12 = vpop.f32.mrf.mxu0 }
  0xcd   :  { %v95_v14 = vadd.f32 %v200_v8, %v94_v12  ;;  %v115_v15 = vadd.f32 %v111_v10, %v103_v11 }
  0xce   :  { %v218_v16 = vpop.f32.mrf.mxu0 }
  0xcf   :  { %v106_v18 = vadd.f32 %v218_v16, %v200_v8  ;;  %v125_v19 = vsel %vm53_vm0, %v115_v15, 0.0  ;;  %v113_v20 = vadd.f32 %v109_v13, %v95_v14 }
  0xd0   :  { %126 = vadd.xlane.f32.xlu1 %v125_v19  ;;  %v97_v21 = vpop.f32.mrf.mxu0 }
  0xd1   :  { %v98_v23 = vadd.f32 %v200_v8, %v97_v21  ;;  %v119_v24 = vsel %vm53_vm0, %v113_v20, 0.0  ;;  %v116_v25 = vadd.f32 %v112_v17, %v106_v18 }
  0xd2   :  { %120 = vadd.xlane.f32.xlu0 %v119_v24 }
  0xd3   :  { %v128_v26 = vsel %vm53_vm0, %v116_v25, 0.0  ;;  %v114_v27 = vadd.f32 %v110_v22, %v98_v23 }
  0xd4   :  { %129 = vadd.xlane.f32.xlu1 %v128_v26 }
  0xd5   :  { %v122_v28 = vsel %vm53_vm0, %v114_v27, 0.0 }
  0xd6   :  { %123 = vadd.xlane.f32.xlu0 %v122_v28 }
 0x159   :  { %v127_v29 = vpop.xlane.xlu1 %126 }
 0x15a   :  { %v134_v30 = vmul.f32 0.03125, %v127_v29 }
 0x15b   :  { %v121_v31 = vpop.xlane.xlu0 %120 }
 0x15c   :  { %v132_v32 = vmul.f32 0.03125, %v121_v31  ;;  %v138_v34 = vsub.f32 %v115_v15, %v134_v30 }
 0x15d   :  { %v130_v33 = vpop.xlane.xlu1 %129 }
 0x15e   :  { %v136_v35 = vsub.f32 %v113_v20, %v132_v32  ;;  %v135_v36 = vmul.f32 0.03125, %v130_v33  ;;  %v142_v43 = vmul.f32 %v138_v34, %v138_v34 }
 0x15f   :  { %v124_v37 = vpop.xlane.xlu0 %123 }
 0x160   :  { %v133_v38 = vmul.f32 0.03125, %v124_v37  ;;  %v140_v39 = vmul.f32 %v136_v35, %v136_v35  ;;  %v139_v40 = vsub.f32 %v116_v25, %v135_v36  ;;  %v150_v45 = vsel %vm53_vm0, %v142_v43, 0.0 }
 0x162   :  { %v137_v41 = vsub.f32 %v114_v27, %v133_v38  ;;  %v144_v42 = vsel %vm53_vm0, %v140_v39, 0.0  ;;  %v143_v47 = vmul.f32 %v139_v40, %v139_v40 }
 0x163   :  { %145 = vadd.xlane.f32.xlu0 %v144_v42 }
 0x164   :  { %v141_v44 = vmul.f32 %v137_v41, %v137_v41  ;;  %v153_v48 = vsel %vm53_vm0, %v143_v47, 0.0 }
 0x166   :  { %v147_v46 = vsel %vm53_vm0, %v141_v44, 0.0 }
 0x167   :  { %151 = vadd.xlane.f32.xlu0 %v150_v45  ;;  %148 = vadd.xlane.f32.xlu1 %v147_v46 }
 0x16b   :  { %154 = vadd.xlane.f32.xlu1 %v153_v48 }
 0x1ec   :  { %v146_v49 = vpop.xlane.xlu0 %145 }
 0x1ed   :  { %v156_v50 = vmul.f32 0.03125, %v146_v49 }
 0x1ef   :  { %v160_v51 = vadd.f32 1e-05, %v156_v50 }
 0x1f0   :  { %v149_v52 = vpop.xlane.xlu1 %148  ;;  %v152_v53 = vpop.xlane.xlu0 %151 }
 0x1f1   :  { %221 = vrsqrt.f32 %v160_v51  ;;  %v157_v54 = vmul.f32 0.03125, %v149_v52  ;;  %v158_v55 = vmul.f32 0.03125, %v152_v53 }
 0x1f3   :  { %v161_v56 = vadd.f32 1e-05, %v157_v54  ;;  %v162_v57 = vadd.f32 1e-05, %v158_v55 }
 0x1f4   :  { %v155_v58 = vpop.xlane.xlu1 %154 }
 0x1f5   :  { %223 = vrsqrt.f32 %v161_v56  ;;  %v159_v59 = vmul.f32 0.03125, %v155_v58 }
 0x1f6   :  { %225 = vrsqrt.f32 %v162_v57 }
 0x1f7   :  { %v163_v60 = vadd.f32 1e-05, %v159_v59 }
 0x1f9   :  { %227 = vrsqrt.f32 %v163_v60 }
 0x1fe   :  { %v222_v61 = vpop.eup %221 }
 0x1ff   :  { %v168_v63 = vmul.f32 %v222_v61, %v136_v35 }
 0x201   :  { %v178_v1 = vmul.f32 %v205_v62, %v168_v63 }
 0x202   :  { %v224_v2 = vpop.eup %223 }
 0x203   :  { %v226_v3 = vpop.eup %225  ;;  %v188_v4 = vadd.f32 %v206_v0, %v178_v1  ;;  %v169_v5 = vmul.f32 %v224_v2, %v137_v41 }
 0x204   :  { %v170_v6 = vmul.f32 %v226_v3, %v138_v34 }
 0x205   :  { %192 = vst.msk [vmem:[%s335_s6] sm:$0xff] %vm53_vm0, %v188_v4  ;;  %v179_v7 = vmul.f32 %v205_v62, %v169_v5 }
 0x206   :  { %v228_v8 = vpop.eup %227  ;;  %v180_v9 = vmul.f32 %v205_v62, %v170_v6 }
 0x207   :  { %v189_v10 = vadd.f32 %v206_v0, %v179_v7  ;;  %v171_v11 = vmul.f32 %v228_v8, %v139_v40 }
 0x208   :  { %v190_v12 = vadd.f32 %v206_v0, %v180_v9 }
 0x209   :  { %193 = vst.msk [vmem:[%s335_s6 + $0x8] sm:$0xff] %vm53_vm0, %v189_v10  ;;  %v181_v13 = vmul.f32 %v205_v62, %v171_v11 }
 0x20a   :  { %194 = vst.msk [vmem:[%s335_s6 + $0x10] sm:$0xff] %vm53_vm0, %v190_v12 }
 0x20b   :  { %v191_v14 = vadd.f32 %v206_v0, %v181_v13 }
 0x20d   :  { %195 = vst.msk [vmem:[%s335_s6 + $0x18] sm:$0xff] %vm53_vm0, %v191_v14 }

// kernel: informer_forward.21
= control target key start
LH: loop header
LB: loop body
LE: loop exit
PB: predicated region body
PF: predicated region fallthrough
CT: control target
= control target key end

     0   :  { %vm44_vm0 = vcmask 261120   ;;  %vm100_vm1 = vcmask 785408   ;;  %s181_s1 = inlined_call_operand.vmem [shape: bf16[32,96], index: 1, kind: input, shape index: {}]   ;;  %s182_s0 = inlined_call_operand.vmem [shape: f32[32,32], index: 0, kind: input, shape index: {}]   ;;  %s183_s2 = inlined_call_operand.vmem [shape: f32[1,96], index: 2, kind: input, shape index: {}]   ;;  %s184_s3 = inlined_call_operand.vmem [shape: f32[32,96], index: 3, kind: output, shape index: {}]  }
   0x1   :  { %v126_v0 = vld [vmem:[%s181_s1 + $0x8] sm:$0xff]   ;;  %v127_v1 = vld [vmem:[%s181_s1] sm:$0xff]   ;;  %v17_v5 = vld [vmem:[%s182_s0 + $0x10] sm:$0xff] }
   0x2   :  { %118 = vmatprep.subr.bf16.mxu0 %v126_v0  ;;  %v15_v2 = vld [vmem:[%s182_s0] sm:$0xff]  ;;  %v16_v3 = vld [vmem:[%s182_s0 + $0x8] sm:$0xff]  ;;  %v18_v6 = vld [vmem:[%s182_s0 + $0x18] sm:$0xff] }
   0x3   :  { %119 = vmatpush3.bf16.msra.mxu0 %v126_v0  ;;  %v19_v4 = vpack.c.bf16 %v16_v3, %v15_v2  ;;  %v20_v7 = vpack.c.bf16 %v18_v6, %v17_v5  ;;  %v109_v8 = vld [vmem:[%s183_s2] ss:$0 sm:$0xff] }
   0x4   :  { %120 = vmatprep.subr.bf16.mxu0 %v127_v1 }
   0x5   :  { %122 = vmatprep.mubr.msk.bf16.mxu0 %vm44_vm0, %v19_v4 }
   0x7   :  { %121 = vmatpush3.bf16.msra.mxu0 %v127_v1 }
   0xa   :  { %123 = vmatmul.mubr.msk.bf16.vlgmr.msra.gmra.mxu0 %vm44_vm0, %v20_v7 }
  0xca   :  { %v124_v9 = vpop.f32.mrf.mxu0 }
  0xcb   :  { %v94_v10 = vadd.f32 %v124_v9, %v109_v8 }
  0xcc   :  { %v85_v11 = vpop.f32.mrf.mxu0 }
  0xcd   :  { %103 = vst.msk [vmem:[%s184_s3 + $0x10] sm:$0xff] %vm100_vm1, %v94_v10  ;;  %v86_v12 = vadd.f32 %v109_v8, %v85_v11 }
  0xce   :  { %v125_v13 = vpop.f32.mrf.mxu0 }
  0xcf   :  { %101 = vst.msk [vmem:[%s184_s3] sm:$0xff] %vm100_vm1, %v86_v12  ;;  %v97_v14 = vadd.f32 %v125_v13, %v109_v8 }
  0xd0   :  { %v88_v15 = vpop.f32.mrf.mxu0 }
  0xd1   :  { %104 = vst.msk [vmem:[%s184_s3 + $0x18] sm:$0xff] %vm100_vm1, %v97_v14  ;;  %v89_v16 = vadd.f32 %v109_v8, %v88_v15 }
  0xd3   :  { %102 = vst.msk [vmem:[%s184_s3 + $0x8] sm:$0xff] %vm100_vm1, %v89_v16 }

// kernel: informer_forward.22
= control target key start
LH: loop header
LB: loop body
LE: loop exit
PB: predicated region body
PF: predicated region fallthrough
CT: control target
= control target key end

     0   :  { %s874_s6 = smov 0   ;;  %s970_s0 = inlined_call_operand.vmem [shape: f32[2,16,96], index: 0, kind: input, shape index: {}]   ;;  %s971_s1 = inlined_call_operand.vmem [shape: f32[2,16,32], index: 1, kind: output, shape index: {}]  }
   0x1 LB: > { %s699_s7 = sadd.s32 4294967295, %s846_s6   ;;  %p703_p0 = scmp.ge.s32.totalorder %s846_s6, 1  ;;  %s846_s6 = sphi %s874_s6, %s11_s6  }
   0x2   : > { %p87_p1 = scmp.lt.s32.totalorder %s846_s6, 3 }
   0x4   : > { %p88_p2 = pnand %p703_p0, %p87_p1 }
   0x5   : > { %p107_p3 = scmp.lt.s32.totalorder (!%p88_p2), %s699_s7, 1  ;;  %s850_s12 = smov (!%p88_p2), 96  }
   0x6   : > { %91 = sbr.rel (%p88_p2) target bundleno = 1500 (0x5dc), region = 24  ;;  %s851_s13 = smov (!%p88_p2), 64  }
   0x7   : > { %s852_s14 = smov (!%p88_p2), 80   ;;  %s853_s15 = smov (!%p88_p2), 88  }
   0x8   : > { %s854_s16 = smov (!%p88_p2), 120   ;;  %s855_s17 = smov (!%p88_p2), 112  }
   0x9   : > { %s856_s18 = smov (!%p88_p2), 72   ;;  %s857_s19 = smov (!%p88_p2), 104  }
   0xa   : > { %s858_s20 = smov (!%p88_p2), 56   ;;  %s859_s21 = smov (!%p88_p2), 40  }
   0xb   : > { %v848_v0 = vmov 0.0   ;;  %vm849_vm0 = vmmov 0   ;;  %s973_s7 = smov (!%p107_p3, %s699_s7), 1  ;;  %vm127_vm1 = vcmask 64512   ;;  %vm175_vm2 = vcmask 130048   ;;  %s860_s22 = smov 48  }
   0xc   : > { %736 = vmatprep.subr.bf16.mxu0 %v848_v0  ;;  %738 = vmatprep.mubr.msk.bf16.mxu0 %vm849_vm0, %v848_v0  ;;  %s718_s8 = sshll.u32 %s973_s7, 4  ;;  %s861_s23 = smov 8   ;;  %vm638_vm3 = vcmask 195584   ;;  %vm641_vm4 = vcmask 261120  }
   0xd   : > { %742 = vmatprep.subr.bf16.mxu1 %v848_v0  ;;  %744 = vmatprep.mubr.msk.bf16.mxu1 %vm849_vm0, %v848_v0  ;;  %s111_s11 = scalar_lea.vmem %s970_s0, %s718_s8  ;;  %s862_s24 = smov 16  }
   0xe   : > { %v118_v1 = vld [vmem:[%s111_s11] sm:$0xff]  ;;  %v119_v2 = vld [vmem:[%s111_s11 + $0x8] sm:$0xff]  ;;  %s863_s25 = smov 24   ;;  %s116_s28 = scalar_lea.vmem %s971_s1, %s718_s8 }
   0xf   : > { %v896_v3 = vpack.c.bf16 %v119_v2, %v118_v1  ;;  %v120_v4 = vmul.f32 0.35355338, %v118_v1  ;;  %v121_v5 = vmul.f32 0.35355338, %v119_v2 }
  0x11   : > { %125 = vrot.lane.b32.xlu0 %v896_v3, %s850_s12  ;;  %v122_v6 = vpack.c.bf16 %v121_v5, %v120_v4 }
  0x83   : > { %v126_v7 = vpop.permute.xlu0 %125 }
  0x84   : > { %v132_v8 = vsel %vm127_vm1, %v126_v7, 0 }
  0x85   : > { %737 = vmatpush3.bf16.xpose.msra.mxu0 %v132_v8 }
  0x86   : > { %754 = vmatprep.subr.bf16.mxu0 %v848_v0 }
  0x8c   : > { %739 = vmatmul.mubr.msk.bf16.vlgmr.msra.gmra.mxu0 %vm127_vm1, %v122_v6 }
  0x8d   : > { %756 = vmatprep.mubr.msk.bf16.mxu0 %vm849_vm0, %v848_v0 }
 0x14c   : > { %v168_v9 = vpop.f32.mrf.mxu0 }
 0x14d   : > { %v176_v10 = vsel %vm175_vm2, %v168_v9, -inf }
 0x14e   : > { %177 = vmax.xlane.f32.xlu0 %v176_v10  ;;  %v740_v11 = vpop.f32.mrf.mxu0 }
 0x150   : > { %v171_v12 = vpop.f32.mrf.mxu0 }
 0x151   : > { %v179_v13 = vsel %vm175_vm2, %v171_v12, -inf }
 0x152   : > { %180 = vmax.xlane.f32.xlu1 %v179_v13  ;;  %v741_v14 = vpop.f32.mrf.mxu0 }
 0x163   : > { %199 = vrot.lane.b32.xlu1 %v896_v3, %s851_s13 }
 0x164   : > { %370 = vrot.lane.b32.xlu0 %v896_v3, %s852_s14 }
 0x1d7   : > { %v178_v15 = vpop.xlane.xlu0 %177 }
 0x1d8   : > { %v182_v16 = vsub.f32 %v168_v9, %v178_v15 }
 0x1da   : > { %v184_v17 = vmul.f32 1.442695, %v182_v16 }
 0x1db   : > { %v181_v18 = vpop.xlane.xlu1 %180  ;;  %v371_v36 = vpop.permute.xlu0 %370 }
 0x1dc   : > { %808 = vpow2.f32 %v184_v17  ;;  %v183_v19 = vsub.f32 %v171_v12, %v181_v18  ;;  %v376_v38 = vsel %vm127_vm1, %v371_v36, 0 }
 0x1de   : > { %v186_v20 = vmul.f32 1.442695, %v183_v19 }
 0x1df   : > { %v200_v21 = vpop.permute.xlu1 %199 }
 0x1e0   : > { %810 = vpow2.f32 %v186_v20  ;;  %743 = vmatpush3.bf16.msra.mxu1 %v200_v21 }
 0x1e1   : > { %748 = vmatprep.subr.bf16.mxu1 %v848_v0 }
 0x1e9   : > { %v809_v22 = vpop.eup %808 }
 0x1ea   : > { %v188_v23 = vsel %vm175_vm2, %v809_v22, 0.0 }
 0x1eb   : > { %189 = vadd.xlane.f32.xlu1 %v188_v23 }
 0x1ed   : > { %v811_v24 = vpop.eup %810 }
 0x1ee   : > { %v191_v25 = vsel %vm175_vm2, %v811_v24, 0.0 }
 0x1ef   : > { %192 = vadd.xlane.f32.xlu1 %v191_v25 }
 0x200   : > { %249 = vrot.lane.b32.xlu1 %v896_v3, %s853_s15 }
 0x204   : > { %247 = vrot.lane.b32.xlu1 %v122_v6, %s854_s16 }
 0x208   : > { %368 = vrot.lane.b32.xlu1 %v122_v6, %s855_s17 }
 0x20c   : > { %491 = vrot.lane.b32.xlu1 %v896_v3, %s856_s18 }
 0x210   : > { %489 = vrot.lane.b32.xlu1 %v122_v6, %s857_s19 }
 0x274   : > { %v190_v26 = vpop.xlane.xlu1 %189 }
 0x275   : > { %812 = vrcp.f32 %v190_v26 }
 0x278   : > { %v193_v27 = vpop.xlane.xlu1 %192 }
 0x279   : > { %814 = vrcp.f32 %v193_v27 }
 0x27c   : > { %v250_v30 = vpop.permute.xlu1 %249 }
 0x27d   : > { %v255_v33 = vsel %vm127_vm1, %v250_v30, 0 }
 0x280   : > { %v248_v35 = vpop.permute.xlu1 %247 }
 0x282   : > { %v813_v28 = vpop.eup %812 }
 0x283   : > { %v196_v31 = vmul.f32 %v813_v28, %v809_v22 }
 0x284   : > { %v369_v37 = vpop.permute.xlu1 %368 }
 0x286   : > { %v815_v29 = vpop.eup %814 }
 0x287   : > { %v197_v32 = vmul.f32 %v815_v29, %v811_v24 }
 0x288   : > { %v492_v39 = vpop.permute.xlu1 %491 }
 0x289   : > { %v198_v34 = vpack.c.bf16 %v197_v32, %v196_v31  ;;  %v497_v40 = vsel %vm127_vm1, %v492_v39, 0 }
 0x28b   : > { %745 = vmatmul.mubr.msk.bf16.vlgmr.msra.gmra.mxu1 %vm175_vm2, %v198_v34 }
 0x28c   : > { %749 = vmatpush3.bf16.xpose.msra.mxu1 %v255_v33  ;;  %750 = vmatprep.mubr.msk.bf16.mxu1 %vm849_vm0, %v848_v0  ;;  %v490_v41 = vpop.permute.xlu1 %489 }
 0x28d   : > { %760 = vmatprep.subr.bf16.mxu1 %v848_v0 }
 0x293   : > { %751 = vmatmul.mubr.msk.bf16.vlgmr.msra.gmra.mxu1 %vm127_vm1, %v248_v35 }
 0x294   : > { %761 = vmatpush3.bf16.xpose.msra.mxu1 %v376_v38  ;;  %762 = vmatprep.mubr.msk.bf16.mxu1 %vm849_vm0, %v848_v0 }
 0x295   : > { %772 = vmatprep.subr.bf16.mxu1 %v848_v0 }
 0x29b   : > { %763 = vmatmul.mubr.msk.bf16.vlgmr.msra.gmra.mxu1 %vm127_vm1, %v369_v37 }
 0x29c   : > { %773 = vmatpush3.bf16.xpose.msra.mxu1 %v497_v40  ;;  %774 = vmatprep.mubr.msk.bf16.mxu1 %vm849_vm0, %v848_v0 }
 0x2a3   : > { %775 = vmatmul.mubr.msk.bf16.vlgmr.msra.gmra.mxu1 %vm127_vm1, %v490_v41 }
 0x34b   : > { %v928_v42 = vpop.f32.mrf.mxu1 }
 0x34d   : > { %v746_v43 = vpop.f32.mrf.mxu1 }
 0x34f   : > { %v930_v44 = vpop.f32.mrf.mxu1 }
 0x351   : > { %v747_v45 = vpop.f32.mrf.mxu1 }
 0x353   : > { %v291_v46 = vpop.f32.mrf.mxu1 }
 0x354   : > { %v298_v47 = vsel %vm175_vm2, %v291_v46, -inf }
 0x355   : > { %299 = vmax.xlane.f32.xlu1 %v298_v47  ;;  %v752_v48 = vpop.f32.mrf.mxu1 }
 0x357   : > { %v294_v49 = vpop.f32.mrf.mxu1 }
 0x358   : > { %v301_v50 = vsel %vm175_vm2, %v294_v49, -inf }
 0x359   : > { %302 = vmax.xlane.f32.xlu0 %v301_v50  ;;  %v753_v51 = vpop.f32.mrf.mxu1 }
 0x35b   : > { %v412_v52 = vpop.f32.mrf.mxu1 }
 0x35c   : > { %v419_v53 = vsel %vm175_vm2, %v412_v52, -inf }
 0x35d   : > { %420 = vmax.xlane.f32.xlu1 %v419_v53  ;;  %v764_v54 = vpop.f32.mrf.mxu1 }
 0x35f   : > { %v415_v55 = vpop.f32.mrf.mxu1 }
 0x360   : > { %v422_v56 = vsel %vm175_vm2, %v415_v55, -inf }
 0x361   : > { %423 = vmax.xlane.f32.xlu0 %v422_v56  ;;  %v765_v57 = vpop.f32.mrf.mxu1 }
 0x363   : > { %v533_v58 = vpop.f32.mrf.mxu1 }
 0x364   : > { %v540_v59 = vsel %vm175_vm2, %v533_v58, -inf }
 0x365   : > { %541 = vmax.xlane.f32.xlu1 %v540_v59  ;;  %v776_v60 = vpop.f32.mrf.mxu1 }
 0x367   : > { %v536_v61 = vpop.f32.mrf.mxu1 }
 0x368   : > { %v543_v62 = vsel %vm175_vm2, %v536_v61, -inf }
 0x369   : > { %544 = vmax.xlane.f32.xlu0 %v543_v62  ;;  %v777_v63 = vpop.f32.mrf.mxu1 }
 0x376   : > { %321 = vrot.lane.b32.xlu1 %v896_v3, %s858_s20 }
 0x3de   : > { %v300_v1 = vpop.xlane.xlu1 %299 }
 0x3df   : > { %v304_v2 = vsub.f32 %v291_v46, %v300_v1 }
 0x3e1   : > { %v306_v4 = vmul.f32 1.442695, %v304_v2 }
 0x3e2   : > { %v303_v5 = vpop.xlane.xlu0 %302 }
 0x3e3   : > { %816 = vpow2.f32 %v306_v4  ;;  %v305_v6 = vsub.f32 %v294_v49, %v303_v5 }
 0x3e5   : > { %v308_v7 = vmul.f32 1.442695, %v305_v6 }
 0x3e6   : > { %v421_v8 = vpop.xlane.xlu1 %420 }
 0x3e7   : > { %818 = vpow2.f32 %v308_v7  ;;  %v425_v9 = vsub.f32 %v412_v52, %v421_v8 }
 0x3e9   : > { %v427_v10 = vmul.f32 1.442695, %v425_v9 }
 0x3ea   : > { %v424_v11 = vpop.xlane.xlu0 %423 }
 0x3eb   : > { %820 = vpow2.f32 %v427_v10  ;;  %v426_v12 = vsub.f32 %v415_v55, %v424_v11 }
 0x3ed   : > { %v429_v13 = vmul.f32 1.442695, %v426_v12 }
 0x3ee   : > { %v542_v14 = vpop.xlane.xlu1 %541 }
 0x3ef   : > { %822 = vpow2.f32 %v429_v13  ;;  %v546_v15 = vsub.f32 %v533_v58, %v542_v14 }
 0x3f0   : > { %v817_v16 = vpop.eup %816 }
 0x3f1   : > { %v548_v17 = vmul.f32 1.442695, %v546_v15  ;;  %v310_v18 = vsel %vm175_vm2, %v817_v16, 0.0 }
 0x3f2   : > { %v545_v19 = vpop.xlane.xlu0 %544  ;;  %311 = vadd.xlane.f32.xlu1 %v310_v18  ;;  %v322_v20 = vpop.permute.xlu1 %321 }
 0x3f3   : > { %824 = vpow2.f32 %v548_v17  ;;  %v547_v21 = vsub.f32 %v536_v61, %v545_v19  ;;  %755 = vmatpush3.bf16.msra.mxu0 %v322_v20 }
 0x3f4   : > { %v819_v22 = vpop.eup %818  ;;  %766 = vmatprep.subr.bf16.mxu0 %v848_v0 }
 0x3f5   : > { %v550_v23 = vmul.f32 1.442695, %v547_v21  ;;  %v313_v24 = vsel %vm175_vm2, %v819_v22, 0.0 }
 0x3f6   : > { %314 = vadd.xlane.f32.xlu0 %v313_v24 }
 0x3f7   : > { %826 = vpow2.f32 %v550_v23 }
 0x3f8   : > { %v821_v25 = vpop.eup %820 }
 0x3f9   : > { %v431_v26 = vsel %vm175_vm2, %v821_v25, 0.0 }
 0x3fa   : > { %432 = vadd.xlane.f32.xlu1 %v431_v26 }
 0x3fc   : > { %v823_v27 = vpop.eup %822 }
 0x3fd   : > { %v434_v28 = vsel %vm175_vm2, %v823_v27, 0.0 }
 0x3fe   : > { %435 = vadd.xlane.f32.xlu0 %v434_v28 }
 0x400   : > { %v825_v29 = vpop.eup %824 }
 0x401   : > { %v552_v30 = vsel %vm175_vm2, %v825_v29, 0.0 }
 0x402   : > { %553 = vadd.xlane.f32.xlu1 %v552_v30 }
 0x404   : > { %v827_v31 = vpop.eup %826 }
 0x405   : > { %v555_v32 = vsel %vm175_vm2, %v827_v31, 0.0 }
 0x406   : > { %556 = vadd.xlane.f32.xlu0 %v555_v32 }
 0x413   : > { %563 = vrot.lane.b32.xlu1 %v896_v3, %s859_s21 }
 0x41c   : > { %442 = vrot.lane.b32.xlu0 %v896_v3, %s860_s22 }
 0x47b   : > { %v312_v33 = vpop.xlane.xlu1 %311 }
 0x47c   : > { %828 = vrcp.f32 %v312_v33 }
 0x47f   : > { %v315_v34 = vpop.xlane.xlu0 %314 }
 0x480   : > { %830 = vrcp.f32 %v315_v34 }
 0x483   : > { %v433_v35 = vpop.xlane.xlu1 %432 }
 0x484   : > { %832 = vrcp.f32 %v433_v35 }
 0x487   : > { %v436_v36 = vpop.xlane.xlu0 %435 }
 0x488   : > { %834 = vrcp.f32 %v436_v36 }
 0x489   : > { %v829_v37 = vpop.eup %828 }
 0x48a   : > { %v318_v40 = vmul.f32 %v829_v37, %v817_v16 }
 0x48b   : > { %v554_v38 = vpop.xlane.xlu1 %553 }
 0x48c   : > { %836 = vrcp.f32 %v554_v38 }
 0x48d   : > { %v831_v39 = vpop.eup %830 }
 0x48e   : > { %v319_v41 = vmul.f32 %v831_v39, %v819_v22 }
 0x48f   : > { %v557_v43 = vpop.xlane.xlu0 %556  ;;  %v564_v51 = vpop.permute.xlu1 %563 }
 0x490   : > { %838 = vrcp.f32 %v557_v43  ;;  %v320_v45 = vpack.c.bf16 %v319_v41, %v318_v40 }
 0x491   : > { %v833_v3 = vpop.eup %832 }
 0x492   : > { %757 = vmatmul.mubr.msk.bf16.vlgmr.msra.gmra.mxu0 %vm175_vm2, %v320_v45  ;;  %v439_v48 = vmul.f32 %v833_v3, %v821_v25 }
 0x493   : > { %v443_v46 = vpop.permute.xlu0 %442  ;;  %768 = vmatprep.mubr.msk.bf16.mxu0 %vm849_vm0, %v848_v0 }
 0x494   : > { %767 = vmatpush3.bf16.msra.mxu0 %v443_v46 }
 0x495   : > { %v835_v47 = vpop.eup %834  ;;  %778 = vmatprep.subr.bf16.mxu0 %v848_v0 }
 0x496   : > { %v440_v49 = vmul.f32 %v835_v47, %v823_v27 }
 0x498   : > { %v441_v50 = vpack.c.bf16 %v440_v49, %v439_v48 }
 0x499   : > { %v837_v52 = vpop.eup %836 }
 0x49a   : > { %769 = vmatmul.mubr.msk.bf16.vlgmr.msra.gmra.mxu0 %vm175_vm2, %v441_v50  ;;  %v560_v54 = vmul.f32 %v837_v52, %v825_v29 }
 0x49b   : > { %779 = vmatpush3.bf16.msra.mxu0 %v564_v51  ;;  %780 = vmatprep.mubr.msk.bf16.mxu0 %vm849_vm0, %v848_v0 }
 0x49d   : > { %v839_v53 = vpop.eup %838 }
 0x49e   : > { %v561_v55 = vmul.f32 %v839_v53, %v827_v31 }
 0x4a0   : > { %v562_v56 = vpack.c.bf16 %v561_v55, %v560_v54 }
 0x4a2   : > { %781 = vmatmul.mubr.msk.bf16.vlgmr.msra.gmra.mxu0 %vm175_vm2, %v562_v56 }
 0x552   : > { %v361_v57 = vpop.f32.mrf.mxu0 }
 0x553   : > { %612 = vrot.lane.b32.xlu1 %v361_v57, %s861_s23 }
 0x554   : > { %v758_v58 = vpop.f32.mrf.mxu0 }
 0x556   : > { %v364_v59 = vpop.f32.mrf.mxu0 }
 0x557   : > { %614 = vrot.lane.b32.xlu0 %v364_v59, %s861_s23 }
 0x558   : > { %v759_v60 = vpop.f32.mrf.mxu0 }
 0x55a   : > { %v482_v61 = vpop.f32.mrf.mxu0 }
 0x55b   : > { %620 = vrot.lane.b32.xlu1 %v482_v61, %s862_s24 }
 0x55c   : > { %v770_v62 = vpop.f32.mrf.mxu0 }
 0x55e   : > { %v485_v63 = vpop.f32.mrf.mxu0 }
 0x55f   : > { %622 = vrot.lane.b32.xlu0 %v485_v63, %s862_s24 }
 0x560   : > { %v771_v0 = vpop.f32.mrf.mxu0 }
 0x562   : > { %v603_v1 = vpop.f32.mrf.mxu0 }
 0x563   : > { %628 = vrot.lane.b32.xlu1 %v603_v1, %s863_s25 }
 0x564   : > { %v782_v2 = vpop.f32.mrf.mxu0 }
 0x566   : > { %v606_v4 = vpop.f32.mrf.mxu0 }
 0x567   : > { %630 = vrot.lane.b32.xlu0 %v606_v4, %s863_s25 }
 0x568   : > { %v783_v5 = vpop.f32.mrf.mxu0 }
 0x5c5   : > { %v613_v6 = vpop.permute.xlu1 %612 }
 0x5c6   : > { %v634_v9 = vsel %vm127_vm1, %v928_v42, %v613_v6 }
 0x5c9   : > { %v615_v7 = vpop.permute.xlu0 %614 }
 0x5ca   : > { %v635_v14 = vsel %vm127_vm1, %v930_v44, %v615_v7 }
 0x5cd   : > { %v621_v8 = vpop.permute.xlu1 %620 }
 0x5ce   : > { %v636_v10 = vsel %vm175_vm2, %v634_v9, %v621_v8 }
 0x5d1   : > { %v623_v11 = vpop.permute.xlu0 %622 }
 0x5d2   : > { %v637_v15 = vsel %vm175_vm2, %v635_v14, %v623_v11 }
 0x5d5   : > { %v629_v12 = vpop.permute.xlu1 %628 }
 0x5d6   : > { %v639_v13 = vsel %vm638_vm3, %v636_v10, %v629_v12 }
 0x5d7   : > { %642 = vst.msk [vmem:[%s116_s28] sm:$0xff] %vm641_vm4, %v639_v13 }
 0x5d9   : > { %v631_v16 = vpop.permute.xlu0 %630 }
 0x5da   : > { %v640_v17 = vsel %vm638_vm3, %v637_v15, %v631_v16 }
 0x5db   : > { %643 = vst.msk [vmem:[%s116_s28 + $0x8] sm:$0xff] %vm641_vm4, %v640_v17 }
 0x5dc PF: > { %s11_s6 = sadd.s32 1, %s846_s6  }
 0x5dd   : > { %p8_p4 = scmp.ge.s32.totalorder %s11_s6, 4  }
 0x5df   :  { %10 = sbr.rel (!%p8_p4) target bundleno = 1 (0x1), region = 54 }

// kernel: informer_forward.35
= control target key start
LH: loop header
LB: loop body
LE: loop exit
PB: predicated region body
PF: predicated region fallthrough
CT: control target
= control target key end

     0   :  { %vm44_vm0 = vcmask 261120   ;;  %vm100_vm1 = vcmask 523264   ;;  %s181_s1 = inlined_call_operand.vmem [shape: bf16[32,64], index: 1, kind: input, shape index: {}]   ;;  %s182_s0 = inlined_call_operand.vmem [shape: f32[32,32], index: 0, kind: input, shape index: {}]   ;;  %s183_s2 = inlined_call_operand.vmem [shape: f32[1,64], index: 2, kind: input, shape index: {}]   ;;  %s184_s3 = inlined_call_operand.vmem [shape: f32[32,64], index: 3, kind: output, shape index: {}]  }
   0x1   :  { %v126_v0 = vld [vmem:[%s181_s1 + $0x8] sm:$0xff]   ;;  %v127_v1 = vld [vmem:[%s181_s1] sm:$0xff]   ;;  %v17_v5 = vld [vmem:[%s182_s0 + $0x10] sm:$0xff] }
   0x2   :  { %118 = vmatprep.subr.bf16.mxu0 %v126_v0  ;;  %v15_v2 = vld [vmem:[%s182_s0] sm:$0xff]  ;;  %v16_v3 = vld [vmem:[%s182_s0 + $0x8] sm:$0xff]  ;;  %v18_v6 = vld [vmem:[%s182_s0 + $0x18] sm:$0xff] }
   0x3   :  { %119 = vmatpush3.bf16.msra.mxu0 %v126_v0  ;;  %v19_v4 = vpack.c.bf16 %v16_v3, %v15_v2  ;;  %v20_v7 = vpack.c.bf16 %v18_v6, %v17_v5  ;;  %v109_v8 = vld [vmem:[%s183_s2] ss:$0 sm:$0xff] }
   0x4   :  { %120 = vmatprep.subr.bf16.mxu0 %v127_v1 }
   0x5   :  { %122 = vmatprep.mubr.msk.bf16.mxu0 %vm44_vm0, %v19_v4 }
   0x7   :  { %121 = vmatpush3.bf16.msra.mxu0 %v127_v1 }
   0xa   :  { %123 = vmatmul.mubr.msk.bf16.vlgmr.msra.gmra.mxu0 %vm44_vm0, %v20_v7 }
  0xca   :  { %v124_v9 = vpop.f32.mrf.mxu0 }
  0xcb   :  { %v94_v10 = vadd.f32 %v124_v9, %v109_v8 }
  0xcc   :  { %v85_v11 = vpop.f32.mrf.mxu0 }
  0xcd   :  { %103 = vst.msk [vmem:[%s184_s3 + $0x10] sm:$0xff] %vm100_vm1, %v94_v10  ;;  %v86_v12 = vadd.f32 %v109_v8, %v85_v11 }
  0xce   :  { %v125_v13 = vpop.f32.mrf.mxu0 }
  0xcf   :  { %101 = vst.msk [vmem:[%s184_s3] sm:$0xff] %vm100_vm1, %v86_v12  ;;  %v97_v14 = vadd.f32 %v125_v13, %v109_v8 }
  0xd0   :  { %v88_v15 = vpop.f32.mrf.mxu0 }
  0xd1   :  { %104 = vst.msk [vmem:[%s184_s3 + $0x18] sm:$0xff] %vm100_vm1, %v97_v14  ;;  %v89_v16 = vadd.f32 %v109_v8, %v88_v15 }
  0xd3   :  { %102 = vst.msk [vmem:[%s184_s3 + $0x8] sm:$0xff] %vm100_vm1, %v89_v16 }

// kernel: informer_forward.29
= control target key start
LH: loop header
LB: loop body
LE: loop exit
PB: predicated region body
PF: predicated region fallthrough
CT: control target
= control target key end

     0   :  { %vm20_vm0 = vcmask 261120   ;;  %s174_s0 = inlined_call_operand.vmem [shape: f32[32,32], index: 0, kind: input, shape index: {}]   ;;  %s175_s1 = inlined_call_operand.vmem [shape: f32[1,32], index: 1, kind: input, shape index: {}]   ;;  %s176_s2 = inlined_call_operand.vmem [shape: f32[1,32], index: 2, kind: input, shape index: {}]   ;;  %s177_s3 = inlined_call_operand.vmem [shape: f32[32,32], index: 3, kind: output, shape index: {}]  }
   0x1   :  { %v14_v0 = vld [vmem:[%s174_s0] sm:$0xff]  ;;  %v16_v1 = vld [vmem:[%s174_s0 + $0x10] sm:$0xff]  ;;  %v15_v2 = vld [vmem:[%s174_s0 + $0x8] sm:$0xff] }
   0x2   :  { %v21_v3 = vsel %vm20_vm0, %v14_v0, 0.0  ;;  %v27_v4 = vsel %vm20_vm0, %v16_v1, 0.0  ;;  %v17_v5 = vld [vmem:[%s174_s0 + $0x18] sm:$0xff]  ;;  %v24_v6 = vsel %vm20_vm0, %v15_v2, 0.0  ;;  %v102_v41 = vld [vmem:[%s175_s1] ss:$0 sm:$0xff] }
   0x3   :  { %22 = vadd.xlane.f32.xlu0 %v21_v3  ;;  %28 = vadd.xlane.f32.xlu1 %v27_v4  ;;  %v30_v7 = vsel %vm20_vm0, %v17_v5, 0.0  ;;  %v103_v43 = vld [vmem:[%s176_s2] ss:$0 sm:$0xff] }
   0x7   :  { %25 = vadd.xlane.f32.xlu0 %v24_v6  ;;  %31 = vadd.xlane.f32.xlu1 %v30_v7 }
  0x8c   :  { %v23_v8 = vpop.xlane.xlu0 %22  ;;  %v29_v9 = vpop.xlane.xlu1 %28 }
  0x8d   :  { %v34_v10 = vmul.f32 0.03125, %v23_v8  ;;  %v36_v11 = vmul.f32 0.03125, %v29_v9 }
  0x8f   :  { %v38_v12 = vsub.f32 %v14_v0, %v34_v10  ;;  %v40_v13 = vsub.f32 %v16_v1, %v36_v11 }
  0x90   :  { %v26_v14 = vpop.xlane.xlu0 %25  ;;  %v32_v15 = vpop.xlane.xlu1 %31 }
  0x91   :  { %v35_v16 = vmul.f32 0.03125, %v26_v14  ;;  %v37_v17 = vmul.f32 0.03125, %v32_v15  ;;  %v42_v18 = vmul.f32 %v38_v12, %v38_v12  ;;  %v44_v19 = vmul.f32 %v40_v13, %v40_v13 }
  0x93   :  { %v39_v20 = vsub.f32 %v15_v2, %v35_v16  ;;  %v41_v21 = vsub.f32 %v17_v5, %v37_v17  ;;  %v46_v22 = vsel %vm20_vm0, %v42_v18, 0.0  ;;  %v52_v23 = vsel %vm20_vm0, %v44_v19, 0.0 }
  0x94   :  { %47 = vadd.xlane.f32.xlu0 %v46_v22 }
  0x95   :  { %v43_v24 = vmul.f32 %v39_v20, %v39_v20  ;;  %v45_v25 = vmul.f32 %v41_v21, %v41_v21 }
  0x97   :  { %v49_v26 = vsel %vm20_vm0, %v43_v24, 0.0  ;;  %v55_v27 = vsel %vm20_vm0, %v45_v25, 0.0 }
  0x98   :  { %53 = vadd.xlane.f32.xlu0 %v52_v23  ;;  %50 = vadd.xlane.f32.xlu1 %v49_v26 }
  0x9c   :  { %56 = vadd.xlane.f32.xlu1 %v55_v27 }
 0x11d   :  { %v48_v28 = vpop.xlane.xlu0 %47 }
 0x11e   :  { %v58_v29 = vmul.f32 0.03125, %v48_v28 }
 0x120   :  { %v62_v30 = vadd.f32 1e-05, %v58_v29 }
 0x121   :  { %v51_v31 = vpop.xlane.xlu1 %50  ;;  %v54_v32 = vpop.xlane.xlu0 %53 }
 0x122   :  { %104 = vrsqrt.f32 %v62_v30  ;;  %v59_v33 = vmul.f32 0.03125, %v51_v31  ;;  %v60_v34 = vmul.f32 0.03125, %v54_v32 }
 0x124   :  { %v63_v35 = vadd.f32 1e-05, %v59_v33  ;;  %v64_v36 = vadd.f32 1e-05, %v60_v34 }
 0x125   :  { %v57_v37 = vpop.xlane.xlu1 %56 }
 0x126   :  { %106 = vrsqrt.f32 %v63_v35  ;;  %v61_v38 = vmul.f32 0.03125, %v57_v37 }
 0x127   :  { %108 = vrsqrt.f32 %v64_v36 }
 0x128   :  { %v65_v39 = vadd.f32 1e-05, %v61_v38 }
 0x12a   :  { %110 = vrsqrt.f32 %v65_v39 }
 0x12f   :  { %v105_v40 = vpop.eup %104 }
 0x130   :  { %v70_v42 = vmul.f32 %v105_v40, %v38_v12 }
 0x132   :  { %v80_v44 = vmul.f32 %v102_v41, %v70_v42 }
 0x133   :  { %v107_v45 = vpop.eup %106 }
 0x134   :  { %v109_v46 = vpop.eup %108  ;;  %v90_v47 = vadd.f32 %v103_v43, %v80_v44  ;;  %v71_v48 = vmul.f32 %v107_v45, %v39_v20 }
 0x135   :  { %v72_v49 = vmul.f32 %v109_v46, %v40_v13 }
 0x136   :  { %94 = vst.msk [vmem:[%s177_s3] sm:$0xff] %vm20_vm0, %v90_v47  ;;  %v81_v50 = vmul.f32 %v102_v41, %v71_v48 }
 0x137   :  { %v111_v51 = vpop.eup %110  ;;  %v82_v52 = vmul.f32 %v102_v41, %v72_v49 }
 0x138   :  { %v91_v53 = vadd.f32 %v103_v43, %v81_v50  ;;  %v73_v54 = vmul.f32 %v111_v51, %v41_v21 }
 0x139   :  { %v92_v55 = vadd.f32 %v103_v43, %v82_v52 }
 0x13a   :  { %95 = vst.msk [vmem:[%s177_s3 + $0x8] sm:$0xff] %vm20_vm0, %v91_v53  ;;  %v83_v56 = vmul.f32 %v102_v41, %v73_v54 }
 0x13b   :  { %96 = vst.msk [vmem:[%s177_s3 + $0x10] sm:$0xff] %vm20_vm0, %v92_v55 }
 0x13c   :  { %v93_v57 = vadd.f32 %v103_v43, %v83_v56 }
 0x13e   :  { %97 = vst.msk [vmem:[%s177_s3 + $0x18] sm:$0xff] %vm20_vm0, %v93_v57 }

// kernel: informer_forward.24
= control target key start
LH: loop header
LB: loop body
LE: loop exit
PB: predicated region body
PF: predicated region fallthrough
CT: control target
= control target key end

     0   :  { %vm56_vm0 = vcmask 261120   ;;  %s603_s1 = inlined_call_operand.vmem [shape: bf16[32,32], index: 1, kind: input, shape index: {}]   ;;  %s604_s0 = inlined_call_operand.vmem [shape: f32[32,32], index: 0, kind: input, shape index: {}]   ;;  %s605_s3 = inlined_call_operand.vmem [shape: bf16[32,32], index: 3, kind: input, shape index: {}]   ;;  %s606_s2 = inlined_call_operand.vmem [shape: f32[1,32], index: 2, kind: input, shape index: {}]   ;;  %s607_s4 = inlined_call_operand.vmem [shape: f32[1,32], index: 4, kind: input, shape index: {}]   ;;  %s608_s5 = inlined_call_operand.vmem [shape: f32[1,32], index: 5, kind: input, shape index: {}]   ;;  %s609_s6 = inlined_call_operand.vmem [shape: f32[1,32], index: 6, kind: input, shape index: {}]   ;;  %s610_s7 = inlined_call_operand.vmem [shape: f32[32,32], index: 7, kind: output, shape index: {}]  }
   0x1   :  { %v423_v0 = vld [vmem:[%s603_s1 + $0x8] sm:$0xff]   ;;  %v424_v1 = vld [vmem:[%s603_s1] sm:$0xff]   ;;  %v512_v5 = vld [vmem:[%s604_s0 + $0x10] sm:$0xff] }
   0x2   :  { %407 = vmatprep.subr.bf16.mxu0 %v423_v0  ;;  %v500_v2 = vld [vmem:[%s604_s0] sm:$0xff]  ;;  %v505_v3 = vld [vmem:[%s604_s0 + $0x8] sm:$0xff]  ;;  %v517_v6 = vld [vmem:[%s604_s0 + $0x18] sm:$0xff] }
   0x3   :  { %408 = vmatpush3.bf16.msra.mxu0 %v423_v0  ;;  %v31_v4 = vpack.c.bf16 %v505_v3, %v500_v2  ;;  %v32_v7 = vpack.c.bf16 %v517_v6, %v512_v5  ;;  %v425_v8 = vld [vmem:[%s605_s3 + $0x8] sm:$0xff]   ;;  %v426_v9 = vld [vmem:[%s605_s3] sm:$0xff]  }
   0x4   :  { %409 = vmatprep.subr.bf16.mxu0 %v424_v1  ;;  %415 = vmatprep.subr.bf16.mxu1 %v425_v8  ;;  %v387_v10 = vld [vmem:[%s606_s2] ss:$0 sm:$0xff] }
   0x5   :  { %411 = vmatprep.mubr.msk.bf16.mxu0 %vm56_vm0, %v31_v4  ;;  %416 = vmatpush3.bf16.msra.mxu1 %v425_v8 }
   0x6   :  { %417 = vmatprep.subr.bf16.mxu1 %v426_v9 }
   0x7   :  { %410 = vmatpush3.bf16.msra.mxu0 %v424_v1 }
   0x9   :  { %418 = vmatpush3.bf16.msra.mxu1 %v426_v9 }
   0xa   :  { %412 = vmatmul.mubr.msk.bf16.vlgmr.msra.gmra.mxu0 %vm56_vm0, %v32_v7 }
  0xca   :  { %v413_v11 = vpop.f32.mrf.mxu0 }
  0xcb   :  { %v532_v12 = vadd.f32 %v413_v11, %v387_v10 }
  0xcc   :  { %v97_v13 = vpop.f32.mrf.mxu0 }
  0xcd   :  { %v535_v14 = vmul.f32 0.70710677, %v532_v12  ;;  %v537_v15 = vadd.f32 %v387_v10, %v97_v13 }
  0xce   :  { %v414_v16 = vpop.f32.mrf.mxu0 }
  0xcf   :  { %v122_v17 = vand.u32 2147483647, %v535_v14  ;;  %v541_v18 = vmul.f32 0.70710677, %v537_v15  ;;  %v543_v19 = vadd.f32 %v414_v16, %v387_v10  ;;  %vm202_vm2 = vcmp.lt.f32.partialorder %v535_v14, 0.0 }
  0xd0   :  { %v100_v20 = vpop.f32.mrf.mxu0 }
  0xd1   :  { %v126_v21 = vmul.f32 0.3275911, %v122_v17  ;;  %v120_v22 = vand.u32 2147483647, %v541_v18  ;;  %v547_v23 = vmul.f32 0.70710677, %v543_v19  ;;  %v549_v24 = vadd.f32 %v387_v10, %v100_v20 }
  0xd2   :  { %v178_v35 = vsub.f32 0.0, %v122_v17  ;;  %vm200_vm1 = vcmp.lt.f32.partialorder %v541_v18, 0.0  ;;  %v112_v18 = vmul.f32 0.5, %v537_v15 }
  0xd3   :  { %v130_v25 = vadd.f32 1.0, %v126_v21  ;;  %v124_v26 = vmul.f32 0.3275911, %v120_v22  ;;  %v123_v27 = vand.u32 2147483647, %v547_v23  ;;  %v176_v36 = vsub.f32 0.0, %v120_v22 }
  0xd4   :  { %v553_v28 = vmul.f32 0.70710677, %v549_v24  ;;  %v182_v37 = vmul.f32 %v178_v35, %v122_v17  ;;  %vm203_vm3 = vcmp.lt.f32.partialorder %v547_v23, 0.0  ;;  %v114_v23 = vmul.f32 0.5, %v532_v12 }
  0xd5   :  { %427 = vrcp.f32 %v130_v25  ;;  %v128_v29 = vadd.f32 1.0, %v124_v26  ;;  %v127_v30 = vmul.f32 0.3275911, %v123_v27  ;;  %v179_v38 = vsub.f32 0.0, %v123_v27 }
  0xd6   :  { %v121_v31 = vand.u32 2147483647, %v553_v28  ;;  %v180_v40 = vmul.f32 %v176_v36, %v120_v22  ;;  %v188_v42 = vmul.f32 1.442695, %v182_v37  ;;  %vm201_vm4 = vcmp.lt.f32.partialorder %v553_v28, 0.0 }
  0xd7   :  { %429 = vrcp.f32 %v128_v29  ;;  %v131_v32 = vadd.f32 1.0, %v127_v30  ;;  %v183_v44 = vmul.f32 %v179_v38, %v123_v27 }
  0xd8   :  { %v125_v33 = vmul.f32 0.3275911, %v121_v31  ;;  %v177_v43 = vsub.f32 0.0, %v121_v31  ;;  %v184_v47 = vmul.f32 1.442695, %v180_v40 }
  0xd9   :  { %431 = vrcp.f32 %v131_v32  ;;  %v190_v53 = vmul.f32 1.442695, %v183_v44 }
  0xda   :  { %v129_v34 = vadd.f32 1.0, %v125_v33  ;;  %v181_v51 = vmul.f32 %v177_v43, %v121_v31 }
  0xdc   :  { %433 = vrcp.f32 %v129_v34  ;;  %v186_v60 = vmul.f32 1.442695, %v181_v51 }
  0xdd   :  { %435 = vpow2.f32 %v188_v42 }
  0xde   :  { %437 = vpow2.f32 %v184_v47 }
  0xdf   :  { %439 = vpow2.f32 %v190_v53 }
  0xe0   :  { %441 = vpow2.f32 %v186_v60 }
  0xe2   :  { %v428_v39 = vpop.eup %427 }
  0xe3   :  { %v142_v41 = vmul.f32 1.0614054, %v428_v39 }
  0xe4   :  { %v430_v45 = vpop.eup %429 }
  0xe5   :  { %v146_v46 = vadd.f32 -1.4531521, %v142_v41  ;;  %v140_v48 = vmul.f32 1.0614054, %v430_v45 }
  0xe6   :  { %v432_v49 = vpop.eup %431 }
  0xe7   :  { %v150_v50 = vmul.f32 %v428_v39, %v146_v46  ;;  %v143_v52 = vmul.f32 1.0614054, %v432_v49  ;;  %v144_v54 = vadd.f32 -1.4531521, %v140_v48 }
  0xe9   :  { %v154_v55 = vadd.f32 1.4214138, %v150_v50  ;;  %v434_v56 = vpop.eup %433  ;;  %v147_v57 = vadd.f32 -1.4531521, %v143_v52  ;;  %v148_v58 = vmul.f32 %v430_v45, %v144_v54 }
  0xea   :  { %v141_v61 = vmul.f32 1.0614054, %v434_v56  ;;  %v436_v25 = vpop.eup %435 }
  0xeb   :  { %v158_v59 = vmul.f32 %v428_v39, %v154_v55  ;;  %v151_v62 = vmul.f32 %v432_v49, %v147_v57  ;;  %v152_v63 = vadd.f32 1.4214138, %v148_v58  ;;  %v438_v33 = vpop.eup %437  ;;  %v115_v57 = vmul.f32 0.5, %v543_v19  ;;  %v392_v19 = vld [vmem:[%s607_s4] ss:$0 sm:$0xff] }
  0xec   :  { %v145_v1 = vadd.f32 -1.4531521, %v141_v61  ;;  %v440_v38 = vpop.eup %439 }
  0xed   :  { %v162_v0 = vadd.f32 -0.28449672, %v158_v59  ;;  %v155_v4 = vadd.f32 1.4214138, %v151_v62  ;;  %v156_v7 = vmul.f32 %v430_v45, %v152_v63  ;;  %v442_v44 = vpop.eup %441  ;;  %v113_v59 = vmul.f32 0.5, %v549_v24 }
  0xee   :  { %v149_v9 = vmul.f32 %v434_v56, %v145_v1 }
  0xef   :  { %v166_v8 = vmul.f32 %v428_v39, %v162_v0  ;;  %v159_v10 = vmul.f32 %v432_v49, %v155_v4  ;;  %v160_v11 = vadd.f32 -0.28449672, %v156_v7 }
  0xf0   :  { %v153_v16 = vadd.f32 1.4214138, %v149_v9 }
  0xf1   :  { %v170_v13 = vadd.f32 0.2548296, %v166_v8  ;;  %v163_v17 = vadd.f32 -0.28449672, %v159_v10  ;;  %v164_v20 = vmul.f32 %v430_v45, %v160_v11 }
  0xf2   :  { %v157_v22 = vmul.f32 %v434_v56, %v153_v16 }
  0xf3   :  { %v174_v21 = vmul.f32 %v428_v39, %v170_v13  ;;  %v167_v26 = vmul.f32 %v432_v49, %v163_v17  ;;  %v168_v27 = vadd.f32 0.2548296, %v164_v20 }
  0xf4   :  { %v161_v30 = vadd.f32 -0.28449672, %v157_v22 }
  0xf5   :  { %v194_v29 = vmul.f32 %v436_v25, %v174_v21  ;;  %v171_v31 = vadd.f32 0.2548296, %v167_v26  ;;  %v172_v32 = vmul.f32 %v430_v45, %v168_v27 }
  0xf6   :  { %v165_v34 = vmul.f32 %v434_v56, %v161_v30 }
  0xf7   :  { %v198_v35 = vsub.f32 1.0, %v194_v29  ;;  %v175_v36 = vmul.f32 %v432_v49, %v171_v31  ;;  %v192_v37 = vmul.f32 %v438_v33, %v172_v32 }
  0xf8   :  { %v169_v40 = vadd.f32 0.2548296, %v165_v34 }
  0xf9   :  { %v195_v41 = vmul.f32 %v440_v38, %v175_v36  ;;  %v196_v42 = vsub.f32 1.0, %v192_v37  ;;  %v206_v39 = vsub.f32 0.0, %v198_v35 }
  0xfa   :  { %v173_v43 = vmul.f32 %v434_v56, %v169_v40 }
  0xfb   :  { %v199_v46 = vsub.f32 1.0, %v195_v41  ;;  %v204_v47 = vsub.f32 0.0, %v196_v42  ;;  %v210_v51 = vsel %vm202_vm2, %v206_v39, %v198_v35 }
  0xfc   :  { %v193_v48 = vmul.f32 %v442_v44, %v173_v43  ;;  %v214_v56 = vadd.f32 1.0, %v210_v51 }
  0xfd   :  { %v207_v50 = vsub.f32 0.0, %v199_v46  ;;  %v208_v49 = vsel %vm200_vm1, %v204_v47, %v196_v42 }
  0xfe   :  { %v197_v45 = vsub.f32 1.0, %v193_v48  ;;  %v212_v55 = vadd.f32 1.0, %v208_v49  ;;  %v218_v63 = vmul.f32 %v214_v56, %v114_v23 }
  0xff   :  { %v211_v52 = vsel %vm203_vm3, %v207_v50, %v199_v46 }
 0x100   :  { %v215_v53 = vadd.f32 1.0, %v211_v52  ;;  %v205_v54 = vsub.f32 0.0, %v197_v45  ;;  %v216_v61 = vmul.f32 %v212_v55, %v112_v18  ;;  %v397_v55 = vld [vmem:[%s608_s5] ss:$0 sm:$0xff] }
 0x102   :  { %v209_v58 = vsel %vm201_vm4, %v205_v54, %v197_v45  ;;  %v219_v60 = vmul.f32 %v215_v53, %v115_v57  ;;  %v398_v57 = vld [vmem:[%s609_s6] ss:$0 sm:$0xff] }
 0x103   :  { %v213_v14 = vadd.f32 1.0, %v209_v58 }
 0x104   :  { %v221_v1 = vpack.c.bf16 %v219_v60, %v218_v63 }
 0x105   :  { %v217_v62 = vmul.f32 %v213_v14, %v113_v59 }
 0x107   :  { %v220_v0 = vpack.c.bf16 %v217_v62, %v216_v61 }
 0x109   :  { %419 = vmatprep.mubr.msk.bf16.mxu1 %vm56_vm0, %v220_v0 }
 0x10a   :  { %420 = vmatmul.mubr.msk.bf16.vlgmr.msra.gmra.mxu1 %vm56_vm0, %v221_v1 }
 0x1ca   :  { %v421_v15 = vpop.f32.mrf.mxu1 }
 0x1cb   :  { %v294_v28 = vadd.f32 %v421_v15, %v392_v19 }
 0x1cc   :  { %v285_v24 = vpop.f32.mrf.mxu1 }
 0x1cd   :  { %v286_v4 = vadd.f32 %v392_v19, %v285_v24  ;;  %v302_v12 = vadd.f32 %v294_v28, %v512_v5 }
 0x1ce   :  { %v422_v7 = vpop.f32.mrf.mxu1 }
 0x1cf   :  { %v297_v8 = vadd.f32 %v422_v7, %v392_v19  ;;  %v312_v9 = vsel %vm56_vm0, %v302_v12, 0.0  ;;  %v300_v10 = vadd.f32 %v286_v4, %v500_v2 }
 0x1d0   :  { %313 = vadd.xlane.f32.xlu1 %v312_v9  ;;  %v288_v11 = vpop.f32.mrf.mxu1 }
 0x1d1   :  { %v289_v13 = vadd.f32 %v392_v19, %v288_v11  ;;  %v306_v16 = vsel %vm56_vm0, %v300_v10, 0.0  ;;  %v303_v17 = vadd.f32 %v297_v8, %v517_v6 }
 0x1d2   :  { %307 = vadd.xlane.f32.xlu0 %v306_v16 }
 0x1d3   :  { %v315_v20 = vsel %vm56_vm0, %v303_v17, 0.0  ;;  %v301_v21 = vadd.f32 %v289_v13, %v505_v3 }
 0x1d4   :  { %316 = vadd.xlane.f32.xlu1 %v315_v20 }
 0x1d5   :  { %v309_v5 = vsel %vm56_vm0, %v301_v21, 0.0 }
 0x1d6   :  { %310 = vadd.xlane.f32.xlu0 %v309_v5 }
 0x259   :  { %v314_v22 = vpop.xlane.xlu1 %313 }
 0x25a   :  { %v321_v25 = vmul.f32 0.03125, %v314_v22 }
 0x25b   :  { %v308_v26 = vpop.xlane.xlu0 %307 }
 0x25c   :  { %v319_v2 = vmul.f32 0.03125, %v308_v26  ;;  %v325_v29 = vsub.f32 %v302_v12, %v321_v25 }
 0x25d   :  { %v317_v27 = vpop.xlane.xlu1 %316 }
 0x25e   :  { %v323_v30 = vsub.f32 %v300_v10, %v319_v2  ;;  %v322_v31 = vmul.f32 0.03125, %v317_v27  ;;  %v329_v3 = vmul.f32 %v325_v29, %v325_v29 }
 0x25f   :  { %v311_v32 = vpop.xlane.xlu0 %310 }
 0x260   :  { %v320_v33 = vmul.f32 0.03125, %v311_v32  ;;  %v327_v6 = vmul.f32 %v323_v30, %v323_v30  ;;  %v326_v34 = vsub.f32 %v303_v17, %v322_v31  ;;  %v337_v38 = vsel %vm56_vm0, %v329_v3, 0.0 }
 0x262   :  { %v324_v35 = vsub.f32 %v301_v21, %v320_v33  ;;  %v331_v36 = vsel %vm56_vm0, %v327_v6, 0.0  ;;  %v330_v41 = vmul.f32 %v326_v34, %v326_v34 }
 0x263   :  { %332 = vadd.xlane.f32.xlu0 %v331_v36 }
 0x264   :  { %v328_v37 = vmul.f32 %v324_v35, %v324_v35  ;;  %v340_v42 = vsel %vm56_vm0, %v330_v41, 0.0 }
 0x266   :  { %v334_v40 = vsel %vm56_vm0, %v328_v37, 0.0 }
 0x267   :  { %338 = vadd.xlane.f32.xlu0 %v337_v38  ;;  %335 = vadd.xlane.f32.xlu1 %v334_v40 }
 0x26b   :  { %341 = vadd.xlane.f32.xlu1 %v340_v42 }
 0x2ec   :  { %v333_v43 = vpop.xlane.xlu0 %332 }
 0x2ed   :  { %v343_v44 = vmul.f32 0.03125, %v333_v43 }
 0x2ef   :  { %v347_v39 = vadd.f32 1e-05, %v343_v44 }
 0x2f0   :  { %v336_v46 = vpop.xlane.xlu1 %335  ;;  %v339_v47 = vpop.xlane.xlu0 %338 }
 0x2f1   :  { %443 = vrsqrt.f32 %v347_v39  ;;  %v344_v48 = vmul.f32 0.03125, %v336_v46  ;;  %v345_v50 = vmul.f32 0.03125, %v339_v47 }
 0x2f3   :  { %v348_v45 = vadd.f32 1e-05, %v344_v48  ;;  %v349_v49 = vadd.f32 1e-05, %v345_v50 }
 0x2f4   :  { %v342_v51 = vpop.xlane.xlu1 %341 }
 0x2f5   :  { %445 = vrsqrt.f32 %v348_v45  ;;  %v346_v52 = vmul.f32 0.03125, %v342_v51 }
 0x2f6   :  { %447 = vrsqrt.f32 %v349_v49 }
 0x2f7   :  { %v350_v53 = vadd.f32 1e-05, %v346_v52 }
 0x2f9   :  { %449 = vrsqrt.f32 %v350_v53 }
 0x2fe   :  { %v444_v54 = vpop.eup %443 }
 0x2ff   :  { %v355_v56 = vmul.f32 %v444_v54, %v323_v30 }
 0x301   :  { %v365_v58 = vmul.f32 %v397_v55, %v355_v56 }
 0x302   :  { %v446_v18 = vpop.eup %445 }
 0x303   :  { %v448_v59 = vpop.eup %447  ;;  %v375_v14 = vadd.f32 %v398_v57, %v365_v58  ;;  %v356_v23 = vmul.f32 %v446_v18, %v324_v35 }
 0x304   :  { %v357_v60 = vmul.f32 %v448_v59, %v325_v29 }
 0x305   :  { %379 = vst.msk [vmem:[%s610_s7] sm:$0xff] %vm56_vm0, %v375_v14  ;;  %v366_v61 = vmul.f32 %v397_v55, %v356_v23 }
 0x306   :  { %v450_v62 = vpop.eup %449  ;;  %v367_v63 = vmul.f32 %v397_v55, %v357_v60 }
 0x307   :  { %v376_v0 = vadd.f32 %v398_v57, %v366_v61  ;;  %v358_v1 = vmul.f32 %v450_v62, %v326_v34 }
 0x308   :  { %v377_v19 = vadd.f32 %v398_v57, %v367_v63 }
 0x309   :  { %380 = vst.msk [vmem:[%s610_s7 + $0x8] sm:$0xff] %vm56_vm0, %v376_v0  ;;  %v368_v15 = vmul.f32 %v397_v55, %v358_v1 }
 0x30a   :  { %381 = vst.msk [vmem:[%s610_s7 + $0x10] sm:$0xff] %vm56_vm0, %v377_v19 }
 0x30b   :  { %v378_v28 = vadd.f32 %v398_v57, %v368_v15 }
 0x30d   :  { %382 = vst.msk [vmem:[%s610_s7 + $0x18] sm:$0xff] %vm56_vm0, %v378_v28 }

// kernel: informer_forward.32
= control target key start
LH: loop header
LB: loop body
LE: loop exit
PB: predicated region body
PF: predicated region fallthrough
CT: control target
= control target key end

     0   :  { %s889_s6 = smov 0   ;;  %s1020_s0 = inlined_call_operand.vmem [shape: f32[2,16,96], index: 0, kind: input, shape index: {}]   ;;  %s1021_s1 = inlined_call_operand.vmem [shape: f32[2,16,32], index: 1, kind: output, shape index: {}]  }
   0x1 LB: > { %s714_s7 = sadd.s32 4294967295, %s861_s6   ;;  %p718_p0 = scmp.ge.s32.totalorder %s861_s6, 1  ;;  %s861_s6 = sphi %s889_s6, %s11_s6  }
   0x2   : > { %p87_p1 = scmp.lt.s32.totalorder %s861_s6, 3 }
   0x4   : > { %p88_p2 = pnand %p718_p0, %p87_p1 }
   0x5   : > { %p107_p3 = scmp.lt.s32.totalorder (!%p88_p2), %s714_s7, 1  ;;  %s865_s12 = smov (!%p88_p2), 96  }
   0x6   : > { %91 = sbr.rel (%p88_p2) target bundleno = 1502 (0x5de), region = 24  ;;  %s866_s13 = smov (!%p88_p2), 64  }
   0x7   : > { %s867_s14 = smov (!%p88_p2), 80   ;;  %s868_s15 = smov (!%p88_p2), 88  }
   0x8   : > { %s869_s16 = smov (!%p88_p2), 120   ;;  %s870_s17 = smov (!%p88_p2), 112  }
   0x9   : > { %s871_s18 = smov (!%p88_p2), 72   ;;  %s872_s19 = smov (!%p88_p2), 104  }
   0xa   : > { %s873_s20 = smov (!%p88_p2), 56   ;;  %s874_s21 = smov (!%p88_p2), 40  }
   0xb   : > { %v863_v0 = vmov 0.0   ;;  %vm864_vm0 = vmmov 0   ;;  %s1023_s7 = smov (!%p107_p3, %s714_s7), 1  ;;  %vm134_vm1 = vcmask 64512   ;;  %v124_v9 = vlaneseq  ;;  %s875_s22 = smov 48  }
   0xc   : > { %751 = vmatprep.subr.bf16.mxu0 %v863_v0  ;;  %753 = vmatprep.mubr.msk.bf16.mxu0 %vm864_vm0, %v863_v0  ;;  %s733_s8 = sshll.u32 %s1023_s7, 4  ;;  %vm184_vm3 = vcmask 130048   ;;  %s876_s23 = smov 8   ;;  %vm653_vm5 = vcmask 195584   ;;  %vm656_vm6 = vcmask 261120  }
   0xd   : > { %757 = vmatprep.subr.bf16.mxu1 %v863_v0  ;;  %759 = vmatprep.mubr.msk.bf16.mxu1 %vm864_vm0, %v863_v0  ;;  %s111_s11 = scalar_lea.vmem %s1020_s0, %s733_s8  ;;  %v919_v10 = vshrl.u32 %v124_v9, 7  ;;  %v921_v11 = vand.u32 127, %v124_v9  ;;  %s877_s24 = smov 16  }
   0xe   : > { %v118_v1 = vld [vmem:[%s111_s11] sm:$0xff]  ;;  %v119_v2 = vld [vmem:[%s111_s11 + $0x8] sm:$0xff]  ;;  %s878_s25 = smov 24   ;;  %s116_s28 = scalar_lea.vmem %s1021_s1, %s733_s8 }
   0xf   : > { %v911_v3 = vpack.c.bf16 %v119_v2, %v118_v1  ;;  %v120_v4 = vmul.f32 0.35355338, %v118_v1  ;;  %v121_v5 = vmul.f32 0.35355338, %v119_v2  ;;  %vm129_vm2 = vcmp.gt.s32.totalorder %v921_v11, %v919_v10 }
  0x10   : > { %v926_v12 = vadd.s32 8, %v919_v10 }
  0x11   : > { %132 = vrot.lane.b32.xlu0 %v911_v3, %s865_s12  ;;  %v122_v6 = vpack.c.bf16 %v121_v5, %v120_v4 }
  0x12   : > { %vm130_vm4 = vcmp.gt.s32.totalorder %v921_v11, %v926_v12 }
  0x83   : > { %v133_v7 = vpop.permute.xlu0 %132 }
  0x84   : > { %v139_v8 = vsel %vm134_vm1, %v133_v7, 0 }
  0x85   : > { %752 = vmatpush3.bf16.xpose.msra.mxu0 %v139_v8 }
  0x86   : > { %769 = vmatprep.subr.bf16.mxu0 %v863_v0 }
  0x8c   : > { %754 = vmatmul.mubr.msk.bf16.vlgmr.msra.gmra.mxu0 %vm134_vm1, %v122_v6 }
  0x8d   : > { %771 = vmatprep.mubr.msk.bf16.mxu0 %vm864_vm0, %v863_v0 }
 0x14c   : > { %v175_v13 = vpop.f32.mrf.mxu0 }
 0x14d   : > { %v182_v14 = vsel %vm129_vm2, -1e+30, %v175_v13 }
 0x14e   : > { %v755_v15 = vpop.f32.mrf.mxu0  ;;  %v185_v16 = vsel %vm184_vm3, %v182_v14, -inf }
 0x14f   : > { %186 = vmax.xlane.f32.xlu0 %v185_v16 }
 0x150   : > { %v178_v17 = vpop.f32.mrf.mxu0 }
 0x151   : > { %v183_v18 = vsel %vm130_vm4, -1e+30, %v178_v17 }
 0x152   : > { %v756_v19 = vpop.f32.mrf.mxu0  ;;  %v188_v20 = vsel %vm184_vm3, %v183_v18, -inf }
 0x153   : > { %189 = vmax.xlane.f32.xlu1 %v188_v20 }
 0x164   : > { %208 = vrot.lane.b32.xlu1 %v911_v3, %s866_s13 }
 0x165   : > { %381 = vrot.lane.b32.xlu0 %v911_v3, %s867_s14 }
 0x1d8   : > { %v187_v21 = vpop.xlane.xlu0 %186 }
 0x1d9   : > { %v191_v22 = vsub.f32 %v182_v14, %v187_v21 }
 0x1db   : > { %v193_v23 = vmul.f32 1.442695, %v191_v22 }
 0x1dc   : > { %v190_v24 = vpop.xlane.xlu1 %189  ;;  %v382_v42 = vpop.permute.xlu0 %381 }
 0x1dd   : > { %823 = vpow2.f32 %v193_v23  ;;  %v192_v25 = vsub.f32 %v183_v18, %v190_v24  ;;  %v387_v44 = vsel %vm134_vm1, %v382_v42, 0 }
 0x1df   : > { %v195_v26 = vmul.f32 1.442695, %v192_v25 }
 0x1e0   : > { %v209_v27 = vpop.permute.xlu1 %208 }
 0x1e1   : > { %825 = vpow2.f32 %v195_v26  ;;  %758 = vmatpush3.bf16.msra.mxu1 %v209_v27 }
 0x1e2   : > { %763 = vmatprep.subr.bf16.mxu1 %v863_v0 }
 0x1ea   : > { %v824_v28 = vpop.eup %823 }
 0x1eb   : > { %v197_v29 = vsel %vm184_vm3, %v824_v28, 0.0 }
 0x1ec   : > { %198 = vadd.xlane.f32.xlu1 %v197_v29 }
 0x1ee   : > { %v826_v30 = vpop.eup %825 }
 0x1ef   : > { %v200_v31 = vsel %vm184_vm3, %v826_v30, 0.0 }
 0x1f0   : > { %201 = vadd.xlane.f32.xlu1 %v200_v31 }
 0x201   : > { %258 = vrot.lane.b32.xlu1 %v911_v3, %s868_s15 }
 0x205   : > { %256 = vrot.lane.b32.xlu1 %v122_v6, %s869_s16 }
 0x209   : > { %379 = vrot.lane.b32.xlu1 %v122_v6, %s870_s17 }
 0x20d   : > { %504 = vrot.lane.b32.xlu1 %v911_v3, %s871_s18 }
 0x211   : > { %502 = vrot.lane.b32.xlu1 %v122_v6, %s872_s19 }
 0x275   : > { %v199_v32 = vpop.xlane.xlu1 %198 }
 0x276   : > { %827 = vrcp.f32 %v199_v32 }
 0x279   : > { %v202_v33 = vpop.xlane.xlu1 %201 }
 0x27a   : > { %829 = vrcp.f32 %v202_v33 }
 0x27d   : > { %v259_v36 = vpop.permute.xlu1 %258 }
 0x27e   : > { %v264_v39 = vsel %vm134_vm1, %v259_v36, 0 }
 0x281   : > { %v257_v41 = vpop.permute.xlu1 %256 }
 0x283   : > { %v828_v34 = vpop.eup %827 }
 0x284   : > { %v205_v37 = vmul.f32 %v828_v34, %v824_v28 }
 0x285   : > { %v380_v43 = vpop.permute.xlu1 %379 }
 0x287   : > { %v830_v35 = vpop.eup %829 }
 0x288   : > { %v206_v38 = vmul.f32 %v830_v35, %v826_v30 }
 0x289   : > { %v505_v45 = vpop.permute.xlu1 %504 }
 0x28a   : > { %v207_v40 = vpack.c.bf16 %v206_v38, %v205_v37  ;;  %v510_v46 = vsel %vm134_vm1, %v505_v45, 0 }
 0x28c   : > { %760 = vmatmul.mubr.msk.bf16.vlgmr.msra.gmra.mxu1 %vm184_vm3, %v207_v40 }
 0x28d   : > { %764 = vmatpush3.bf16.xpose.msra.mxu1 %v264_v39  ;;  %765 = vmatprep.mubr.msk.bf16.mxu1 %vm864_vm0, %v863_v0  ;;  %v503_v47 = vpop.permute.xlu1 %502 }
 0x28e   : > { %775 = vmatprep.subr.bf16.mxu1 %v863_v0 }
 0x294   : > { %766 = vmatmul.mubr.msk.bf16.vlgmr.msra.gmra.mxu1 %vm134_vm1, %v257_v41 }
 0x295   : > { %776 = vmatpush3.bf16.xpose.msra.mxu1 %v387_v44  ;;  %777 = vmatprep.mubr.msk.bf16.mxu1 %vm864_vm0, %v863_v0 }
 0x296   : > { %787 = vmatprep.subr.bf16.mxu1 %v863_v0 }
 0x29c   : > { %778 = vmatmul.mubr.msk.bf16.vlgmr.msra.gmra.mxu1 %vm134_vm1, %v380_v43 }
 0x29d   : > { %788 = vmatpush3.bf16.xpose.msra.mxu1 %v510_v46  ;;  %789 = vmatprep.mubr.msk.bf16.mxu1 %vm864_vm0, %v863_v0 }
 0x2a4   : > { %790 = vmatmul.mubr.msk.bf16.vlgmr.msra.gmra.mxu1 %vm134_vm1, %v503_v47 }
 0x34c   : > { %v960_v48 = vpop.f32.mrf.mxu1 }
 0x34e   : > { %v761_v49 = vpop.f32.mrf.mxu1 }
 0x350   : > { %v962_v50 = vpop.f32.mrf.mxu1 }
 0x352   : > { %v762_v51 = vpop.f32.mrf.mxu1 }
 0x354   : > { %v300_v52 = vpop.f32.mrf.mxu1 }
 0x355   : > { %v307_v53 = vsel %vm129_vm2, -1e+30, %v300_v52 }
 0x356   : > { %v767_v54 = vpop.f32.mrf.mxu1  ;;  %v309_v55 = vsel %vm184_vm3, %v307_v53, -inf }
 0x357   : > { %310 = vmax.xlane.f32.xlu1 %v309_v55 }
 0x358   : > { %v303_v56 = vpop.f32.mrf.mxu1 }
 0x359   : > { %v308_v57 = vsel %vm130_vm4, -1e+30, %v303_v56 }
 0x35a   : > { %v768_v58 = vpop.f32.mrf.mxu1  ;;  %v312_v59 = vsel %vm184_vm3, %v308_v57, -inf }
 0x35b   : > { %313 = vmax.xlane.f32.xlu0 %v312_v59 }
 0x35c   : > { %v423_v60 = vpop.f32.mrf.mxu1 }
 0x35d   : > { %v430_v61 = vsel %vm129_vm2, -1e+30, %v423_v60 }
 0x35e   : > { %v779_v62 = vpop.f32.mrf.mxu1  ;;  %v432_v63 = vsel %vm184_vm3, %v430_v61, -inf }
 0x35f   : > { %433 = vmax.xlane.f32.xlu1 %v432_v63 }
 0x360   : > { %v426_v1 = vpop.f32.mrf.mxu1 }
 0x361   : > { %v431_v2 = vsel %vm130_vm4, -1e+30, %v426_v1 }
 0x362   : > { %v780_v4 = vpop.f32.mrf.mxu1  ;;  %v435_v5 = vsel %vm184_vm3, %v431_v2, -inf }
 0x363   : > { %436 = vmax.xlane.f32.xlu0 %v435_v5 }
 0x364   : > { %v546_v6 = vpop.f32.mrf.mxu1 }
 0x365   : > { %v553_v7 = vsel %vm129_vm2, -1e+30, %v546_v6 }
 0x366   : > { %v791_v8 = vpop.f32.mrf.mxu1  ;;  %v555_v9 = vsel %vm184_vm3, %v553_v7, -inf }
 0x367   : > { %556 = vmax.xlane.f32.xlu1 %v555_v9 }
 0x368   : > { %v549_v13 = vpop.f32.mrf.mxu1 }
 0x369   : > { %v554_v14 = vsel %vm130_vm4, -1e+30, %v549_v13 }
 0x36a   : > { %v792_v15 = vpop.f32.mrf.mxu1  ;;  %v558_v16 = vsel %vm184_vm3, %v554_v14, -inf }
 0x36b   : > { %559 = vmax.xlane.f32.xlu0 %v558_v16 }
 0x378   : > { %332 = vrot.lane.b32.xlu1 %v911_v3, %s873_s20 }
 0x3e0   : > { %v311_v17 = vpop.xlane.xlu1 %310 }
 0x3e1   : > { %v315_v18 = vsub.f32 %v307_v53, %v311_v17 }
 0x3e3   : > { %v317_v10 = vmul.f32 1.442695, %v315_v18 }
 0x3e4   : > { %v314_v19 = vpop.xlane.xlu0 %313 }
 0x3e5   : > { %831 = vpow2.f32 %v317_v10  ;;  %v316_v20 = vsub.f32 %v308_v57, %v314_v19 }
 0x3e7   : > { %v319_v21 = vmul.f32 1.442695, %v316_v20 }
 0x3e8   : > { %v434_v22 = vpop.xlane.xlu1 %433 }
 0x3e9   : > { %833 = vpow2.f32 %v319_v21  ;;  %v438_v23 = vsub.f32 %v430_v61, %v434_v22 }
 0x3eb   : > { %v440_v24 = vmul.f32 1.442695, %v438_v23 }
 0x3ec   : > { %v437_v11 = vpop.xlane.xlu0 %436 }
 0x3ed   : > { %835 = vpow2.f32 %v440_v24  ;;  %v439_v12 = vsub.f32 %v431_v2, %v437_v11 }
 0x3ef   : > { %v442_v25 = vmul.f32 1.442695, %v439_v12 }
 0x3f0   : > { %v557_v26 = vpop.xlane.xlu1 %556 }
 0x3f1   : > { %837 = vpow2.f32 %v442_v25  ;;  %v561_v27 = vsub.f32 %v553_v7, %v557_v26 }
 0x3f2   : > { %v832_v28 = vpop.eup %831 }
 0x3f3   : > { %v563_v29 = vmul.f32 1.442695, %v561_v27  ;;  %v321_v30 = vsel %vm184_vm3, %v832_v28, 0.0 }
 0x3f4   : > { %v560_v31 = vpop.xlane.xlu0 %559  ;;  %322 = vadd.xlane.f32.xlu1 %v321_v30  ;;  %v333_v32 = vpop.permute.xlu1 %332 }
 0x3f5   : > { %839 = vpow2.f32 %v563_v29  ;;  %v562_v33 = vsub.f32 %v554_v14, %v560_v31  ;;  %770 = vmatpush3.bf16.msra.mxu0 %v333_v32 }
 0x3f6   : > { %v834_v34 = vpop.eup %833  ;;  %781 = vmatprep.subr.bf16.mxu0 %v863_v0 }
 0x3f7   : > { %v565_v35 = vmul.f32 1.442695, %v562_v33  ;;  %v324_v36 = vsel %vm184_vm3, %v834_v34, 0.0 }
 0x3f8   : > { %325 = vadd.xlane.f32.xlu0 %v324_v36 }
 0x3f9   : > { %841 = vpow2.f32 %v565_v35 }
 0x3fa   : > { %v836_v37 = vpop.eup %835 }
 0x3fb   : > { %v444_v38 = vsel %vm184_vm3, %v836_v37, 0.0 }
 0x3fc   : > { %445 = vadd.xlane.f32.xlu1 %v444_v38 }
 0x3fe   : > { %v838_v39 = vpop.eup %837 }
 0x3ff   : > { %v447_v40 = vsel %vm184_vm3, %v838_v39, 0.0 }
 0x400   : > { %448 = vadd.xlane.f32.xlu0 %v447_v40 }
 0x402   : > { %v840_v41 = vpop.eup %839 }
 0x403   : > { %v567_v42 = vsel %vm184_vm3, %v840_v41, 0.0 }
 0x404   : > { %568 = vadd.xlane.f32.xlu1 %v567_v42 }
 0x406   : > { %v842_v43 = vpop.eup %841 }
 0x407   : > { %v570_v44 = vsel %vm184_vm3, %v842_v43, 0.0 }
 0x408   : > { %571 = vadd.xlane.f32.xlu0 %v570_v44 }
 0x415   : > { %578 = vrot.lane.b32.xlu1 %v911_v3, %s874_s21 }
 0x41e   : > { %455 = vrot.lane.b32.xlu0 %v911_v3, %s875_s22 }
 0x47d   : > { %v323_v45 = vpop.xlane.xlu1 %322 }
 0x47e   : > { %843 = vrcp.f32 %v323_v45 }
 0x481   : > { %v326_v46 = vpop.xlane.xlu0 %325 }
 0x482   : > { %845 = vrcp.f32 %v326_v46 }
 0x485   : > { %v446_v47 = vpop.xlane.xlu1 %445 }
 0x486   : > { %847 = vrcp.f32 %v446_v47 }
 0x489   : > { %v449_v49 = vpop.xlane.xlu0 %448 }
 0x48a   : > { %849 = vrcp.f32 %v449_v49 }
 0x48b   : > { %v844_v51 = vpop.eup %843 }
 0x48c   : > { %v329_v54 = vmul.f32 %v844_v51, %v832_v28 }
 0x48d   : > { %v569_v52 = vpop.xlane.xlu1 %568 }
 0x48e   : > { %851 = vrcp.f32 %v569_v52 }
 0x48f   : > { %v846_v53 = vpop.eup %845 }
 0x490   : > { %v330_v55 = vmul.f32 %v846_v53, %v834_v34 }
 0x491   : > { %v572_v56 = vpop.xlane.xlu0 %571  ;;  %v579_v63 = vpop.permute.xlu1 %578 }
 0x492   : > { %853 = vrcp.f32 %v572_v56  ;;  %v331_v57 = vpack.c.bf16 %v330_v55, %v329_v54 }
 0x493   : > { %v848_v3 = vpop.eup %847 }
 0x494   : > { %772 = vmatmul.mubr.msk.bf16.vlgmr.msra.gmra.mxu0 %vm184_vm3, %v331_v57  ;;  %v452_v60 = vmul.f32 %v848_v3, %v836_v37 }
 0x495   : > { %v456_v58 = vpop.permute.xlu0 %455  ;;  %783 = vmatprep.mubr.msk.bf16.mxu0 %vm864_vm0, %v863_v0 }
 0x496   : > { %782 = vmatpush3.bf16.msra.mxu0 %v456_v58 }
 0x497   : > { %v850_v59 = vpop.eup %849  ;;  %793 = vmatprep.subr.bf16.mxu0 %v863_v0 }
 0x498   : > { %v453_v61 = vmul.f32 %v850_v59, %v838_v39 }
 0x49a   : > { %v454_v62 = vpack.c.bf16 %v453_v61, %v452_v60 }
 0x49b   : > { %v852_v1 = vpop.eup %851 }
 0x49c   : > { %784 = vmatmul.mubr.msk.bf16.vlgmr.msra.gmra.mxu0 %vm184_vm3, %v454_v62  ;;  %v575_v4 = vmul.f32 %v852_v1, %v840_v41 }
 0x49d   : > { %794 = vmatpush3.bf16.msra.mxu0 %v579_v63  ;;  %795 = vmatprep.mubr.msk.bf16.mxu0 %vm864_vm0, %v863_v0 }
 0x49f   : > { %v854_v2 = vpop.eup %853 }
 0x4a0   : > { %v576_v5 = vmul.f32 %v854_v2, %v842_v43 }
 0x4a2   : > { %v577_v6 = vpack.c.bf16 %v576_v5, %v575_v4 }
 0x4a4   : > { %796 = vmatmul.mubr.msk.bf16.vlgmr.msra.gmra.mxu0 %vm184_vm3, %v577_v6 }
 0x554   : > { %v372_v7 = vpop.f32.mrf.mxu0 }
 0x555   : > { %627 = vrot.lane.b32.xlu1 %v372_v7, %s876_s23 }
 0x556   : > { %v773_v8 = vpop.f32.mrf.mxu0 }
 0x558   : > { %v375_v9 = vpop.f32.mrf.mxu0 }
 0x559   : > { %629 = vrot.lane.b32.xlu0 %v375_v9, %s876_s23 }
 0x55a   : > { %v774_v13 = vpop.f32.mrf.mxu0 }
 0x55c   : > { %v495_v14 = vpop.f32.mrf.mxu0 }
 0x55d   : > { %635 = vrot.lane.b32.xlu1 %v495_v14, %s877_s24 }
 0x55e   : > { %v785_v15 = vpop.f32.mrf.mxu0 }
 0x560   : > { %v498_v16 = vpop.f32.mrf.mxu0 }
 0x561   : > { %637 = vrot.lane.b32.xlu0 %v498_v16, %s877_s24 }
 0x562   : > { %v786_v0 = vpop.f32.mrf.mxu0 }
 0x564   : > { %v618_v17 = vpop.f32.mrf.mxu0 }
 0x565   : > { %643 = vrot.lane.b32.xlu1 %v618_v17, %s878_s25 }
 0x566   : > { %v797_v18 = vpop.f32.mrf.mxu0 }
 0x568   : > { %v621_v10 = vpop.f32.mrf.mxu0 }
 0x569   : > { %645 = vrot.lane.b32.xlu0 %v621_v10, %s878_s25 }
 0x56a   : > { %v798_v19 = vpop.f32.mrf.mxu0 }
 0x5c7   : > { %v628_v20 = vpop.permute.xlu1 %627 }
 0x5c8   : > { %v649_v23 = vsel %vm134_vm1, %v960_v48, %v628_v20 }
 0x5cb   : > { %v630_v21 = vpop.permute.xlu0 %629 }
 0x5cc   : > { %v650_v26 = vsel %vm134_vm1, %v962_v50, %v630_v21 }
 0x5cf   : > { %v636_v22 = vpop.permute.xlu1 %635 }
 0x5d0   : > { %v651_v24 = vsel %vm184_vm3, %v649_v23, %v636_v22 }
 0x5d3   : > { %v638_v11 = vpop.permute.xlu0 %637 }
 0x5d4   : > { %v652_v27 = vsel %vm184_vm3, %v650_v26, %v638_v11 }
 0x5d7   : > { %v644_v12 = vpop.permute.xlu1 %643 }
 0x5d8   : > { %v654_v25 = vsel %vm653_vm5, %v651_v24, %v644_v12 }
 0x5d9   : > { %657 = vst.msk [vmem:[%s116_s28] sm:$0xff] %vm656_vm6, %v654_v25 }
 0x5db   : > { %v646_v28 = vpop.permute.xlu0 %645 }
 0x5dc   : > { %v655_v29 = vsel %vm653_vm5, %v652_v27, %v646_v28 }
 0x5dd   : > { %658 = vst.msk [vmem:[%s116_s28 + $0x8] sm:$0xff] %vm656_vm6, %v655_v29 }
 0x5de PF: > { %s11_s6 = sadd.s32 1, %s861_s6  }
 0x5df   : > { %p8_p4 = scmp.ge.s32.totalorder %s11_s6, 4  }
 0x5e1   :  { %10 = sbr.rel (!%p8_p4) target bundleno = 1 (0x1), region = 54 }

// kernel: informer_forward.36
= control target key start
LH: loop header
LB: loop body
LE: loop exit
PB: predicated region body
PF: predicated region fallthrough
CT: control target
= control target key end

     0   :  { %s933_s9 = smov 0   ;;  %s1032_s0 = inlined_call_operand.vmem [shape: f32[2,16,32], index: 0, kind: input, shape index: {}]   ;;  %s1033_s1 = inlined_call_operand.vmem [shape: f32[2,16,64], index: 1, kind: input, shape index: {}]   ;;  %s1034_s2 = inlined_call_operand.vmem [shape: f32[2,16,32], index: 2, kind: output, shape index: {}]  }
   0x1 LB: > { %s758_s10 = sadd.s32 4294967295, %s904_s9   ;;  %p762_p0 = scmp.ge.s32.totalorder %s904_s9, 1  ;;  %s904_s9 = sphi %s933_s9, %s12_s9  }
   0x2   : > { %p122_p1 = scmp.lt.s32.totalorder %s904_s9, 3 }
   0x4   : > { %p123_p2 = pnand %p762_p0, %p122_p1 }
   0x5   : > { %p149_p3 = scmp.lt.s32.totalorder (!%p123_p2), %s758_s10, 1  ;;  %s908_s18 = smov (!%p123_p2), 120  }
   0x6   : > { %126 = sbr.rel (%p123_p2) target bundleno = 1385 (0x569), region = 28  ;;  %s909_s19 = smov (!%p123_p2), 96  }
   0x7   : > { %s910_s20 = smov (!%p123_p2), 112   ;;  %s911_s21 = smov (!%p123_p2), 104  }
   0x8   : > { %s912_s22 = smov (!%p123_p2), 88   ;;  %s913_s23 = smov (!%p123_p2), 72  }
   0x9   : > { %s914_s24 = smov (!%p123_p2), 80   ;;  %s915_s25 = smov (!%p123_p2), 8  }
   0xa   : > { %s916_s26 = smov (!%p123_p2), 16   ;;  %s917_s27 = smov (!%p123_p2), 24  }
   0xb   : > { %v906_v0 = vmov 0.0   ;;  %vm907_vm0 = vmmov 0   ;;  %s1036_s10 = smov (!%p149_p3, %s758_s10), 1  ;;  %vm173_vm1 = vcmask 64512   ;;  %vm221_vm2 = vcmask 130048  }
   0xc   : > { %798 = vmatprep.subr.bf16.mxu0 %v906_v0  ;;  %800 = vmatprep.mubr.msk.bf16.mxu0 %vm907_vm0, %v906_v0  ;;  %s947_s11 = sshll.u32 %s1036_s10, 4  ;;  %vm685_vm3 = vcmask 195584   ;;  %vm688_vm4 = vcmask 261120  }
   0xd   : > { %804 = vmatprep.subr.bf16.mxu1 %v906_v0  ;;  %806 = vmatprep.mubr.msk.bf16.mxu1 %vm907_vm0, %v906_v0  ;;  %s158_s14 = scalar_lea.vmem %s1033_s1, %s947_s11  ;;  %s153_s17 = scalar_lea.vmem %s1032_s0, %s947_s11 }
   0xe   : > { %v169_v1 = vld [vmem:[%s158_s14] sm:$0xff]  ;;  %v170_v2 = vld [vmem:[%s158_s14 + $0x8] sm:$0xff]  ;;  %s163_s30 = scalar_lea.vmem %s1034_s2, %s947_s11 }
   0xf   : > { %v165_v3 = vld [vmem:[%s153_s17] sm:$0xff]  ;;  %v957_v4 = vpack.c.bf16 %v170_v2, %v169_v1  ;;  %v166_v5 = vld [vmem:[%s153_s17 + $0x8] sm:$0xff] }
  0x10   : > { %v167_v7 = vmul.f32 0.35355338, %v165_v3  ;;  %v168_v8 = vmul.f32 0.35355338, %v166_v5 }
  0x11   : > { %v178_v6 = vsel %vm173_vm1, %v957_v4, 0  ;;  %296 = vrot.lane.b32.xlu1 %v957_v4, %s908_s18 }
  0x12   : > { %799 = vmatpush3.bf16.xpose.msra.mxu0 %v178_v6  ;;  %v171_v9 = vpack.c.bf16 %v168_v8, %v167_v7 }
  0x13   : > { %816 = vmatprep.subr.bf16.mxu0 %v906_v0 }
  0x19   : > { %801 = vmatmul.mubr.msk.bf16.vlgmr.msra.gmra.mxu0 %vm173_vm1, %v171_v9 }
  0x1a   : > { %818 = vmatprep.mubr.msk.bf16.mxu0 %vm907_vm0, %v906_v0 }
  0x83   : > { %v297_v27 = vpop.permute.xlu1 %296 }
  0x84   : > { %v302_v36 = vsel %vm173_vm1, %v297_v27, 0 }
  0xd9   : > { %v214_v10 = vpop.f32.mrf.mxu0 }
  0xda   : > { %v222_v11 = vsel %vm221_vm2, %v214_v10, -inf }
  0xdb   : > { %223 = vmax.xlane.f32.xlu0 %v222_v11  ;;  %v802_v12 = vpop.f32.mrf.mxu0 }
  0xdd   : > { %v217_v13 = vpop.f32.mrf.mxu0 }
  0xde   : > { %v225_v14 = vsel %vm221_vm2, %v217_v13, -inf }
  0xdf   : > { %226 = vmax.xlane.f32.xlu0 %v225_v14  ;;  %v803_v15 = vpop.f32.mrf.mxu0 }
  0xf5   : > { %246 = vrot.lane.b32.xlu0 %v957_v4, %s909_s19 }
  0xf9   : > { %415 = vrot.lane.b32.xlu0 %v171_v9, %s910_s20 }
  0xfd   : > { %536 = vrot.lane.b32.xlu0 %v171_v9, %s911_s21 }
 0x164   : > { %v224_v16 = vpop.xlane.xlu0 %223 }
 0x165   : > { %v228_v17 = vsub.f32 %v214_v10, %v224_v16 }
 0x167   : > { %v230_v18 = vmul.f32 1.442695, %v228_v17 }
 0x168   : > { %v227_v19 = vpop.xlane.xlu0 %226 }
 0x169   : > { %866 = vpow2.f32 %v230_v18  ;;  %v229_v20 = vsub.f32 %v217_v13, %v227_v19 }
 0x16b   : > { %v232_v21 = vmul.f32 1.442695, %v229_v20 }
 0x16c   : > { %v247_v26 = vpop.permute.xlu0 %246 }
 0x16d   : > { %868 = vpow2.f32 %v232_v21  ;;  %805 = vmatpush3.bf16.msra.mxu1 %v247_v26 }
 0x16e   : > { %810 = vmatprep.subr.bf16.mxu1 %v906_v0 }
 0x170   : > { %v416_v40 = vpop.permute.xlu0 %415 }
 0x174   : > { %v537_v42 = vpop.permute.xlu0 %536 }
 0x176   : > { %v867_v22 = vpop.eup %866 }
 0x177   : > { %v234_v23 = vsel %vm221_vm2, %v867_v22, 0.0 }
 0x178   : > { %235 = vadd.xlane.f32.xlu1 %v234_v23 }
 0x17a   : > { %v869_v24 = vpop.eup %868 }
 0x17b   : > { %v237_v25 = vsel %vm221_vm2, %v869_v24, 0.0 }
 0x17c   : > { %238 = vadd.xlane.f32.xlu1 %v237_v25 }
 0x18d   : > { %294 = vrot.lane.b32.xlu1 %v171_v9, %s908_s18 }
 0x191   : > { %417 = vrot.lane.b32.xlu1 %v957_v4, %s910_s20 }
 0x195   : > { %538 = vrot.lane.b32.xlu1 %v957_v4, %s911_s21 }
 0x201   : > { %v236_v28 = vpop.xlane.xlu1 %235 }
 0x202   : > { %870 = vrcp.f32 %v236_v28 }
 0x205   : > { %v239_v29 = vpop.xlane.xlu1 %238 }
 0x206   : > { %872 = vrcp.f32 %v239_v29 }
 0x209   : > { %v295_v34 = vpop.permute.xlu1 %294 }
 0x20d   : > { %v418_v37 = vpop.permute.xlu1 %417 }
 0x20e   : > { %v423_v38 = vsel %vm173_vm1, %v418_v37, 0 }
 0x20f   : > { %v871_v30 = vpop.eup %870 }
 0x210   : > { %v242_v32 = vmul.f32 %v871_v30, %v867_v22 }
 0x211   : > { %v539_v39 = vpop.permute.xlu1 %538 }
 0x212   : > { %v544_v41 = vsel %vm173_vm1, %v539_v39, 0 }
 0x213   : > { %v873_v31 = vpop.eup %872 }
 0x214   : > { %v243_v33 = vmul.f32 %v873_v31, %v869_v24 }
 0x216   : > { %v244_v35 = vpack.c.bf16 %v243_v33, %v242_v32 }
 0x218   : > { %807 = vmatmul.mubr.msk.bf16.vlgmr.msra.gmra.mxu1 %vm221_vm2, %v244_v35 }
 0x219   : > { %811 = vmatpush3.bf16.xpose.msra.mxu1 %v302_v36  ;;  %812 = vmatprep.mubr.msk.bf16.mxu1 %vm907_vm0, %v906_v0 }
 0x21a   : > { %822 = vmatprep.subr.bf16.mxu1 %v906_v0 }
 0x220   : > { %813 = vmatmul.mubr.msk.bf16.vlgmr.msra.gmra.mxu1 %vm173_vm1, %v295_v34 }
 0x221   : > { %823 = vmatpush3.bf16.xpose.msra.mxu1 %v423_v38  ;;  %824 = vmatprep.mubr.msk.bf16.mxu1 %vm907_vm0, %v906_v0 }
 0x222   : > { %834 = vmatprep.subr.bf16.mxu1 %v906_v0 }
 0x228   : > { %825 = vmatmul.mubr.msk.bf16.vlgmr.msra.gmra.mxu1 %vm173_vm1, %v416_v40 }
 0x229   : > { %835 = vmatpush3.bf16.xpose.msra.mxu1 %v544_v41  ;;  %836 = vmatprep.mubr.msk.bf16.mxu1 %vm907_vm0, %v906_v0 }
 0x230   : > { %837 = vmatmul.mubr.msk.bf16.vlgmr.msra.gmra.mxu1 %vm173_vm1, %v537_v42 }
 0x2d8   : > { %v991_v43 = vpop.f32.mrf.mxu1 }
 0x2da   : > { %v808_v44 = vpop.f32.mrf.mxu1 }
 0x2dc   : > { %v993_v45 = vpop.f32.mrf.mxu1 }
 0x2de   : > { %v809_v46 = vpop.f32.mrf.mxu1 }
 0x2e0   : > { %v338_v47 = vpop.f32.mrf.mxu1 }
 0x2e1   : > { %v345_v48 = vsel %vm221_vm2, %v338_v47, -inf }
 0x2e2   : > { %346 = vmax.xlane.f32.xlu1 %v345_v48  ;;  %v814_v49 = vpop.f32.mrf.mxu1 }
 0x2e4   : > { %v341_v50 = vpop.f32.mrf.mxu1 }
 0x2e5   : > { %v348_v51 = vsel %vm221_vm2, %v341_v50, -inf }
 0x2e6   : > { %349 = vmax.xlane.f32.xlu0 %v348_v51  ;;  %v815_v52 = vpop.f32.mrf.mxu1 }
 0x2e8   : > { %v459_v53 = vpop.f32.mrf.mxu1 }
 0x2e9   : > { %v466_v54 = vsel %vm221_vm2, %v459_v53, -inf }
 0x2ea   : > { %467 = vmax.xlane.f32.xlu0 %v466_v54  ;;  %v826_v55 = vpop.f32.mrf.mxu1 }
 0x2ec   : > { %v462_v56 = vpop.f32.mrf.mxu1 }
 0x2ed   : > { %v469_v57 = vsel %vm221_vm2, %v462_v56, -inf }
 0x2ee   : > { %470 = vmax.xlane.f32.xlu0 %v469_v57  ;;  %v827_v58 = vpop.f32.mrf.mxu1 }
 0x2f0   : > { %v580_v59 = vpop.f32.mrf.mxu1 }
 0x2f1   : > { %v587_v60 = vsel %vm221_vm2, %v580_v59, -inf }
 0x2f2   : > { %588 = vmax.xlane.f32.xlu1 %v587_v60  ;;  %v838_v61 = vpop.f32.mrf.mxu1 }
 0x2f4   : > { %v583_v62 = vpop.f32.mrf.mxu1 }
 0x2f5   : > { %v590_v63 = vsel %vm221_vm2, %v583_v62, -inf }
 0x2f6   : > { %591 = vmax.xlane.f32.xlu0 %v590_v63  ;;  %v839_v1 = vpop.f32.mrf.mxu1 }
 0x303   : > { %368 = vrot.lane.b32.xlu1 %v957_v4, %s912_s22 }
 0x36b   : > { %v347_v2 = vpop.xlane.xlu1 %346 }
 0x36c   : > { %v351_v3 = vsub.f32 %v338_v47, %v347_v2 }
 0x36e   : > { %v353_v5 = vmul.f32 1.442695, %v351_v3 }
 0x36f   : > { %v350_v6 = vpop.xlane.xlu0 %349 }
 0x370   : > { %874 = vpow2.f32 %v353_v5  ;;  %v352_v7 = vsub.f32 %v341_v50, %v350_v6 }
 0x372   : > { %v355_v8 = vmul.f32 1.442695, %v352_v7 }
 0x373   : > { %v468_v9 = vpop.xlane.xlu0 %467 }
 0x374   : > { %876 = vpow2.f32 %v355_v8  ;;  %v472_v10 = vsub.f32 %v459_v53, %v468_v9 }
 0x376   : > { %v474_v11 = vmul.f32 1.442695, %v472_v10 }
 0x377   : > { %v471_v12 = vpop.xlane.xlu0 %470 }
 0x378   : > { %878 = vpow2.f32 %v474_v11  ;;  %v473_v13 = vsub.f32 %v462_v56, %v471_v12 }
 0x37a   : > { %v476_v14 = vmul.f32 1.442695, %v473_v13 }
 0x37b   : > { %v589_v15 = vpop.xlane.xlu1 %588 }
 0x37c   : > { %880 = vpow2.f32 %v476_v14  ;;  %v593_v16 = vsub.f32 %v580_v59, %v589_v15 }
 0x37d   : > { %v875_v17 = vpop.eup %874 }
 0x37e   : > { %v595_v18 = vmul.f32 1.442695, %v593_v16  ;;  %v357_v19 = vsel %vm221_vm2, %v875_v17, 0.0 }
 0x37f   : > { %358 = vadd.xlane.f32.xlu1 %v357_v19  ;;  %v592_v20 = vpop.xlane.xlu0 %591  ;;  %v369_v21 = vpop.permute.xlu1 %368 }
 0x380   : > { %882 = vpow2.f32 %v595_v18  ;;  %v594_v22 = vsub.f32 %v583_v62, %v592_v20  ;;  %817 = vmatpush3.bf16.msra.mxu0 %v369_v21 }
 0x381   : > { %v877_v23 = vpop.eup %876  ;;  %828 = vmatprep.subr.bf16.mxu0 %v906_v0 }
 0x382   : > { %v597_v24 = vmul.f32 1.442695, %v594_v22  ;;  %v360_v25 = vsel %vm221_vm2, %v877_v23, 0.0 }
 0x383   : > { %361 = vadd.xlane.f32.xlu0 %v360_v25 }
 0x384   : > { %884 = vpow2.f32 %v597_v24 }
 0x385   : > { %v879_v26 = vpop.eup %878 }
 0x386   : > { %v478_v27 = vsel %vm221_vm2, %v879_v26, 0.0 }
 0x387   : > { %479 = vadd.xlane.f32.xlu1 %v478_v27 }
 0x389   : > { %v881_v28 = vpop.eup %880 }
 0x38a   : > { %v481_v29 = vsel %vm221_vm2, %v881_v28, 0.0 }
 0x38b   : > { %482 = vadd.xlane.f32.xlu0 %v481_v29 }
 0x38d   : > { %v883_v30 = vpop.eup %882 }
 0x38e   : > { %v599_v31 = vsel %vm221_vm2, %v883_v30, 0.0 }
 0x38f   : > { %600 = vadd.xlane.f32.xlu1 %v599_v31 }
 0x391   : > { %v885_v32 = vpop.eup %884 }
 0x392   : > { %v602_v33 = vsel %vm221_vm2, %v885_v32, 0.0 }
 0x393   : > { %603 = vadd.xlane.f32.xlu0 %v602_v33 }
 0x3a0   : > { %610 = vrot.lane.b32.xlu1 %v957_v4, %s913_s23 }
 0x3a9   : > { %489 = vrot.lane.b32.xlu0 %v957_v4, %s914_s24 }
 0x408   : > { %v359_v34 = vpop.xlane.xlu1 %358 }
 0x409   : > { %886 = vrcp.f32 %v359_v34 }
 0x40c   : > { %v362_v35 = vpop.xlane.xlu0 %361 }
 0x40d   : > { %888 = vrcp.f32 %v362_v35 }
 0x410   : > { %v480_v36 = vpop.xlane.xlu1 %479 }
 0x411   : > { %890 = vrcp.f32 %v480_v36 }
 0x414   : > { %v483_v37 = vpop.xlane.xlu0 %482 }
 0x415   : > { %892 = vrcp.f32 %v483_v37 }
 0x416   : > { %v887_v38 = vpop.eup %886 }
 0x417   : > { %v365_v41 = vmul.f32 %v887_v38, %v875_v17 }
 0x418   : > { %v601_v39 = vpop.xlane.xlu1 %600 }
 0x419   : > { %894 = vrcp.f32 %v601_v39 }
 0x41a   : > { %v889_v40 = vpop.eup %888 }
 0x41b   : > { %v366_v42 = vmul.f32 %v889_v40, %v877_v23 }
 0x41c   : > { %v604_v44 = vpop.xlane.xlu0 %603  ;;  %v611_v52 = vpop.permute.xlu1 %610 }
 0x41d   : > { %896 = vrcp.f32 %v604_v44  ;;  %v367_v46 = vpack.c.bf16 %v366_v42, %v365_v41 }
 0x41e   : > { %v891_v4 = vpop.eup %890 }
 0x41f   : > { %819 = vmatmul.mubr.msk.bf16.vlgmr.msra.gmra.mxu0 %vm221_vm2, %v367_v46  ;;  %v486_v49 = vmul.f32 %v891_v4, %v879_v26 }
 0x420   : > { %v490_v47 = vpop.permute.xlu0 %489  ;;  %830 = vmatprep.mubr.msk.bf16.mxu0 %vm907_vm0, %v906_v0 }
 0x421   : > { %829 = vmatpush3.bf16.msra.mxu0 %v490_v47 }
 0x422   : > { %v893_v48 = vpop.eup %892  ;;  %840 = vmatprep.subr.bf16.mxu0 %v906_v0 }
 0x423   : > { %v487_v50 = vmul.f32 %v893_v48, %v881_v28 }
 0x425   : > { %v488_v51 = vpack.c.bf16 %v487_v50, %v486_v49 }
 0x426   : > { %v895_v53 = vpop.eup %894 }
 0x427   : > { %831 = vmatmul.mubr.msk.bf16.vlgmr.msra.gmra.mxu0 %vm221_vm2, %v488_v51  ;;  %v607_v55 = vmul.f32 %v895_v53, %v883_v30 }
 0x428   : > { %841 = vmatpush3.bf16.msra.mxu0 %v611_v52  ;;  %842 = vmatprep.mubr.msk.bf16.mxu0 %vm907_vm0, %v906_v0 }
 0x42a   : > { %v897_v54 = vpop.eup %896 }
 0x42b   : > { %v608_v56 = vmul.f32 %v897_v54, %v885_v32 }
 0x42d   : > { %v609_v57 = vpack.c.bf16 %v608_v56, %v607_v55 }
 0x42f   : > { %843 = vmatmul.mubr.msk.bf16.vlgmr.msra.gmra.mxu0 %vm221_vm2, %v609_v57 }
 0x4df   : > { %v408_v58 = vpop.f32.mrf.mxu0 }
 0x4e0   : > { %659 = vrot.lane.b32.xlu1 %v408_v58, %s915_s25 }
 0x4e1   : > { %v820_v59 = vpop.f32.mrf.mxu0 }
 0x4e3   : > { %v411_v60 = vpop.f32.mrf.mxu0 }
 0x4e4   : > { %661 = vrot.lane.b32.xlu1 %v411_v60, %s915_s25 }
 0x4e5   : > { %v821_v61 = vpop.f32.mrf.mxu0 }
 0x4e7   : > { %v529_v62 = vpop.f32.mrf.mxu0 }
 0x4e8   : > { %667 = vrot.lane.b32.xlu0 %v529_v62, %s916_s26 }
 0x4e9   : > { %v832_v63 = vpop.f32.mrf.mxu0 }
 0x4eb   : > { %v532_v1 = vpop.f32.mrf.mxu0 }
 0x4ec   : > { %669 = vrot.lane.b32.xlu1 %v532_v1, %s916_s26 }
 0x4ed   : > { %v833_v0 = vpop.f32.mrf.mxu0 }
 0x4ef   : > { %v650_v2 = vpop.f32.mrf.mxu0 }
 0x4f0   : > { %675 = vrot.lane.b32.xlu0 %v650_v2, %s917_s27 }
 0x4f1   : > { %v844_v3 = vpop.f32.mrf.mxu0 }
 0x4f3   : > { %v653_v5 = vpop.f32.mrf.mxu0 }
 0x4f4   : > { %677 = vrot.lane.b32.xlu1 %v653_v5, %s917_s27 }
 0x4f5   : > { %v845_v6 = vpop.f32.mrf.mxu0 }
 0x552   : > { %v660_v7 = vpop.permute.xlu1 %659 }
 0x553   : > { %v681_v10 = vsel %vm173_vm1, %v991_v43, %v660_v7 }
 0x556   : > { %v662_v8 = vpop.permute.xlu1 %661 }
 0x557   : > { %v682_v15 = vsel %vm173_vm1, %v993_v45, %v662_v8 }
 0x55a   : > { %v668_v9 = vpop.permute.xlu0 %667 }
 0x55b   : > { %v683_v11 = vsel %vm221_vm2, %v681_v10, %v668_v9 }
 0x55e   : > { %v670_v12 = vpop.permute.xlu1 %669 }
 0x55f   : > { %v684_v16 = vsel %vm221_vm2, %v682_v15, %v670_v12 }
 0x562   : > { %v676_v13 = vpop.permute.xlu0 %675 }
 0x563   : > { %v686_v14 = vsel %vm685_vm3, %v683_v11, %v676_v13 }
 0x564   : > { %689 = vst.msk [vmem:[%s163_s30] sm:$0xff] %vm688_vm4, %v686_v14 }
 0x566   : > { %v678_v17 = vpop.permute.xlu1 %677 }
 0x567   : > { %v687_v18 = vsel %vm685_vm3, %v684_v16, %v678_v17 }
 0x568   : > { %690 = vst.msk [vmem:[%s163_s30 + $0x8] sm:$0xff] %vm688_vm4, %v687_v18 }
 0x569 PF: > { %s12_s9 = sadd.s32 1, %s904_s9  }
 0x56a   : > { %p9_p4 = scmp.ge.s32.totalorder %s12_s9, 4  }
 0x56c   :  { %11 = sbr.rel (!%p9_p4) target bundleno = 1 (0x1), region = 61 }

// kernel: informer_forward.34
= control target key start
LH: loop header
LB: loop body
LE: loop exit
PB: predicated region body
PF: predicated region fallthrough
CT: control target
= control target key end

     0   :  { %vm44_vm0 = vcmask 261120   ;;  %s186_s1 = inlined_call_operand.vmem [shape: bf16[32,32], index: 1, kind: input, shape index: {}]   ;;  %s187_s0 = inlined_call_operand.vmem [shape: f32[32,32], index: 0, kind: input, shape index: {}]   ;;  %s188_s2 = inlined_call_operand.vmem [shape: f32[1,32], index: 2, kind: input, shape index: {}]   ;;  %s189_s3 = inlined_call_operand.vmem [shape: f32[32,32], index: 3, kind: output, shape index: {}]  }
   0x1   :  { %v125_v0 = vld [vmem:[%s186_s1 + $0x8] sm:$0xff]   ;;  %v126_v1 = vld [vmem:[%s186_s1] sm:$0xff]   ;;  %v17_v5 = vld [vmem:[%s187_s0 + $0x10] sm:$0xff] }
   0x2   :  { %117 = vmatprep.subr.bf16.mxu0 %v125_v0  ;;  %v15_v2 = vld [vmem:[%s187_s0] sm:$0xff]  ;;  %v16_v3 = vld [vmem:[%s187_s0 + $0x8] sm:$0xff]  ;;  %v18_v6 = vld [vmem:[%s187_s0 + $0x18] sm:$0xff] }
   0x3   :  { %118 = vmatpush3.bf16.msra.mxu0 %v125_v0  ;;  %v19_v4 = vpack.c.bf16 %v16_v3, %v15_v2  ;;  %v20_v7 = vpack.c.bf16 %v18_v6, %v17_v5  ;;  %v108_v8 = vld [vmem:[%s188_s2] ss:$0 sm:$0xff] }
   0x4   :  { %119 = vmatprep.subr.bf16.mxu0 %v126_v1 }
   0x5   :  { %121 = vmatprep.mubr.msk.bf16.mxu0 %vm44_vm0, %v19_v4 }
   0x7   :  { %120 = vmatpush3.bf16.msra.mxu0 %v126_v1 }
   0xa   :  { %122 = vmatmul.mubr.msk.bf16.vlgmr.msra.gmra.mxu0 %vm44_vm0, %v20_v7 }
  0xca   :  { %v123_v9 = vpop.f32.mrf.mxu0 }
  0xcb   :  { %v94_v10 = vadd.f32 %v123_v9, %v108_v8 }
  0xcc   :  { %v85_v11 = vpop.f32.mrf.mxu0 }
  0xcd   :  { %102 = vst.msk [vmem:[%s189_s3 + $0x10] sm:$0xff] %vm44_vm0, %v94_v10  ;;  %v86_v12 = vadd.f32 %v108_v8, %v85_v11 }
  0xce   :  { %v124_v13 = vpop.f32.mrf.mxu0 }
  0xcf   :  { %100 = vst.msk [vmem:[%s189_s3] sm:$0xff] %vm44_vm0, %v86_v12  ;;  %v97_v14 = vadd.f32 %v124_v13, %v108_v8 }
  0xd0   :  { %v88_v15 = vpop.f32.mrf.mxu0 }
  0xd1   :  { %103 = vst.msk [vmem:[%s189_s3 + $0x18] sm:$0xff] %vm44_vm0, %v97_v14  ;;  %v89_v16 = vadd.f32 %v108_v8, %v88_v15 }
  0xd3   :  { %101 = vst.msk [vmem:[%s189_s3 + $0x8] sm:$0xff] %vm44_vm0, %v89_v16 }

</bundles_post_ra>
